<compile_context>
chip_gen: v6e
topology: v6e:2x2x1
jax: 0.10.0
libtpu: 0.0.40
codegen_flags: <defaults>
</compile_context>

<pallas_src>
import functools

import jax
import jax.numpy as jnp
from jax import lax
from jax.experimental import pallas as pl
from jax.experimental.pallas import tpu as pltpu


# ----------------------------- small helpers ---------------------------------

def _round_up(v, m):
    return ((v + m - 1) // m) * m


def _resident_spec(shape, index_map):
    """BlockSpec for constant-index (weight) blocks: single pipeline buffer.

    The block index never changes across the grid, so a second pipeline buffer would
    only waste VMEM (matters for real Swin widths vs. the 32 MiB default scoped VMEM
    and v7x's 64 MiB physical VMEM)."""
    if hasattr(pl, "Buffered"):
        try:
            return pl.BlockSpec(shape, index_map, pipeline_mode=pl.Buffered(1))
        except TypeError:  # older BlockSpec without pipeline_mode support
            pass
    return pl.BlockSpec(shape, index_map)


def _vmem_limit_bytes(residency_estimate):
    # 2x headroom over the static residency estimate; floor at the v6e/v7x default
    # (32 MiB) so small shapes never regress, cap at v7x's 64 MiB physical VMEM.
    return int(min(max(2 * residency_estimate + (2 << 20), 32 << 20), 64 << 20))


def _pick_window_batch(num_windows, tokens_per_window, max_rows=1024):
    """Largest divisor of num_windows keeping WB*N rows <= max_rows, while preferring
    a grid of >= 2 steps so both v7x TensorCores get work."""
    best = 1
    for d in range(1, num_windows + 1):
        if num_windows % d == 0 and d * tokens_per_window <= max_rows:
            if num_windows // d >= 2 or num_windows == 1:
                best = d
    return best


def _pick_row_tile(M, max_rows=1024):
    tm = min(M, max_rows)
    if pl.cdiv(M, tm) < 2 and M >= 16:
        tm = _round_up(pl.cdiv(M, 2), 8)      # keep >= 2 grid steps for megacore balance
    return tm


def _pick_hidden_tile(hidden, max_tile=512):
    if hidden <= max_tile:
        return hidden
    for th in range(max_tile, 127, -128):     # 128-multiples only (lane alignment)
        if th % 128 == 0 and hidden % th == 0:
            return th
    return hidden                              # fallback: fully resident


def _erf_approx(x):
    # Abramowitz & Stegun 7.1.26 rational approximation (|abs err| <= 1.5e-7).
    # TODO(synk): lax.erf has no guaranteed Mosaic lowering; exact-GELU's erf is
    # approximated in-kernel instead (exp goes to the EUP slot).
    a1, a2, a3, a4, a5 = 0.254829592, -0.284496736, 1.421413741, -1.453152027, 1.061405429
    p = 0.3275911
    sign = jnp.where(x >= 0.0, 1.0, -1.0)
    ax = jnp.abs(x)
    t = 1.0 / (1.0 + p * ax)
    poly = ((((a5 * t + a4) * t + a3) * t + a2) * t + a1) * t
    return sign * (1.0 - poly * jnp.exp(-ax * ax))


def _gelu_exact(x):
    # nn.GELU() default: 0.5 * x * (1 + erf(x / sqrt(2)))
    return 0.5 * x * (1.0 + _erf_approx(x * 0.7071067811865476))


# --------------------------- window attention kernel --------------------------

def _window_attn_kernel(x_ref, wqkv_ref, bqkv_ref, bias_ref, wproj_ref, bproj_ref,
                        o_ref, oconcat_scr, *, num_heads, head_dim, scale, matmul_dtype):
    WB, N, C = x_ref.shape
    cdt = matmul_dtype

    # One dense (WB*N, C) x (C, 3C) matmul for all windows in this grid step.
    x2 = x_ref[...].reshape(WB * N, C).astype(cdt)
    qkv = jnp.dot(x2, wqkv_ref[...].astype(cdt),
                  preferred_element_type=jnp.float32) + bqkv_ref[...]      # (WB*N, 3C) f32

    # Per-head attention, batched over the WB windows. Each head's output is stored
    # straight into the concat scratch so intermediates don't stay live across heads;
    # the projection below is a single full-K (C) matmul (review item).
    for h in range(num_heads):
        lo = h * head_dim
        qh = (qkv[:, lo:lo + head_dim] * scale).reshape(WB, N, head_dim)
        kh = qkv[:, C + lo:C + lo + head_dim].reshape(WB, N, head_dim)
        vh = qkv[:, 2 * C + lo:2 * C + lo + head_dim].reshape(WB, N, head_dim)

        attn = jnp.einsum('bqd,bkd->bqk', qh.astype(cdt), kh.astype(cdt),
                          preferred_element_type=jnp.float32)              # (WB, N, N)
        attn = attn + bias_ref[h]                                          # rel. pos. bias
        attn = attn - jnp.max(attn, axis=-1, keepdims=True)
        p = jnp.exp(attn)
        p = p * pl.reciprocal(jnp.sum(p, axis=-1, keepdims=True), approx=True)

        oh = jnp.einsum('bqk,bkd->bqd', p.astype(cdt), vh.astype(cdt),
                        preferred_element_type=jnp.float32)                # (WB, N, hd)
        oconcat_scr[:, lo:lo + head_dim] = oh.reshape(WB * N, head_dim)

    out = jnp.dot(oconcat_scr[...].astype(cdt), wproj_ref[...].astype(cdt),
                  preferred_element_type=jnp.float32) + bproj_ref[...]
    o_ref[...] = out.reshape(WB, N, C).astype(o_ref.dtype)


def window_attention(x_windows, wqkv, bqkv, rel_bias, wproj, bproj, num_heads,
                     matmul_dtype=jnp.float32, max_rows=1024):
    nW, N, C = x_windows.shape
    head_dim = C // num_heads
    scale = head_dim ** (-0.5)
    WB = _pick_window_batch(nW, N, max_rows)

    # Store the big matmul weights in matmul_dtype (halves weight DMA + VMEM in bf16);
    # biases / relative-position bias stay f32 and are added after the f32 accumulation.
    wqkv = wqkv.astype(matmul_dtype)
    wproj = wproj.astype(matmul_dtype)

    kernel = functools.partial(_window_attn_kernel, num_heads=num_heads,
                               head_dim=head_dim, scale=scale, matmul_dtype=matmul_dtype)

    act_item = x_windows.dtype.itemsize
    w_item = jnp.dtype(matmul_dtype).itemsize
    flops = nW * (2 * N * C * 3 * C + 4 * N * N * C + 2 * N * C * C)
    transcendentals = nW * num_heads * N * N
    bytes_accessed = int(2 * nW * N * C * act_item
                         + (3 * C * C + C * C) * w_item
                         + (num_heads * N * N + 4 * C) * 4)

    # Static VMEM residency estimate: single-buffered weights + double-buffered
    # activation tiles + qkv / concat / attn intermediates.
    act_tile = WB * N * C * 4
    vmem_est = ((3 * C * C + C * C) * w_item + (num_heads * N * N + 4 * C) * 4
                + 4 * act_tile + WB * N * 3 * C * 4 + act_tile + WB * N * N * 4)

    return pl.pallas_call(
        kernel,
        out_shape=jax.ShapeDtypeStruct((nW, N, C), x_windows.dtype),
        grid=(nW // WB,),
        in_specs=[
            pl.BlockSpec((WB, N, C), lambda i: (i, 0, 0)),                 # WB windows
            _resident_spec((C, 3 * C), lambda i: (0, 0)),                  # W_qkv (resident)
            _resident_spec((1, 3 * C), lambda i: (0, 0)),                  # b_qkv
            _resident_spec((num_heads, N, N), lambda i: (0, 0, 0)),        # rel. pos. bias
            _resident_spec((C, C), lambda i: (0, 0)),                      # W_proj
            _resident_spec((1, C), lambda i: (0, 0)),                      # b_proj
        ],
        out_specs=pl.BlockSpec((WB, N, C), lambda i: (i, 0, 0)),
        scratch_shapes=[pltpu.VMEM((WB * N, C), jnp.float32)],             # head concat
        compiler_params=pltpu.CompilerParams(
            dimension_semantics=("parallel",),
            vmem_limit_bytes=_vmem_limit_bytes(vmem_est)),
        cost_estimate=pl.CostEstimate(flops=int(flops), transcendentals=int(transcendentals),
                                      bytes_accessed=bytes_accessed),
    )(x_windows, wqkv, bqkv, rel_bias, wproj, bproj)


# ------------------------- LayerNorm + residual + MLP -------------------------

def _ln_mlp_kernel(x_ref, g1_ref, b1_ref, g2_ref, b2_ref,
                   w1_ref, bb1_ref, w2_ref, bb2_ref, o_ref,
                   y_scr, yn_scr, acc_scr, *, eps, matmul_dtype):
    cdt = matmul_dtype
    j = pl.program_id(1)

    def layernorm(v, g, b):
        mu = jnp.mean(v, axis=-1, keepdims=True)
        var = jnp.mean(jnp.square(v - mu), axis=-1, keepdims=True)
        return (v - mu) * lax.rsqrt(var + eps) * g + b

    @pl.when(j == 0)
    def _():
        # Matches the PyTorch module exactly: y = x + norm1(x); yn = norm2(y).
        x = x_ref[...].astype(jnp.float32)                                 # (TM, C)
        y = x + layernorm(x, g1_ref[...], b1_ref[...])
        y_scr[...] = y
        yn_scr[...] = layernorm(y, g2_ref[...], b2_ref[...])
        acc_scr[...] = jnp.zeros_like(acc_scr)

    # One streamed (hidden) tile of the MLP: h_j = GELU(yn @ W1[:, j]), acc += h_j @ W2[j, :]
    h = jnp.dot(yn_scr[...].astype(cdt), w1_ref[...].astype(cdt),
                preferred_element_type=jnp.float32) + bb1_ref[...]
    h = _gelu_exact(h)
    acc_scr[...] += jnp.dot(h.astype(cdt), w2_ref[...].astype(cdt),
                            preferred_element_type=jnp.float32)

    @pl.when(j == pl.num_programs(1) - 1)
    def _():
        o_ref[...] = (y_scr[...] + acc_scr[...] + bb2_ref[...]).astype(o_ref.dtype)


def ln_mlp(x, g1, b1, g2, b2, w1, bb1, w2, bb2, eps=1e-5, matmul_dtype=jnp.float32,
           max_rows=1024, max_hidden_tile=512):
    M, C = x.shape
    Hd = w1.shape[1]
    TM = _pick_row_tile(M, max_rows)              # row tile; pipelined over grid axis 0
    TH = _pick_hidden_tile(Hd, max_hidden_tile)   # streamed hidden tile; reduction axis 1
    nI = pl.cdiv(M, TM)
    nJ = Hd // TH

    w1 = w1.astype(matmul_dtype)                  # big MLP weights in matmul dtype
    w2 = w2.astype(matmul_dtype)

    kernel = functools.partial(_ln_mlp_kernel, eps=eps, matmul_dtype=matmul_dtype)

    act_item = x.dtype.itemsize
    w_item = jnp.dtype(matmul_dtype).itemsize
    flops = 4 * M * C * Hd + 12 * M * C
    transcendentals = M * Hd
    bytes_accessed = int(2 * M * C * act_item + nI * 2 * C * Hd * w_item + (Hd + 5 * C) * 4)

    # Residency: streamed (double-buffered) W1/W2 tiles + LN params + in/out tiles +
    # 3 f32 scratch tiles + the (TM, TH) GELU intermediate.
    act_tile = TM * C * 4
    vmem_est = (2 * 2 * C * TH * w_item + (TH + 5 * C) * 4
                + 4 * act_tile + 3 * act_tile + TM * TH * 4)

    stream_spec = _resident_spec if nJ == 1 else pl.BlockSpec

    return pl.pallas_call(
        kernel,
        out_shape=jax.ShapeDtypeStruct((M, C), x.dtype),
        grid=(nI, nJ),
        in_specs=[
            pl.BlockSpec((TM, C), lambda i, j: (i, 0)),      # row tile (held across j)
            _resident_spec((1, C), lambda i, j: (0, 0)),      # gamma1
            _resident_spec((1, C), lambda i, j: (0, 0)),      # beta1
            _resident_spec((1, C), lambda i, j: (0, 0)),      # gamma2
            _resident_spec((1, C), lambda i, j: (0, 0)),      # beta2
            stream_spec((C, TH), lambda i, j: (0, j)),        # W1 streamed over hidden
            stream_spec((1, TH), lambda i, j: (0, j)),        # b1
            stream_spec((TH, C), lambda i, j: (j, 0)),        # W2 streamed over hidden
            _resident_spec((1, C), lambda i, j: (0, 0)),      # b2
        ],
        out_specs=pl.BlockSpec((TM, C), lambda i, j: (i, 0)),
        scratch_shapes=[pltpu.VMEM((TM, C), jnp.float32),     # y  (residual carrier)
                        pltpu.VMEM((TM, C), jnp.float32),     # yn (norm2 output)
                        pltpu.VMEM((TM, C), jnp.float32)],    # MLP accumulator
        compiler_params=pltpu.CompilerParams(
            dimension_semantics=("parallel", "arbitrary"),
            vmem_limit_bytes=_vmem_limit_bytes(vmem_est)),
        input_output_aliases={0: 0},                          # write result in place of x
        cost_estimate=pl.CostEstimate(flops=int(flops), transcendentals=int(transcendentals),
                                      bytes_accessed=bytes_accessed),
    )(x, g1, b1, g2, b2, w1, bb1, w2, bb2)


# --------------------------------- JAX glue -----------------------------------

def window_partition(x, ws):
    B, H, W, C = x.shape
    x = x.reshape(B, H // ws, ws, W // ws, ws, C)
    return x.transpose(0, 1, 3, 2, 4, 5).reshape(-1, ws, ws, C)


def window_reverse(windows, ws, H, W):
    B = windows.shape[0] // ((H // ws) * (W // ws))
    x = windows.reshape(B, H // ws, W // ws, ws, ws, -1)
    return x.transpose(0, 1, 3, 2, 4, 5).reshape(B, H, W, -1)


def relative_position_index(ws):
    coords = jnp.stack(jnp.meshgrid(jnp.arange(ws), jnp.arange(ws), indexing="ij"))
    flat = coords.reshape(2, -1)
    rel = flat[:, :, None] - flat[:, None, :]
    rel = rel.transpose(1, 2, 0) + (ws - 1)
    return rel[..., 0] * (2 * ws - 1) + rel[..., 1]


def init_params(key, dim, num_heads, window_size, mlp_ratio):
    C = dim
    hidden = int(dim * mlp_ratio)
    ks = jax.random.split(key, 10)
    params = dict(
        wqkv=0.02 * jax.random.normal(ks[0], (C, 3 * C), jnp.float32),
        bqkv=0.02 * jax.random.normal(ks[1], (1, 3 * C), jnp.float32),
        wproj=0.02 * jax.random.normal(ks[2], (C, C), jnp.float32),
        bproj=0.02 * jax.random.normal(ks[3], (1, C), jnp.float32),
        g1=jnp.ones((1, C), jnp.float32),
        b1=jnp.zeros((1, C), jnp.float32),
        g2=jnp.ones((1, C), jnp.float32),
        b2=jnp.zeros((1, C), jnp.float32),
        w1=0.02 * jax.random.normal(ks[4], (C, hidden), jnp.float32),
        bb1=0.02 * jax.random.normal(ks[5], (1, hidden), jnp.float32),
        w2=0.02 * jax.random.normal(ks[6], (hidden, C), jnp.float32),
        bb2=0.02 * jax.random.normal(ks[7], (1, C), jnp.float32),
    )
    table = 0.02 * jax.random.normal(ks[8], ((2 * window_size - 1) ** 2, num_heads),
                                     jnp.float32)
    idx = relative_position_index(window_size)
    N = window_size * window_size
    params["rel_bias"] = table[idx.reshape(-1)].reshape(N, N, num_heads).transpose(2, 0, 1)
    return params


def swin_block_forward(x, params, *, input_resolution, num_heads, window_size, shift_size,
                       matmul_dtype=jnp.float32):
    H, W = input_resolution
    B, L, C = x.shape
    x = x.reshape(B, H, W, C)
    if shift_size > 0:
        # NOTE: matches the reference module, which applies no shifted-window attn mask.
        x = jnp.roll(x, shift=(-shift_size, -shift_size), axis=(1, 2))
    xw = window_partition(x, window_size).reshape(-1, window_size * window_size, C)
    attn_w = window_attention(xw, params["wqkv"], params["bqkv"], params["rel_bias"],
                              params["wproj"], params["bproj"], num_heads,
                              matmul_dtype=matmul_dtype)
    attn_w = attn_w.reshape(-1, window_size, window_size, C)
    x = window_reverse(attn_w, window_size, H, W)
    if shift_size > 0:
        x = jnp.roll(x, shift=(shift_size, shift_size), axis=(1, 2))
    x = x.reshape(B * L, C)
    out = ln_mlp(x, params["g1"], params["b1"], params["g2"], params["b2"],
                 params["w1"], params["bb1"], params["w2"], params["bb2"],
                 matmul_dtype=matmul_dtype)
    return out.reshape(B, L, C)


# ----------------------------------- main --------------------------------------

if __name__ == "__main__":
    B = 2
    H = W = 8
    dim = 32
    num_heads = 4
    window_size = 4
    shift_size = 0
    mlp_ratio = 4.0
    L = H * W

    key = jax.random.PRNGKey(0)
    kx, kp = jax.random.split(key)
    x = jax.random.normal(kx, (B, L, dim), dtype=jnp.float32)
    params = init_params(kp, dim, num_heads, window_size, mlp_ratio)

    # bf16 matmul inputs (native MXU path on v5e/v6e/v7x), f32 accumulation and f32
    # element-wise math (review item 1).
    fwd = jax.jit(functools.partial(
        swin_block_forward,
        input_resolution=(H, W),
        num_heads=num_heads,
        window_size=window_size,
        shift_size=shift_size,
        matmul_dtype=jnp.bfloat16))

    out = jax.block_until_ready(fwd(x, params))
    assert out.shape == (B, L, dim)
    assert bool(jnp.all(jnp.isfinite(out)))
    print("KERNEL_OK")
</pallas_src>

<mosaic_0001>
module attributes {stable_mosaic.version = 11 : i64} {
  func.func @_window_attn_kernel(%arg0: i32, %arg1: memref<4x16x32xf32, #tpu.memory_space<vmem>>, %arg2: memref<32x96xbf16, #tpu.memory_space<vmem>>, %arg3: memref<1x96xf32, #tpu.memory_space<vmem>>, %arg4: memref<4x16x16xf32, #tpu.memory_space<vmem>>, %arg5: memref<32x32xbf16, #tpu.memory_space<vmem>>, %arg6: memref<1x32xf32, #tpu.memory_space<vmem>>, %arg7: memref<4x16x32xf32, #tpu.memory_space<vmem>>, %arg8: memref<64x32xf32, #tpu.memory_space<vmem>>) attributes {dimension_semantics = [#tpu.dimension_semantics<parallel>], iteration_bounds = array<i64: 2>, scalar_prefetch = 0 : i64, scratch_operands = 1 : i64, tpu.core_type = #tpu.core_type<tc>, window_params = [{transform_indices = @transform_0, window_bounds = array<i64: 4, 16, 32>}, {pipeline_mode = #tpu.pipeline_mode<synchronous>, transform_indices = @transform_1, window_bounds = array<i64: 32, 96>}, {pipeline_mode = #tpu.pipeline_mode<synchronous>, transform_indices = @transform_2, window_bounds = array<i64: 1, 96>}, {pipeline_mode = #tpu.pipeline_mode<synchronous>, transform_indices = @transform_3, window_bounds = array<i64: 4, 16, 16>}, {pipeline_mode = #tpu.pipeline_mode<synchronous>, transform_indices = @transform_4, window_bounds = array<i64: 32, 32>}, {pipeline_mode = #tpu.pipeline_mode<synchronous>, transform_indices = @transform_5, window_bounds = array<i64: 1, 32>}, {transform_indices = @transform_6, window_bounds = array<i64: 4, 16, 32>}]} {
    %c0 = arith.constant 0 : index
    %c0_0 = arith.constant 0 : index
    %c0_1 = arith.constant 0 : index
    %0 = vector.load %arg1[%c0, %c0_0, %c0_1] : memref<4x16x32xf32, #tpu.memory_space<vmem>>, vector<4x16x32xf32>
    %1 = vector.shape_cast %0 : vector<4x16x32xf32> to vector<64x32xf32>
    %2 = arith.truncf %1 : vector<64x32xf32> to vector<64x32xbf16>
    %c0_2 = arith.constant 0 : index
    %c0_3 = arith.constant 0 : index
    %3 = vector.load %arg2[%c0_2, %c0_3] : memref<32x96xbf16, #tpu.memory_space<vmem>>, vector<32x96xbf16>
    %cst = arith.constant dense<0.000000e+00> : vector<64x96xf32>
    %4 = tpu.matmul %2, %3, %cst {dimension_numbers = #tpu.dot_dimension_numbers<[1], [0], [0], [1], [0, 0, 1, 1], [], []>} : vector<64x32xbf16>, vector<32x96xbf16>, vector<64x96xf32> -> vector<64x96xf32>
    %c0_4 = arith.constant 0 : index
    %c0_5 = arith.constant 0 : index
    %5 = vector.load %arg3[%c0_4, %c0_5] : memref<1x96xf32, #tpu.memory_space<vmem>>, vector<1x96xf32>
    %6 = vector.broadcast %5 : vector<1x96xf32> to vector<64x96xf32>
    %7 = arith.addf %4, %6 : vector<64x96xf32>
    %8 = vector.extract_strided_slice %7 {offsets = [0, 0], sizes = [64, 8], strides = [1, 1]} : vector<64x96xf32> to vector<64x8xf32>
    %cst_6 = arith.constant 0.353553385 : f32
    %9 = vector.broadcast %cst_6 : f32 to vector<64x8xf32>
    %10 = arith.mulf %8, %9 : vector<64x8xf32>
    %11 = vector.shape_cast %10 : vector<64x8xf32> to vector<4x16x8xf32>
    %12 = vector.extract_strided_slice %7 {offsets = [0, 32], sizes = [64, 8], strides = [1, 1]} : vector<64x96xf32> to vector<64x8xf32>
    %13 = vector.shape_cast %12 : vector<64x8xf32> to vector<4x16x8xf32>
    %14 = vector.extract_strided_slice %7 {offsets = [0, 64], sizes = [64, 8], strides = [1, 1]} : vector<64x96xf32> to vector<64x8xf32>
    %15 = vector.shape_cast %14 : vector<64x8xf32> to vector<4x16x8xf32>
    %16 = arith.truncf %11 : vector<4x16x8xf32> to vector<4x16x8xbf16>
    %17 = arith.truncf %13 : vector<4x16x8xf32> to vector<4x16x8xbf16>
    "tpu.trace_start"() <{level = 10 : i32, message = "bqd,bkd->bqk"}> : () -> ()
    %cst_7 = arith.constant dense<0.000000e+00> : vector<4x16x16xf32>
    %18 = tpu.matmul %16, %17, %cst_7 {dimension_numbers = #tpu.dot_dimension_numbers<[2], [2], [1], [1], [0, 0, 0, 1, 1, 1], [0], [0]>} : vector<4x16x8xbf16>, vector<4x16x8xbf16>, vector<4x16x16xf32> -> vector<4x16x16xf32>
    "tpu.trace_stop"() : () -> ()
    %c0_8 = arith.constant 0 : index
    %c0_9 = arith.constant 0 : index
    %c0_10 = arith.constant 0 : index
    %19 = vector.load %arg4[%c0_8, %c0_9, %c0_10] : memref<4x16x16xf32, #tpu.memory_space<vmem>>, vector<1x16x16xf32>
    %20 = vector.shape_cast %19 : vector<1x16x16xf32> to vector<16x16xf32>
    %21 = vector.shape_cast %20 : vector<16x16xf32> to vector<1x16x16xf32>
    %22 = vector.broadcast %21 : vector<1x16x16xf32> to vector<4x16x16xf32>
    %23 = arith.addf %18, %22 : vector<4x16x16xf32>
    %cst_11 = arith.constant dense<0xFF800000> : vector<4x16xf32>
    %24 = vector.multi_reduction <maximumf>, %23, %cst_11 [2] : vector<4x16x16xf32> to vector<4x16xf32>
    %25 = vector.shape_cast %24 : vector<4x16xf32> to vector<4x16x1xf32>
    %26 = vector.broadcast %25 : vector<4x16x1xf32> to vector<4x16x16xf32>
    %27 = arith.subf %23, %26 : vector<4x16x16xf32>
    %28 = math.exp %27 : vector<4x16x16xf32>
    %cst_12 = arith.constant dense<0.000000e+00> : vector<4x16xf32>
    %29 = vector.multi_reduction <add>, %28, %cst_12 [2] : vector<4x16x16xf32> to vector<4x16xf32>
    %30 = vector.shape_cast %29 : vector<4x16xf32> to vector<4x16x1xf32>
    %31 = tpu.reciprocal %30 {approx = true} : vector<4x16x1xf32> -> vector<4x16x1xf32>
    %32 = vector.broadcast %31 : vector<4x16x1xf32> to vector<4x16x16xf32>
    %33 = arith.mulf %28, %32 : vector<4x16x16xf32>
    %34 = arith.truncf %33 : vector<4x16x16xf32> to vector<4x16x16xbf16>
    %35 = arith.truncf %15 : vector<4x16x8xf32> to vector<4x16x8xbf16>
    "tpu.trace_start"() <{level = 10 : i32, message = "bqk,bkd->bqd"}> : () -> ()
    %cst_13 = arith.constant dense<0.000000e+00> : vector<4x16x8xf32>
    %36 = tpu.matmul %34, %35, %cst_13 {dimension_numbers = #tpu.dot_dimension_numbers<[2], [1], [1], [2], [0, 0, 0, 1, 1, 2], [0], [0]>} : vector<4x16x16xbf16>, vector<4x16x8xbf16>, vector<4x16x8xf32> -> vector<4x16x8xf32>
    "tpu.trace_stop"() : () -> ()
    %37 = vector.shape_cast %36 : vector<4x16x8xf32> to vector<64x8xf32>
    %c0_14 = arith.constant 0 : index
    %c0_15 = arith.constant 0 : index
    %38 = vector.load %arg8[%c0_14, %c0_15] : memref<64x32xf32, #tpu.memory_space<vmem>>, vector<64x8xf32>
    tpu.vector_store %arg8[%c0_14, %c0_15], %37 {strides = array<i32>} : memref<64x32xf32, #tpu.memory_space<vmem>>, vector<64x8xf32>,
    %39 = vector.extract_strided_slice %7 {offsets = [0, 8], sizes = [64, 8], strides = [1, 1]} : vector<64x96xf32> to vector<64x8xf32>
    %cst_16 = arith.constant 0.353553385 : f32
    %40 = vector.broadcast %cst_16 : f32 to vector<64x8xf32>
    %41 = arith.mulf %39, %40 : vector<64x8xf32>
    %42 = vector.shape_cast %41 : vector<64x8xf32> to vector<4x16x8xf32>
    %43 = vector.extract_strided_slice %7 {offsets = [0, 40], sizes = [64, 8], strides = [1, 1]} : vector<64x96xf32> to vector<64x8xf32>
    %44 = vector.shape_cast %43 : vector<64x8xf32> to vector<4x16x8xf32>
    %45 = vector.extract_strided_slice %7 {offsets = [0, 72], sizes = [64, 8], strides = [1, 1]} : vector<64x96xf32> to vector<64x8xf32>
    %46 = vector.shape_cast %45 : vector<64x8xf32> to vector<4x16x8xf32>
    %47 = arith.truncf %42 : vector<4x16x8xf32> to vector<4x16x8xbf16>
    %48 = arith.truncf %44 : vector<4x16x8xf32> to vector<4x16x8xbf16>
    "tpu.trace_start"() <{level = 10 : i32, message = "bqd,bkd->bqk"}> : () -> ()
    %cst_17 = arith.constant dense<0.000000e+00> : vector<4x16x16xf32>
    %49 = tpu.matmul %47, %48, %cst_17 {dimension_numbers = #tpu.dot_dimension_numbers<[2], [2], [1], [1], [0, 0, 0, 1, 1, 1], [0], [0]>} : vector<4x16x8xbf16>, vector<4x16x8xbf16>, vector<4x16x16xf32> -> vector<4x16x16xf32>
    "tpu.trace_stop"() : () -> ()
    %c1 = arith.constant 1 : index
    %c0_18 = arith.constant 0 : index
    %c0_19 = arith.constant 0 : index
    %50 = vector.load %arg4[%c1, %c0_18, %c0_19] : memref<4x16x16xf32, #tpu.memory_space<vmem>>, vector<1x16x16xf32>
    %51 = vector.shape_cast %50 : vector<1x16x16xf32> to vector<16x16xf32>
    %52 = vector.shape_cast %51 : vector<16x16xf32> to vector<1x16x16xf32>
    %53 = vector.broadcast %52 : vector<1x16x16xf32> to vector<4x16x16xf32>
    %54 = arith.addf %49, %53 : vector<4x16x16xf32>
    %cst_20 = arith.constant dense<0xFF800000> : vector<4x16xf32>
    %55 = vector.multi_reduction <maximumf>, %54, %cst_20 [2] : vector<4x16x16xf32> to vector<4x16xf32>
    %56 = vector.shape_cast %55 : vector<4x16xf32> to vector<4x16x1xf32>
    %57 = vector.broadcast %56 : vector<4x16x1xf32> to vector<4x16x16xf32>
    %58 = arith.subf %54, %57 : vector<4x16x16xf32>
    %59 = math.exp %58 : vector<4x16x16xf32>
    %cst_21 = arith.constant dense<0.000000e+00> : vector<4x16xf32>
    %60 = vector.multi_reduction <add>, %59, %cst_21 [2] : vector<4x16x16xf32> to vector<4x16xf32>
    %61 = vector.shape_cast %60 : vector<4x16xf32> to vector<4x16x1xf32>
    %62 = tpu.reciprocal %61 {approx = true} : vector<4x16x1xf32> -> vector<4x16x1xf32>
    %63 = vector.broadcast %62 : vector<4x16x1xf32> to vector<4x16x16xf32>
    %64 = arith.mulf %59, %63 : vector<4x16x16xf32>
    %65 = arith.truncf %64 : vector<4x16x16xf32> to vector<4x16x16xbf16>
    %66 = arith.truncf %46 : vector<4x16x8xf32> to vector<4x16x8xbf16>
    "tpu.trace_start"() <{level = 10 : i32, message = "bqk,bkd->bqd"}> : () -> ()
    %cst_22 = arith.constant dense<0.000000e+00> : vector<4x16x8xf32>
    %67 = tpu.matmul %65, %66, %cst_22 {dimension_numbers = #tpu.dot_dimension_numbers<[2], [1], [1], [2], [0, 0, 0, 1, 1, 2], [0], [0]>} : vector<4x16x16xbf16>, vector<4x16x8xbf16>, vector<4x16x8xf32> -> vector<4x16x8xf32>
    "tpu.trace_stop"() : () -> ()
    %68 = vector.shape_cast %67 : vector<4x16x8xf32> to vector<64x8xf32>
    %c0_23 = arith.constant 0 : index
    %c8 = arith.constant 8 : index
    %69 = vector.load %arg8[%c0_23, %c8] : memref<64x32xf32, #tpu.memory_space<vmem>>, vector<64x8xf32>
    tpu.vector_store %arg8[%c0_23, %c8], %68 {strides = array<i32>} : memref<64x32xf32, #tpu.memory_space<vmem>>, vector<64x8xf32>,
    %70 = vector.extract_strided_slice %7 {offsets = [0, 16], sizes = [64, 8], strides = [1, 1]} : vector<64x96xf32> to vector<64x8xf32>
    %cst_24 = arith.constant 0.353553385 : f32
    %71 = vector.broadcast %cst_24 : f32 to vector<64x8xf32>
    %72 = arith.mulf %70, %71 : vector<64x8xf32>
    %73 = vector.shape_cast %72 : vector<64x8xf32> to vector<4x16x8xf32>
    %74 = vector.extract_strided_slice %7 {offsets = [0, 48], sizes = [64, 8], strides = [1, 1]} : vector<64x96xf32> to vector<64x8xf32>
    %75 = vector.shape_cast %74 : vector<64x8xf32> to vector<4x16x8xf32>
    %76 = vector.extract_strided_slice %7 {offsets = [0, 80], sizes = [64, 8], strides = [1, 1]} : vector<64x96xf32> to vector<64x8xf32>
    %77 = vector.shape_cast %76 : vector<64x8xf32> to vector<4x16x8xf32>
    %78 = arith.truncf %73 : vector<4x16x8xf32> to vector<4x16x8xbf16>
    %79 = arith.truncf %75 : vector<4x16x8xf32> to vector<4x16x8xbf16>
    "tpu.trace_start"() <{level = 10 : i32, message = "bqd,bkd->bqk"}> : () -> ()
    %cst_25 = arith.constant dense<0.000000e+00> : vector<4x16x16xf32>
    %80 = tpu.matmul %78, %79, %cst_25 {dimension_numbers = #tpu.dot_dimension_numbers<[2], [2], [1], [1], [0, 0, 0, 1, 1, 1], [0], [0]>} : vector<4x16x8xbf16>, vector<4x16x8xbf16>, vector<4x16x16xf32> -> vector<4x16x16xf32>
    "tpu.trace_stop"() : () -> ()
    %c2 = arith.constant 2 : index
    %c0_26 = arith.constant 0 : index
    %c0_27 = arith.constant 0 : index
    %81 = vector.load %arg4[%c2, %c0_26, %c0_27] : memref<4x16x16xf32, #tpu.memory_space<vmem>>, vector<1x16x16xf32>
    %82 = vector.shape_cast %81 : vector<1x16x16xf32> to vector<16x16xf32>
    %83 = vector.shape_cast %82 : vector<16x16xf32> to vector<1x16x16xf32>
    %84 = vector.broadcast %83 : vector<1x16x16xf32> to vector<4x16x16xf32>
    %85 = arith.addf %80, %84 : vector<4x16x16xf32>
    %cst_28 = arith.constant dense<0xFF800000> : vector<4x16xf32>
    %86 = vector.multi_reduction <maximumf>, %85, %cst_28 [2] : vector<4x16x16xf32> to vector<4x16xf32>
    %87 = vector.shape_cast %86 : vector<4x16xf32> to vector<4x16x1xf32>
    %88 = vector.broadcast %87 : vector<4x16x1xf32> to vector<4x16x16xf32>
    %89 = arith.subf %85, %88 : vector<4x16x16xf32>
    %90 = math.exp %89 : vector<4x16x16xf32>
    %cst_29 = arith.constant dense<0.000000e+00> : vector<4x16xf32>
    %91 = vector.multi_reduction <add>, %90, %cst_29 [2] : vector<4x16x16xf32> to vector<4x16xf32>
    %92 = vector.shape_cast %91 : vector<4x16xf32> to vector<4x16x1xf32>
    %93 = tpu.reciprocal %92 {approx = true} : vector<4x16x1xf32> -> vector<4x16x1xf32>
    %94 = vector.broadcast %93 : vector<4x16x1xf32> to vector<4x16x16xf32>
    %95 = arith.mulf %90, %94 : vector<4x16x16xf32>
    %96 = arith.truncf %95 : vector<4x16x16xf32> to vector<4x16x16xbf16>
    %97 = arith.truncf %77 : vector<4x16x8xf32> to vector<4x16x8xbf16>
    "tpu.trace_start"() <{level = 10 : i32, message = "bqk,bkd->bqd"}> : () -> ()
    %cst_30 = arith.constant dense<0.000000e+00> : vector<4x16x8xf32>
    %98 = tpu.matmul %96, %97, %cst_30 {dimension_numbers = #tpu.dot_dimension_numbers<[2], [1], [1], [2], [0, 0, 0, 1, 1, 2], [0], [0]>} : vector<4x16x16xbf16>, vector<4x16x8xbf16>, vector<4x16x8xf32> -> vector<4x16x8xf32>
    "tpu.trace_stop"() : () -> ()
    %99 = vector.shape_cast %98 : vector<4x16x8xf32> to vector<64x8xf32>
    %c0_31 = arith.constant 0 : index
    %c16 = arith.constant 16 : index
    %100 = vector.load %arg8[%c0_31, %c16] : memref<64x32xf32, #tpu.memory_space<vmem>>, vector<64x8xf32>
    tpu.vector_store %arg8[%c0_31, %c16], %99 {strides = array<i32>} : memref<64x32xf32, #tpu.memory_space<vmem>>, vector<64x8xf32>,
    %101 = vector.extract_strided_slice %7 {offsets = [0, 24], sizes = [64, 8], strides = [1, 1]} : vector<64x96xf32> to vector<64x8xf32>
    %cst_32 = arith.constant 0.353553385 : f32
    %102 = vector.broadcast %cst_32 : f32 to vector<64x8xf32>
    %103 = arith.mulf %101, %102 : vector<64x8xf32>
    %104 = vector.shape_cast %103 : vector<64x8xf32> to vector<4x16x8xf32>
    %105 = vector.extract_strided_slice %7 {offsets = [0, 56], sizes = [64, 8], strides = [1, 1]} : vector<64x96xf32> to vector<64x8xf32>
    %106 = vector.shape_cast %105 : vector<64x8xf32> to vector<4x16x8xf32>
    %107 = vector.extract_strided_slice %7 {offsets = [0, 88], sizes = [64, 8], strides = [1, 1]} : vector<64x96xf32> to vector<64x8xf32>
    %108 = vector.shape_cast %107 : vector<64x8xf32> to vector<4x16x8xf32>
    %109 = arith.truncf %104 : vector<4x16x8xf32> to vector<4x16x8xbf16>
    %110 = arith.truncf %106 : vector<4x16x8xf32> to vector<4x16x8xbf16>
    "tpu.trace_start"() <{level = 10 : i32, message = "bqd,bkd->bqk"}> : () -> ()
    %cst_33 = arith.constant dense<0.000000e+00> : vector<4x16x16xf32>
    %111 = tpu.matmul %109, %110, %cst_33 {dimension_numbers = #tpu.dot_dimension_numbers<[2], [2], [1], [1], [0, 0, 0, 1, 1, 1], [0], [0]>} : vector<4x16x8xbf16>, vector<4x16x8xbf16>, vector<4x16x16xf32> -> vector<4x16x16xf32>
    "tpu.trace_stop"() : () -> ()
    %c3 = arith.constant 3 : index
    %c0_34 = arith.constant 0 : index
    %c0_35 = arith.constant 0 : index
    %112 = vector.load %arg4[%c3, %c0_34, %c0_35] : memref<4x16x16xf32, #tpu.memory_space<vmem>>, vector<1x16x16xf32>
    %113 = vector.shape_cast %112 : vector<1x16x16xf32> to vector<16x16xf32>
    %114 = vector.shape_cast %113 : vector<16x16xf32> to vector<1x16x16xf32>
    %115 = vector.broadcast %114 : vector<1x16x16xf32> to vector<4x16x16xf32>
    %116 = arith.addf %111, %115 : vector<4x16x16xf32>
    %cst_36 = arith.constant dense<0xFF800000> : vector<4x16xf32>
    %117 = vector.multi_reduction <maximumf>, %116, %cst_36 [2] : vector<4x16x16xf32> to vector<4x16xf32>
    %118 = vector.shape_cast %117 : vector<4x16xf32> to vector<4x16x1xf32>
    %119 = vector.broadcast %118 : vector<4x16x1xf32> to vector<4x16x16xf32>
    %120 = arith.subf %116, %119 : vector<4x16x16xf32>
    %121 = math.exp %120 : vector<4x16x16xf32>
    %cst_37 = arith.constant dense<0.000000e+00> : vector<4x16xf32>
    %122 = vector.multi_reduction <add>, %121, %cst_37 [2] : vector<4x16x16xf32> to vector<4x16xf32>
    %123 = vector.shape_cast %122 : vector<4x16xf32> to vector<4x16x1xf32>
    %124 = tpu.reciprocal %123 {approx = true} : vector<4x16x1xf32> -> vector<4x16x1xf32>
    %125 = vector.broadcast %124 : vector<4x16x1xf32> to vector<4x16x16xf32>
    %126 = arith.mulf %121, %125 : vector<4x16x16xf32>
    %127 = arith.truncf %126 : vector<4x16x16xf32> to vector<4x16x16xbf16>
    %128 = arith.truncf %108 : vector<4x16x8xf32> to vector<4x16x8xbf16>
    "tpu.trace_start"() <{level = 10 : i32, message = "bqk,bkd->bqd"}> : () -> ()
    %cst_38 = arith.constant dense<0.000000e+00> : vector<4x16x8xf32>
    %129 = tpu.matmul %127, %128, %cst_38 {dimension_numbers = #tpu.dot_dimension_numbers<[2], [1], [1], [2], [0, 0, 0, 1, 1, 2], [0], [0]>} : vector<4x16x16xbf16>, vector<4x16x8xbf16>, vector<4x16x8xf32> -> vector<4x16x8xf32>
    "tpu.trace_stop"() : () -> ()
    %130 = vector.shape_cast %129 : vector<4x16x8xf32> to vector<64x8xf32>
    %c0_39 = arith.constant 0 : index
    %c24 = arith.constant 24 : index
    %131 = vector.load %arg8[%c0_39, %c24] : memref<64x32xf32, #tpu.memory_space<vmem>>, vector<64x8xf32>
    tpu.vector_store %arg8[%c0_39, %c24], %130 {strides = array<i32>} : memref<64x32xf32, #tpu.memory_space<vmem>>, vector<64x8xf32>,
    %c0_40 = arith.constant 0 : index
    %c0_41 = arith.constant 0 : index
    %132 = vector.load %arg8[%c0_40, %c0_41] : memref<64x32xf32, #tpu.memory_space<vmem>>, vector<64x32xf32>
    %133 = arith.truncf %132 : vector<64x32xf32> to vector<64x32xbf16>
    %c0_42 = arith.constant 0 : index
    %c0_43 = arith.constant 0 : index
    %134 = vector.load %arg5[%c0_42, %c0_43] : memref<32x32xbf16, #tpu.memory_space<vmem>>, vector<32x32xbf16>
    %cst_44 = arith.constant dense<0.000000e+00> : vector<64x32xf32>
    %135 = tpu.matmul %133, %134, %cst_44 {dimension_numbers = #tpu.dot_dimension_numbers<[1], [0], [0], [1], [0, 0, 1, 1], [], []>} : vector<64x32xbf16>, vector<32x32xbf16>, vector<64x32xf32> -> vector<64x32xf32>
    %c0_45 = arith.constant 0 : index
    %c0_46 = arith.constant 0 : index
    %136 = vector.load %arg6[%c0_45, %c0_46] : memref<1x32xf32, #tpu.memory_space<vmem>>, vector<1x32xf32>
    %137 = vector.broadcast %136 : vector<1x32xf32> to vector<64x32xf32>
    %138 = arith.addf %135, %137 : vector<64x32xf32>
    %139 = vector.shape_cast %138 : vector<64x32xf32> to vector<4x16x32xf32>
    %c0_47 = arith.constant 0 : index
    %c0_48 = arith.constant 0 : index
    %c0_49 = arith.constant 0 : index
    %140 = vector.load %arg7[%c0_47, %c0_48, %c0_49] : memref<4x16x32xf32, #tpu.memory_space<vmem>>, vector<4x16x32xf32>
    tpu.vector_store %arg7[%c0_47, %c0_48, %c0_49], %139 {strides = array<i32>} : memref<4x16x32xf32, #tpu.memory_space<vmem>>, vector<4x16x32xf32>,
    return
  }
  func.func @transform_0(%arg0: i32) -> (i32, i32, i32) {
    %c0_i32 = arith.constant 0 : i32
    %c0_i32_0 = arith.constant 0 : i32
    %c0_i32_1 = arith.constant 0 : i32
    return %arg0, %c0_i32, %c0_i32_0 : i32, i32, i32
  }
  func.func @transform_1(%arg0: i32) -> (i32, i32) {
    %c0_i32 = arith.constant 0 : i32
    %c0_i32_0 = arith.constant 0 : i32
    %c0_i32_1 = arith.constant 0 : i32
    return %c0_i32, %c0_i32_0 : i32, i32
  }
  func.func @transform_2(%arg0: i32) -> (i32, i32) {
    %c0_i32 = arith.constant 0 : i32
    %c0_i32_0 = arith.constant 0 : i32
    %c0_i32_1 = arith.constant 0 : i32
    return %c0_i32, %c0_i32_0 : i32, i32
  }
  func.func @transform_3(%arg0: i32) -> (i32, i32, i32) {
    %c0_i32 = arith.constant 0 : i32
    %c0_i32_0 = arith.constant 0 : i32
    %c0_i32_1 = arith.constant 0 : i32
    %c0_i32_2 = arith.constant 0 : i32
    return %c0_i32, %c0_i32_0, %c0_i32_1 : i32, i32, i32
  }
  func.func @transform_4(%arg0: i32) -> (i32, i32) {
    %c0_i32 = arith.constant 0 : i32
    %c0_i32_0 = arith.constant 0 : i32
    %c0_i32_1 = arith.constant 0 : i32
    return %c0_i32, %c0_i32_0 : i32, i32
  }
  func.func @transform_5(%arg0: i32) -> (i32, i32) {
    %c0_i32 = arith.constant 0 : i32
    %c0_i32_0 = arith.constant 0 : i32
    %c0_i32_1 = arith.constant 0 : i32
    return %c0_i32, %c0_i32_0 : i32, i32
  }
  func.func @transform_6(%arg0: i32) -> (i32, i32, i32) {
    %c0_i32 = arith.constant 0 : i32
    %c0_i32_0 = arith.constant 0 : i32
    %c0_i32_1 = arith.constant 0 : i32
    return %arg0, %c0_i32, %c0_i32_0 : i32, i32, i32
  }
}

module attributes {stable_mosaic.version = 11 : i64} {
  func.func @_ln_mlp_kernel(%arg0: i32, %arg1: i32, %arg2: memref<64x32xf32, #tpu.memory_space<vmem>>, %arg3: memref<1x32xf32, #tpu.memory_space<vmem>>, %arg4: memref<1x32xf32, #tpu.memory_space<vmem>>, %arg5: memref<1x32xf32, #tpu.memory_space<vmem>>, %arg6: memref<1x32xf32, #tpu.memory_space<vmem>>, %arg7: memref<32x128xbf16, #tpu.memory_space<vmem>>, %arg8: memref<1x128xf32, #tpu.memory_space<vmem>>, %arg9: memref<128x32xbf16, #tpu.memory_space<vmem>>, %arg10: memref<1x32xf32, #tpu.memory_space<vmem>>, %arg11: memref<64x32xf32, #tpu.memory_space<vmem>>, %arg12: memref<64x32xf32, #tpu.memory_space<vmem>>, %arg13: memref<64x32xf32, #tpu.memory_space<vmem>>, %arg14: memref<64x32xf32, #tpu.memory_space<vmem>>) attributes {dimension_semantics = [#tpu.dimension_semantics<parallel>, #tpu.dimension_semantics<arbitrary>], iteration_bounds = array<i64: 2, 1>, scalar_prefetch = 0 : i64, scratch_operands = 3 : i64, tpu.core_type = #tpu.core_type<tc>, window_params = [{transform_indices = @transform_0, window_bounds = array<i64: 64, 32>}, {pipeline_mode = #tpu.pipeline_mode<synchronous>, transform_indices = @transform_1, window_bounds = array<i64: 1, 32>}, {pipeline_mode = #tpu.pipeline_mode<synchronous>, transform_indices = @transform_2, window_bounds = array<i64: 1, 32>}, {pipeline_mode = #tpu.pipeline_mode<synchronous>, transform_indices = @transform_3, window_bounds = array<i64: 1, 32>}, {pipeline_mode = #tpu.pipeline_mode<synchronous>, transform_indices = @transform_4, window_bounds = array<i64: 1, 32>}, {pipeline_mode = #tpu.pipeline_mode<synchronous>, transform_indices = @transform_5, window_bounds = array<i64: 32, 128>}, {pipeline_mode = #tpu.pipeline_mode<synchronous>, transform_indices = @transform_6, window_bounds = array<i64: 1, 128>}, {pipeline_mode = #tpu.pipeline_mode<synchronous>, transform_indices = @transform_7, window_bounds = array<i64: 128, 32>}, {pipeline_mode = #tpu.pipeline_mode<synchronous>, transform_indices = @transform_8, window_bounds = array<i64: 1, 32>}, {transform_indices = @transform_9, window_bounds = array<i64: 64, 32>}]} {
    %c0_i32 = arith.constant 0 : i32
    %0 = arith.cmpi eq, %arg1, %c0_i32 : i32
    %1 = arith.extui %0 : i1 to i32
    %c0_i32_0 = arith.constant 0 : i32
    %2 = arith.cmpi ne, %1, %c0_i32_0 : i32
    scf.if %2 {
      %c0_31 = arith.constant 0 : index
      %c0_32 = arith.constant 0 : index
      %60 = vector.load %arg2[%c0_31, %c0_32] : memref<64x32xf32, #tpu.memory_space<vmem>>, vector<64x32xf32>
      %c0_33 = arith.constant 0 : index
      %c0_34 = arith.constant 0 : index
      %61 = vector.load %arg3[%c0_33, %c0_34] : memref<1x32xf32, #tpu.memory_space<vmem>>, vector<1x32xf32>
      %c0_35 = arith.constant 0 : index
      %c0_36 = arith.constant 0 : index
      %62 = vector.load %arg4[%c0_35, %c0_36] : memref<1x32xf32, #tpu.memory_space<vmem>>, vector<1x32xf32>
      %cst_37 = arith.constant dense<0.000000e+00> : vector<64xf32>
      %63 = vector.multi_reduction <add>, %60, %cst_37 [1] : vector<64x32xf32> to vector<64xf32>
      %64 = vector.shape_cast %63 : vector<64xf32> to vector<64x1xf32>
      %cst_38 = arith.constant 3.200000e+01 : f32
      %65 = vector.broadcast %cst_38 : f32 to vector<64x1xf32>
      %66 = arith.divf %64, %65 : vector<64x1xf32>
      %67 = vector.broadcast %66 : vector<64x1xf32> to vector<64x32xf32>
      %68 = arith.subf %60, %67 : vector<64x32xf32>
      %69 = arith.mulf %68, %68 : vector<64x32xf32>
      %cst_39 = arith.constant dense<0.000000e+00> : vector<64xf32>
      %70 = vector.multi_reduction <add>, %69, %cst_39 [1] : vector<64x32xf32> to vector<64xf32>
      %71 = vector.shape_cast %70 : vector<64xf32> to vector<64x1xf32>
      %cst_40 = arith.constant 3.200000e+01 : f32
      %72 = vector.broadcast %cst_40 : f32 to vector<64x1xf32>
      %73 = arith.divf %71, %72 : vector<64x1xf32>
      %74 = vector.broadcast %66 : vector<64x1xf32> to vector<64x32xf32>
      %75 = arith.subf %60, %74 : vector<64x32xf32>
      %cst_41 = arith.constant 9.99999974E-6 : f32
      %76 = vector.broadcast %cst_41 : f32 to vector<64x1xf32>
      %77 = arith.addf %73, %76 : vector<64x1xf32>
      %78 = math.rsqrt %77 : vector<64x1xf32>
      %79 = vector.broadcast %78 : vector<64x1xf32> to vector<64x32xf32>
      %80 = arith.mulf %75, %79 : vector<64x32xf32>
      %81 = vector.broadcast %61 : vector<1x32xf32> to vector<64x32xf32>
      %82 = arith.mulf %80, %81 : vector<64x32xf32>
      %83 = vector.broadcast %62 : vector<1x32xf32> to vector<64x32xf32>
      %84 = arith.addf %82, %83 : vector<64x32xf32>
      %85 = arith.addf %60, %84 : vector<64x32xf32>
      %c0_42 = arith.constant 0 : index
      %c0_43 = arith.constant 0 : index
      %86 = vector.load %arg12[%c0_42, %c0_43] : memref<64x32xf32, #tpu.memory_space<vmem>>, vector<64x32xf32>
      tpu.vector_store %arg12[%c0_42, %c0_43], %85 {strides = array<i32>} : memref<64x32xf32, #tpu.memory_space<vmem>>, vector<64x32xf32>,
      %c0_44 = arith.constant 0 : index
      %c0_45 = arith.constant 0 : index
      %87 = vector.load %arg5[%c0_44, %c0_45] : memref<1x32xf32, #tpu.memory_space<vmem>>, vector<1x32xf32>
      %c0_46 = arith.constant 0 : index
      %c0_47 = arith.constant 0 : index
      %88 = vector.load %arg6[%c0_46, %c0_47] : memref<1x32xf32, #tpu.memory_space<vmem>>, vector<1x32xf32>
      %cst_48 = arith.constant dense<0.000000e+00> : vector<64xf32>
      %89 = vector.multi_reduction <add>, %85, %cst_48 [1] : vector<64x32xf32> to vector<64xf32>
      %90 = vector.shape_cast %89 : vector<64xf32> to vector<64x1xf32>
      %cst_49 = arith.constant 3.200000e+01 : f32
      %91 = vector.broadcast %cst_49 : f32 to vector<64x1xf32>
      %92 = arith.divf %90, %91 : vector<64x1xf32>
      %93 = vector.broadcast %92 : vector<64x1xf32> to vector<64x32xf32>
      %94 = arith.subf %85, %93 : vector<64x32xf32>
      %95 = arith.mulf %94, %94 : vector<64x32xf32>
      %cst_50 = arith.constant dense<0.000000e+00> : vector<64xf32>
      %96 = vector.multi_reduction <add>, %95, %cst_50 [1] : vector<64x32xf32> to vector<64xf32>
      %97 = vector.shape_cast %96 : vector<64xf32> to vector<64x1xf32>
      %cst_51 = arith.constant 3.200000e+01 : f32
      %98 = vector.broadcast %cst_51 : f32 to vector<64x1xf32>
      %99 = arith.divf %97, %98 : vector<64x1xf32>
      %100 = vector.broadcast %92 : vector<64x1xf32> to vector<64x32xf32>
      %101 = arith.subf %85, %100 : vector<64x32xf32>
      %cst_52 = arith.constant 9.99999974E-6 : f32
      %102 = vector.broadcast %cst_52 : f32 to vector<64x1xf32>
      %103 = arith.addf %99, %102 : vector<64x1xf32>
      %104 = math.rsqrt %103 : vector<64x1xf32>
      %105 = vector.broadcast %104 : vector<64x1xf32> to vector<64x32xf32>
      %106 = arith.mulf %101, %105 : vector<64x32xf32>
      %107 = vector.broadcast %87 : vector<1x32xf32> to vector<64x32xf32>
      %108 = arith.mulf %106, %107 : vector<64x32xf32>
      %109 = vector.broadcast %88 : vector<1x32xf32> to vector<64x32xf32>
      %110 = arith.addf %108, %109 : vector<64x32xf32>
      %c0_53 = arith.constant 0 : index
      %c0_54 = arith.constant 0 : index
      %111 = vector.load %arg13[%c0_53, %c0_54] : memref<64x32xf32, #tpu.memory_space<vmem>>, vector<64x32xf32>
      tpu.vector_store %arg13[%c0_53, %c0_54], %110 {strides = array<i32>} : memref<64x32xf32, #tpu.memory_space<vmem>>, vector<64x32xf32>,
      %cst_55 = arith.constant 0.000000e+00 : f32
      %112 = vector.broadcast %cst_55 : f32 to vector<64x32xf32>
      %c0_56 = arith.constant 0 : index
      %c0_57 = arith.constant 0 : index
      %113 = vector.load %arg14[%c0_56, %c0_57] : memref<64x32xf32, #tpu.memory_space<vmem>>, vector<64x32xf32>
      tpu.vector_store %arg14[%c0_56, %c0_57], %112 {strides = array<i32>} : memref<64x32xf32, #tpu.memory_space<vmem>>, vector<64x32xf32>,
    } else {
    }
    %c0 = arith.constant 0 : index
    %c0_1 = arith.constant 0 : index
    %3 = vector.load %arg13[%c0, %c0_1] : memref<64x32xf32, #tpu.memory_space<vmem>>, vector<64x32xf32>
    %4 = arith.truncf %3 : vector<64x32xf32> to vector<64x32xbf16>
    %c0_2 = arith.constant 0 : index
    %c0_3 = arith.constant 0 : index
    %5 = vector.load %arg7[%c0_2, %c0_3] : memref<32x128xbf16, #tpu.memory_space<vmem>>, vector<32x128xbf16>
    %cst = arith.constant dense<0.000000e+00> : vector<64x128xf32>
    %6 = tpu.matmul %4, %5, %cst {dimension_numbers = #tpu.dot_dimension_numbers<[1], [0], [0], [1], [0, 0, 1, 1], [], []>} : vector<64x32xbf16>, vector<32x128xbf16>, vector<64x128xf32> -> vector<64x128xf32>
    %c0_4 = arith.constant 0 : index
    %c0_5 = arith.constant 0 : index
    %7 = vector.load %arg8[%c0_4, %c0_5] : memref<1x128xf32, #tpu.memory_space<vmem>>, vector<1x128xf32>
    %8 = vector.broadcast %7 : vector<1x128xf32> to vector<64x128xf32>
    %9 = arith.addf %6, %8 : vector<64x128xf32>
    %cst_6 = arith.constant 5.000000e-01 : f32
    %10 = vector.broadcast %cst_6 : f32 to vector<64x128xf32>
    %11 = arith.mulf %10, %9 : vector<64x128xf32>
    %cst_7 = arith.constant 0.707106769 : f32
    %12 = vector.broadcast %cst_7 : f32 to vector<64x128xf32>
    %13 = arith.mulf %9, %12 : vector<64x128xf32>
    %cst_8 = arith.constant 0.000000e+00 : f32
    %14 = vector.broadcast %cst_8 : f32 to vector<64x128xf32>
    %15 = arith.cmpf oge, %13, %14 : vector<64x128xf32>
    %cst_9 = arith.constant 1.000000e+00 : f32
    %cst_10 = arith.constant -1.000000e+00 : f32
    %16 = vector.broadcast %cst_9 : f32 to vector<64x128xf32>
    %17 = vector.broadcast %cst_10 : f32 to vector<64x128xf32>
    %18 = arith.select %15, %16, %17 : vector<64x128xi1>, vector<64x128xf32>
    %19 = math.absf %13 : vector<64x128xf32>
    %cst_11 = arith.constant 0.327591091 : f32
    %20 = vector.broadcast %cst_11 : f32 to vector<64x128xf32>
    %21 = arith.mulf %20, %19 : vector<64x128xf32>
    %cst_12 = arith.constant 1.000000e+00 : f32
    %22 = vector.broadcast %cst_12 : f32 to vector<64x128xf32>
    %23 = arith.addf %22, %21 : vector<64x128xf32>
    %cst_13 = arith.constant 1.000000e+00 : f32
    %24 = vector.broadcast %cst_13 : f32 to vector<64x128xf32>
    %25 = arith.divf %24, %23 : vector<64x128xf32>
    %cst_14 = arith.constant 1.06140542 : f32
    %26 = vector.broadcast %cst_14 : f32 to vector<64x128xf32>
    %27 = arith.mulf %26, %25 : vector<64x128xf32>
    %cst_15 = arith.constant -1.45315206 : f32
    %28 = vector.broadcast %cst_15 : f32 to vector<64x128xf32>
    %29 = arith.addf %27, %28 : vector<64x128xf32>
    %30 = arith.mulf %29, %25 : vector<64x128xf32>
    %cst_16 = arith.constant 1.42141378 : f32
    %31 = vector.broadcast %cst_16 : f32 to vector<64x128xf32>
    %32 = arith.addf %30, %31 : vector<64x128xf32>
    %33 = arith.mulf %32, %25 : vector<64x128xf32>
    %cst_17 = arith.constant -0.284496725 : f32
    %34 = vector.broadcast %cst_17 : f32 to vector<64x128xf32>
    %35 = arith.addf %33, %34 : vector<64x128xf32>
    %36 = arith.mulf %35, %25 : vector<64x128xf32>
    %cst_18 = arith.constant 0.254829586 : f32
    %37 = vector.broadcast %cst_18 : f32 to vector<64x128xf32>
    %38 = arith.addf %36, %37 : vector<64x128xf32>
    %39 = arith.mulf %38, %25 : vector<64x128xf32>
    %cst_19 = arith.constant 0.000000e+00 : f32
    %40 = vector.broadcast %cst_19 : f32 to vector<64x128xf32>
    %41 = arith.subf %40, %19 : vector<64x128xf32>
    %42 = arith.mulf %41, %19 : vector<64x128xf32>
    %43 = math.exp %42 : vector<64x128xf32>
    %44 = arith.mulf %39, %43 : vector<64x128xf32>
    %cst_20 = arith.constant 1.000000e+00 : f32
    %45 = vector.broadcast %cst_20 : f32 to vector<64x128xf32>
    %46 = arith.subf %45, %44 : vector<64x128xf32>
    %47 = arith.mulf %18, %46 : vector<64x128xf32>
    %cst_21 = arith.constant 1.000000e+00 : f32
    %48 = vector.broadcast %cst_21 : f32 to vector<64x128xf32>
    %49 = arith.addf %48, %47 : vector<64x128xf32>
    %50 = arith.mulf %11, %49 : vector<64x128xf32>
    %c0_22 = arith.constant 0 : index
    %c0_23 = arith.constant 0 : index
    %51 = vector.load %arg14[%c0_22, %c0_23] : memref<64x32xf32, #tpu.memory_space<vmem>>, vector<64x32xf32>
    %52 = arith.truncf %50 : vector<64x128xf32> to vector<64x128xbf16>
    %c0_24 = arith.constant 0 : index
    %c0_25 = arith.constant 0 : index
    %53 = vector.load %arg9[%c0_24, %c0_25] : memref<128x32xbf16, #tpu.memory_space<vmem>>, vector<128x32xbf16>
    %cst_26 = arith.constant dense<0.000000e+00> : vector<64x32xf32>
    %54 = tpu.matmul %52, %53, %cst_26 {dimension_numbers = #tpu.dot_dimension_numbers<[1], [0], [0], [1], [0, 0, 1, 1], [], []>} : vector<64x128xbf16>, vector<128x32xbf16>, vector<64x32xf32> -> vector<64x32xf32>
    %55 = arith.addf %51, %54 : vector<64x32xf32>
    %c0_27 = arith.constant 0 : index
    %c0_28 = arith.constant 0 : index
    %56 = vector.load %arg14[%c0_27, %c0_28] : memref<64x32xf32, #tpu.memory_space<vmem>>, vector<64x32xf32>
    tpu.vector_store %arg14[%c0_27, %c0_28], %55 {strides = array<i32>} : memref<64x32xf32, #tpu.memory_space<vmem>>, vector<64x32xf32>,
    %c0_i32_29 = arith.constant 0 : i32
    %57 = arith.cmpi eq, %arg1, %c0_i32_29 : i32
    %58 = arith.extui %57 : i1 to i32
    %c0_i32_30 = arith.constant 0 : i32
    %59 = arith.cmpi ne, %58, %c0_i32_30 : i32
    scf.if %59 {
      %c0_31 = arith.constant 0 : index
      %c0_32 = arith.constant 0 : index
      %60 = vector.load %arg12[%c0_31, %c0_32] : memref<64x32xf32, #tpu.memory_space<vmem>>, vector<64x32xf32>
      %c0_33 = arith.constant 0 : index
      %c0_34 = arith.constant 0 : index
      %61 = vector.load %arg14[%c0_33, %c0_34] : memref<64x32xf32, #tpu.memory_space<vmem>>, vector<64x32xf32>
      %62 = arith.addf %60, %61 : vector<64x32xf32>
      %c0_35 = arith.constant 0 : index
      %c0_36 = arith.constant 0 : index
      %63 = vector.load %arg10[%c0_35, %c0_36] : memref<1x32xf32, #tpu.memory_space<vmem>>, vector<1x32xf32>
      %64 = vector.broadcast %63 : vector<1x32xf32> to vector<64x32xf32>
      %65 = arith.addf %62, %64 : vector<64x32xf32>
      %c0_37 = arith.constant 0 : index
      %c0_38 = arith.constant 0 : index
      %66 = vector.load %arg11[%c0_37, %c0_38] : memref<64x32xf32, #tpu.memory_space<vmem>>, vector<64x32xf32>
      tpu.vector_store %arg11[%c0_37, %c0_38], %65 {strides = array<i32>} : memref<64x32xf32, #tpu.memory_space<vmem>>, vector<64x32xf32>,
    } else {
    }
    return
  }
  func.func @transform_0(%arg0: i32, %arg1: i32) -> (i32, i32) {
    %c0_i32 = arith.constant 0 : i32
    %c0_i32_0 = arith.constant 0 : i32
    return %arg0, %c0_i32 : i32, i32
  }
  func.func @transform_1(%arg0: i32, %arg1: i32) -> (i32, i32) {
    %c0_i32 = arith.constant 0 : i32
    %c0_i32_0 = arith.constant 0 : i32
    %c0_i32_1 = arith.constant 0 : i32
    return %c0_i32, %c0_i32_0 : i32, i32
  }
  func.func @transform_2(%arg0: i32, %arg1: i32) -> (i32, i32) {
    %c0_i32 = arith.constant 0 : i32
    %c0_i32_0 = arith.constant 0 : i32
    %c0_i32_1 = arith.constant 0 : i32
    return %c0_i32, %c0_i32_0 : i32, i32
  }
  func.func @transform_3(%arg0: i32, %arg1: i32) -> (i32, i32) {
    %c0_i32 = arith.constant 0 : i32
    %c0_i32_0 = arith.constant 0 : i32
    %c0_i32_1 = arith.constant 0 : i32
    return %c0_i32, %c0_i32_0 : i32, i32
  }
  func.func @transform_4(%arg0: i32, %arg1: i32) -> (i32, i32) {
    %c0_i32 = arith.constant 0 : i32
    %c0_i32_0 = arith.constant 0 : i32
    %c0_i32_1 = arith.constant 0 : i32
    return %c0_i32, %c0_i32_0 : i32, i32
  }
  func.func @transform_5(%arg0: i32, %arg1: i32) -> (i32, i32) {
    %c0_i32 = arith.constant 0 : i32
    %c0_i32_0 = arith.constant 0 : i32
    return %c0_i32, %arg1 : i32, i32
  }
  func.func @transform_6(%arg0: i32, %arg1: i32) -> (i32, i32) {
    %c0_i32 = arith.constant 0 : i32
    %c0_i32_0 = arith.constant 0 : i32
    return %c0_i32, %arg1 : i32, i32
  }
  func.func @transform_7(%arg0: i32, %arg1: i32) -> (i32, i32) {
    %c0_i32 = arith.constant 0 : i32
    %c0_i32_0 = arith.constant 0 : i32
    return %arg1, %c0_i32 : i32, i32
  }
  func.func @transform_8(%arg0: i32, %arg1: i32) -> (i32, i32) {
    %c0_i32 = arith.constant 0 : i32
    %c0_i32_0 = arith.constant 0 : i32
    %c0_i32_1 = arith.constant 0 : i32
    return %c0_i32, %c0_i32_0 : i32, i32
  }
  func.func @transform_9(%arg0: i32, %arg1: i32) -> (i32, i32) {
    %c0_i32 = arith.constant 0 : i32
    %c0_i32_0 = arith.constant 0 : i32
    return %arg0, %c0_i32 : i32, i32
  }
}

</mosaic_0001>

<bundles_post_ra>
// kernel: swin_block_forward.3
= control target key start
LH: loop header
LB: loop body
LE: loop exit
PB: predicated region body
PF: predicated region fallthrough
CT: control target
= control target key end

     0   :  { %s1623_s30 = smov 0   ;;  %s1625_s10 = smov 0   ;;  %s2059_s0 = inlined_call_operand.vmem [shape: f32[128,32], index: 0, kind: input, shape index: {}, may-alias: {0,9}]   ;;  %s2060_s1 = inlined_call_operand.vmem [shape: f32[1,32], index: 1, kind: input, shape index: {}]   ;;  %s2061_s2 = inlined_call_operand.vmem [shape: f32[1,32], index: 2, kind: input, shape index: {}]   ;;  %s2062_s3 = inlined_call_operand.vmem [shape: f32[1,32], index: 3, kind: input, shape index: {}]   ;;  %s2063_s4 = inlined_call_operand.vmem [shape: f32[1,32], index: 4, kind: input, shape index: {}]   ;;  %s2064_s5 = inlined_call_operand.vmem [shape: bf16[32,128], index: 5, kind: input, shape index: {}]   ;;  %s2065_s6 = inlined_call_operand.vmem [shape: f32[1,128], index: 6, kind: input, shape index: {}]   ;;  %s2066_s7 = inlined_call_operand.vmem [shape: bf16[128,32], index: 7, kind: input, shape index: {}]   ;;  %s2067_s8 = inlined_call_operand.vmem [shape: f32[1,32], index: 8, kind: input, shape index: {}]   ;;  %s2068_s9 = inlined_call_operand.vmem [shape: f32[128,32], index: 9, kind: output, shape index: {}, may-alias: {0,9}]  }
   0x1   :  { %s1627_s11 = smov 0  }
   0x2 LB: > { %s31_s12 = sadd.s32 1, %s1565_s10  ;;  %p1366_p0 = scmp.ge.s32.totalorder %s1569_s11, 1  ;;  %s1569_s11 = sphi %s1627_s11, %s19_s11   ;;  %s1565_s10 = sphi %s1625_s10, %s2070_s10   ;;  %s1561_s30 = sphi %s1623_s30, %s2069_s30  }
   0x3   : > { %p33_p1 = scmp.ge.s32.totalorder %s31_s12, 2  ;;  %p328_p2 = scmp.lt.s32.totalorder %s1569_s11, 3 }
   0x5   : > { %s2072_s12 = smov (%p33_p1, %s31_s12), 0  ;;  %p329_p3 = pnand %p1366_p0, %p328_p2 }
   0x6   : > { %s1367_s13 = sshll.u32 (!%p329_p3), %s1561_s30, 3 }
   0x7   : > { %332 = sbr.rel (%p329_p3) target bundleno = 1131 (0x46b), region = 56  ;;  %p377_p4 = scmp.lt.s32.totalorder (!%p329_p3), %s1367_s13, 15 }
   0xc   : > { %s2074_s13 = smov (!%p377_p4, %s1367_s13), 15  ;;  %vm416_vm0 = vcmask 261120  }
   0xd   : > { %s1368_s14 = sshll.u32 %s2074_s13, 3 }
   0xe   : > { %s380_s17 = scalar_lea.vmem %s2059_s0, %s1368_s14  ;;  %s2028_s20 = scalar_lea.vmem %s2068_s9, %s1368_s14 }
   0xf   : > { %v1649_v0 = vld [vmem:[%s380_s17] sm:$0xff]  ;;  %v1651_v1 = vld [vmem:[%s380_s17 + $0x10] sm:$0xff]  ;;  %v1653_v2 = vld [vmem:[%s380_s17 + $0x8] sm:$0xff] }
  0x10   : > { %v417_v3 = vsel %vm416_vm0, %v1649_v0, 0.0  ;;  %v423_v4 = vsel %vm416_vm0, %v1651_v1, 0.0  ;;  %v1659_v5 = vld [vmem:[%s380_s17 + $0x18] sm:$0xff]  ;;  %v420_v6 = vsel %vm416_vm0, %v1653_v2, 0.0  ;;  %v1665_v8 = vld [vmem:[%s380_s17 + $0x20] sm:$0xff]  ;;  %v1667_v9 = vld [vmem:[%s380_s17 + $0x28] sm:$0xff] }
  0x11   : > { %418 = vadd.xlane.f32.xlu0 %v417_v3  ;;  %424 = vadd.xlane.f32.xlu1 %v423_v4  ;;  %v426_v7 = vsel %vm416_vm0, %v1659_v5, 0.0  ;;  %v429_v10 = vsel %vm416_vm0, %v1665_v8, 0.0  ;;  %v432_v11 = vsel %vm416_vm0, %v1667_v9, 0.0  ;;  %v1673_v12 = vld [vmem:[%s380_s17 + $0x30] sm:$0xff]  ;;  %v1675_v13 = vld [vmem:[%s380_s17 + $0x38] sm:$0xff] }
  0x12   : > { %v435_v14 = vsel %vm416_vm0, %v1673_v12, 0.0  ;;  %v438_v15 = vsel %vm416_vm0, %v1675_v13, 0.0 }
  0x15   : > { %421 = vadd.xlane.f32.xlu0 %v420_v6  ;;  %427 = vadd.xlane.f32.xlu1 %v426_v7 }
  0x19   : > { %430 = vadd.xlane.f32.xlu0 %v429_v10  ;;  %433 = vadd.xlane.f32.xlu1 %v432_v11 }
  0x1d   : > { %436 = vadd.xlane.f32.xlu0 %v435_v14  ;;  %439 = vadd.xlane.f32.xlu1 %v438_v15 }
  0x9a   : > { %v419_v16 = vpop.xlane.xlu0 %418  ;;  %v425_v17 = vpop.xlane.xlu1 %424 }
  0x9b   : > { %v442_v18 = vmul.f32 0.03125, %v419_v16  ;;  %v444_v19 = vmul.f32 0.03125, %v425_v17 }
  0x9d   : > { %v1682_v20 = vsub.f32 %v1649_v0, %v442_v18  ;;  %v1685_v21 = vsub.f32 %v1651_v1, %v444_v19 }
  0x9e   : > { %v422_v22 = vpop.xlane.xlu0 %421  ;;  %v428_v23 = vpop.xlane.xlu1 %427 }
  0x9f   : > { %v443_v24 = vmul.f32 0.03125, %v422_v22  ;;  %v445_v25 = vmul.f32 0.03125, %v428_v23  ;;  %v458_v26 = vmul.f32 %v1682_v20, %v1682_v20  ;;  %v460_v27 = vmul.f32 %v1685_v21, %v1685_v21 }
  0xa1   : > { %v1692_v28 = vsub.f32 %v1653_v2, %v443_v24  ;;  %v1695_v29 = vsub.f32 %v1659_v5, %v445_v25  ;;  %v466_v30 = vsel %vm416_vm0, %v458_v26, 0.0  ;;  %v472_v33 = vsel %vm416_vm0, %v460_v27, 0.0  ;;  %v1371_v26 = vld [vmem:[%s2060_s1] ss:$0 sm:$0xff] }
  0xa2   : > { %467 = vadd.xlane.f32.xlu0 %v466_v30  ;;  %v431_v31 = vpop.xlane.xlu0 %430  ;;  %v434_v32 = vpop.xlane.xlu1 %433 }
  0xa3   : > { %v446_v34 = vmul.f32 0.03125, %v431_v31  ;;  %v447_v35 = vmul.f32 0.03125, %v434_v32  ;;  %v459_v36 = vmul.f32 %v1692_v28, %v1692_v28  ;;  %v461_v37 = vmul.f32 %v1695_v29, %v1695_v29  ;;  %v1372_v31 = vld [vmem:[%s2061_s2] ss:$0 sm:$0xff] }
  0xa5   : > { %v1704_v38 = vsub.f32 %v1665_v8, %v446_v34  ;;  %v1707_v39 = vsub.f32 %v1667_v9, %v447_v35  ;;  %v469_v40 = vsel %vm416_vm0, %v459_v36, 0.0  ;;  %v475_v43 = vsel %vm416_vm0, %v461_v37, 0.0 }
  0xa6   : > { %473 = vadd.xlane.f32.xlu0 %v472_v33  ;;  %470 = vadd.xlane.f32.xlu1 %v469_v40  ;;  %v437_v41 = vpop.xlane.xlu0 %436  ;;  %v440_v42 = vpop.xlane.xlu1 %439 }
  0xa7   : > { %v448_v44 = vmul.f32 0.03125, %v437_v41  ;;  %v449_v45 = vmul.f32 0.03125, %v440_v42  ;;  %v462_v46 = vmul.f32 %v1704_v38, %v1704_v38  ;;  %v463_v47 = vmul.f32 %v1707_v39, %v1707_v39 }
  0xa9   : > { %v1716_v48 = vsub.f32 %v1673_v12, %v448_v44  ;;  %v1719_v49 = vsub.f32 %v1675_v13, %v449_v45  ;;  %v478_v50 = vsel %vm416_vm0, %v462_v46, 0.0  ;;  %v481_v51 = vsel %vm416_vm0, %v463_v47, 0.0 }
  0xaa   : > { %476 = vadd.xlane.f32.xlu1 %v475_v43  ;;  %479 = vadd.xlane.f32.xlu0 %v478_v50 }
  0xab   : > { %v464_v52 = vmul.f32 %v1716_v48, %v1716_v48  ;;  %v465_v53 = vmul.f32 %v1719_v49, %v1719_v49 }
  0xad   : > { %v484_v54 = vsel %vm416_vm0, %v464_v52, 0.0  ;;  %v487_v55 = vsel %vm416_vm0, %v465_v53, 0.0 }
  0xae   : > { %482 = vadd.xlane.f32.xlu1 %v481_v51  ;;  %485 = vadd.xlane.f32.xlu0 %v484_v54 }
  0xb2   : > { %488 = vadd.xlane.f32.xlu1 %v487_v55 }
 0x12b   : > { %v468_v56 = vpop.xlane.xlu0 %467 }
 0x12c   : > { %v490_v57 = vmul.f32 0.03125, %v468_v56 }
 0x12e   : > { %v498_v58 = vadd.f32 1e-05, %v490_v57 }
 0x12f   : > { %v471_v59 = vpop.xlane.xlu1 %470  ;;  %v474_v60 = vpop.xlane.xlu0 %473 }
 0x130   : > { %1483 = vrsqrt.f32 %v498_v58  ;;  %v491_v61 = vmul.f32 0.03125, %v471_v59  ;;  %v492_v62 = vmul.f32 0.03125, %v474_v60 }
 0x132   : > { %v499_v63 = vadd.f32 1e-05, %v491_v61  ;;  %v500_v3 = vadd.f32 1e-05, %v492_v62 }
 0x133   : > { %v477_v4 = vpop.xlane.xlu1 %476  ;;  %v480_v6 = vpop.xlane.xlu0 %479 }
 0x134   : > { %1485 = vrsqrt.f32 %v499_v63  ;;  %v493_v7 = vmul.f32 0.03125, %v477_v4  ;;  %v494_v10 = vmul.f32 0.03125, %v480_v6 }
 0x135   : > { %1487 = vrsqrt.f32 %v500_v3 }
 0x136   : > { %v501_v11 = vadd.f32 1e-05, %v493_v7  ;;  %v502_v14 = vadd.f32 1e-05, %v494_v10 }
 0x137   : > { %v483_v15 = vpop.xlane.xlu1 %482  ;;  %v486_v16 = vpop.xlane.xlu0 %485 }
 0x138   : > { %1489 = vrsqrt.f32 %v501_v11  ;;  %v495_v17 = vmul.f32 0.03125, %v483_v15  ;;  %v496_v18 = vmul.f32 0.03125, %v486_v16 }
 0x139   : > { %1491 = vrsqrt.f32 %v502_v14 }
 0x13a   : > { %v503_v19 = vadd.f32 1e-05, %v495_v17  ;;  %v504_v22 = vadd.f32 1e-05, %v496_v18 }
 0x13b   : > { %v489_v23 = vpop.xlane.xlu1 %488 }
 0x13c   : > { %1493 = vrsqrt.f32 %v503_v19  ;;  %v497_v24 = vmul.f32 0.03125, %v489_v23 }
 0x13d   : > { %v1484_v25 = vpop.eup %1483  ;;  %1495 = vrsqrt.f32 %v504_v22 }
 0x13e   : > { %v505_v27 = vadd.f32 1e-05, %v497_v24  ;;  %v514_v30 = vmul.f32 %v1484_v25, %v1682_v20 }
 0x140   : > { %1497 = vrsqrt.f32 %v505_v27  ;;  %v528_v32 = vmul.f32 %v1371_v26, %v514_v30 }
 0x141   : > { %v1486_v33 = vpop.eup %1485 }
 0x142   : > { %v1488_v34 = vpop.eup %1487  ;;  %v542_v35 = vadd.f32 %v1372_v31, %v528_v32  ;;  %v515_v36 = vmul.f32 %v1486_v33, %v1692_v28 }
 0x143   : > { %v516_v37 = vmul.f32 %v1488_v34, %v1685_v21 }
 0x144   : > { %v550_v40 = vadd.f32 %v542_v35, %v1649_v0  ;;  %v529_v41 = vmul.f32 %v1371_v26, %v515_v36 }
 0x145   : > { %v1490_v42 = vpop.eup %1489  ;;  %v530_v43 = vmul.f32 %v1371_v26, %v516_v37 }
 0x146   : > { %v1492_v44 = vpop.eup %1491  ;;  %v568_v20 = vsel %vm416_vm0, %v550_v40, 0.0  ;;  %558 = vst.msk [vmem:[#allocation2] sm:$0xff] %vm416_vm0, %v550_v40  ;;  %v543_v45 = vadd.f32 %v1372_v31, %v529_v41  ;;  %v517_v46 = vmul.f32 %v1490_v42, %v1695_v29 }
 0x147   : > { %569 = vadd.xlane.f32.xlu0 %v568_v20  ;;  %v544_v47 = vadd.f32 %v1372_v31, %v530_v43  ;;  %v518_v50 = vmul.f32 %v1492_v44, %v1704_v38 }
 0x148   : > { %v551_v28 = vadd.f32 %v543_v45, %v1653_v2  ;;  %v531_v21 = vmul.f32 %v1371_v26, %v517_v46 }
 0x149   : > { %v1494_v51 = vpop.eup %1493  ;;  %v552_v0 = vadd.f32 %v544_v47, %v1651_v1  ;;  %v532_v52 = vmul.f32 %v1371_v26, %v518_v50 }
 0x14a   : > { %v1496_v53 = vpop.eup %1495  ;;  %v571_v54 = vsel %vm416_vm0, %v551_v28, 0.0  ;;  %559 = vst.msk [vmem:[#allocation2 + $0x8] sm:$0xff] %vm416_vm0, %v551_v28  ;;  %v545_v55 = vadd.f32 %v1372_v31, %v531_v21  ;;  %v519_v56 = vmul.f32 %v1494_v51, %v1707_v39 }
 0x14b   : > { %572 = vadd.xlane.f32.xlu1 %v571_v54  ;;  %v574_v29 = vsel %vm416_vm0, %v552_v0, 0.0  ;;  %560 = vst.msk [vmem:[#allocation2 + $0x10] sm:$0xff] %vm416_vm0, %v552_v0  ;;  %v546_v38 = vadd.f32 %v1372_v31, %v532_v52  ;;  %v520_v2 = vmul.f32 %v1496_v53, %v1716_v48  ;;  %v1473_v54 = vld [vmem:[%s2064_s5 + $0x8] sm:$0xff]  }
 0x14c   : > { %575 = vadd.xlane.f32.xlu0 %v574_v29  ;;  %v553_v1 = vadd.f32 %v545_v55, %v1659_v5  ;;  %v533_v57 = vmul.f32 %v1371_v26, %v519_v56  ;;  %1411 = vmatprep.subr.bf16.mxu0 %v1473_v54  ;;  %v1474_v55 = vld [vmem:[%s2064_s5] sm:$0xff]  }
 0x14d   : > { %v1498_v58 = vpop.eup %1497  ;;  %v554_v59 = vadd.f32 %v546_v38, %v1665_v8  ;;  %v534_v60 = vmul.f32 %v1371_v26, %v520_v2  ;;  %1412 = vmatpush3.bf16.msra.mxu0 %v1473_v54 }
 0x14e   : > { %v577_v61 = vsel %vm416_vm0, %v553_v1, 0.0  ;;  %561 = vst.msk [vmem:[#allocation2 + $0x18] sm:$0xff] %vm416_vm0, %v553_v1  ;;  %v547_v39 = vadd.f32 %v1372_v31, %v533_v57  ;;  %v521_v62 = vmul.f32 %v1498_v58, %v1719_v49  ;;  %1413 = vmatprep.subr.bf16.mxu0 %v1474_v55 }
 0x14f   : > { %578 = vadd.xlane.f32.xlu1 %v577_v61  ;;  %v580_v63 = vsel %vm416_vm0, %v554_v59, 0.0  ;;  %562 = vst.msk [vmem:[#allocation2 + $0x20] sm:$0xff] %vm416_vm0, %v554_v59  ;;  %v548_v48 = vadd.f32 %v1372_v31, %v534_v60 }
 0x150   : > { %581 = vadd.xlane.f32.xlu0 %v580_v63  ;;  %v555_v5 = vadd.f32 %v547_v39, %v1667_v9  ;;  %v535_v3 = vmul.f32 %v1371_v26, %v521_v62 }
 0x151   : > { %v556_v8 = vadd.f32 %v548_v48, %v1673_v12  ;;  %1414 = vmatpush3.bf16.msra.mxu0 %v1474_v55 }
 0x152   : > { %v583_v4 = vsel %vm416_vm0, %v555_v5, 0.0  ;;  %563 = vst.msk [vmem:[#allocation2 + $0x28] sm:$0xff] %vm416_vm0, %v555_v5  ;;  %v549_v6 = vadd.f32 %v1372_v31, %v535_v3 }
 0x153   : > { %584 = vadd.xlane.f32.xlu1 %v583_v4  ;;  %v586_v49 = vsel %vm416_vm0, %v556_v8, 0.0  ;;  %564 = vst.msk [vmem:[#allocation2 + $0x30] sm:$0xff] %vm416_vm0, %v556_v8 }
 0x154   : > { %587 = vadd.xlane.f32.xlu0 %v586_v49  ;;  %v557_v7 = vadd.f32 %v549_v6, %v1675_v13 }
 0x156   : > { %v589_v10 = vsel %vm416_vm0, %v557_v7, 0.0  ;;  %565 = vst.msk [vmem:[#allocation2 + $0x38] sm:$0xff] %vm416_vm0, %v557_v7 }
 0x157   : > { %590 = vadd.xlane.f32.xlu1 %v589_v10 }
 0x1d0   : > { %v570_v9 = vpop.xlane.xlu0 %569 }
 0x1d1   : > { %v592_v12 = vmul.f32 0.03125, %v570_v9 }
 0x1d3   : > { %v1767_v11 = vsub.f32 %v550_v40, %v592_v12 }
 0x1d4   : > { %v573_v14 = vpop.xlane.xlu1 %572 }
 0x1d5   : > { %v593_v15 = vmul.f32 0.03125, %v573_v14  ;;  %v576_v16 = vpop.xlane.xlu0 %575  ;;  %v608_v17 = vmul.f32 %v1767_v11, %v1767_v11  ;;  %v1373_v14 = vld [vmem:[%s2062_s3] ss:$0 sm:$0xff] }
 0x1d6   : > { %v594_v18 = vmul.f32 0.03125, %v576_v16 }
 0x1d7   : > { %v1771_v19 = vsub.f32 %v551_v28, %v593_v15  ;;  %v616_v13 = vsel %vm416_vm0, %v608_v17, 0.0  ;;  %v1374_v17 = vld [vmem:[%s2063_s4] ss:$0 sm:$0xff] }
 0x1d8   : > { %v1774_v22 = vsub.f32 %v552_v0, %v594_v18  ;;  %v579_v23 = vpop.xlane.xlu1 %578  ;;  %617 = vadd.xlane.f32.xlu0 %v616_v13 }
 0x1d9   : > { %v595_v24 = vmul.f32 0.03125, %v579_v23  ;;  %v582_v25 = vpop.xlane.xlu0 %581  ;;  %v609_v26 = vmul.f32 %v1771_v19, %v1771_v19 }
 0x1da   : > { %v596_v27 = vmul.f32 0.03125, %v582_v25  ;;  %v610_v30 = vmul.f32 %v1774_v22, %v1774_v22 }
 0x1db   : > { %v1780_v31 = vsub.f32 %v553_v1, %v595_v24  ;;  %v619_v32 = vsel %vm416_vm0, %v609_v26, 0.0 }
 0x1dc   : > { %v1783_v33 = vsub.f32 %v554_v59, %v596_v27  ;;  %620 = vadd.xlane.f32.xlu1 %v619_v32  ;;  %v585_v34 = vpop.xlane.xlu1 %584  ;;  %v622_v35 = vsel %vm416_vm0, %v610_v30, 0.0 }
 0x1dd   : > { %v597_v36 = vmul.f32 0.03125, %v585_v34  ;;  %623 = vadd.xlane.f32.xlu0 %v622_v35  ;;  %v588_v37 = vpop.xlane.xlu0 %587  ;;  %v611_v40 = vmul.f32 %v1780_v31, %v1780_v31 }
 0x1de   : > { %v598_v41 = vmul.f32 0.03125, %v588_v37  ;;  %v612_v42 = vmul.f32 %v1783_v33, %v1783_v33 }
 0x1df   : > { %v1790_v43 = vsub.f32 %v555_v5, %v597_v36  ;;  %v625_v44 = vsel %vm416_vm0, %v611_v40, 0.0 }
 0x1e0   : > { %v1793_v20 = vsub.f32 %v556_v8, %v598_v41  ;;  %626 = vadd.xlane.f32.xlu1 %v625_v44  ;;  %v591_v45 = vpop.xlane.xlu1 %590  ;;  %v628_v46 = vsel %vm416_vm0, %v612_v42, 0.0 }
 0x1e1   : > { %v599_v47 = vmul.f32 0.03125, %v591_v45  ;;  %629 = vadd.xlane.f32.xlu0 %v628_v46  ;;  %v613_v50 = vmul.f32 %v1790_v43, %v1790_v43 }
 0x1e2   : > { %v614_v28 = vmul.f32 %v1793_v20, %v1793_v20 }
 0x1e3   : > { %v1800_v21 = vsub.f32 %v557_v7, %v599_v47  ;;  %v631_v51 = vsel %vm416_vm0, %v613_v50, 0.0 }
 0x1e4   : > { %632 = vadd.xlane.f32.xlu1 %v631_v51  ;;  %v634_v0 = vsel %vm416_vm0, %v614_v28, 0.0 }
 0x1e5   : > { %635 = vadd.xlane.f32.xlu0 %v634_v0  ;;  %v615_v52 = vmul.f32 %v1800_v21, %v1800_v21 }
 0x1e7   : > { %v637_v53 = vsel %vm416_vm0, %v615_v52, 0.0 }
 0x1e8   : > { %638 = vadd.xlane.f32.xlu1 %v637_v53 }
 0x261   : > { %v618_v56 = vpop.xlane.xlu0 %617 }
 0x262   : > { %v640_v29 = vmul.f32 0.03125, %v618_v56 }
 0x264   : > { %v648_v38 = vadd.f32 1e-05, %v640_v29 }
 0x265   : > { %v621_v2 = vpop.xlane.xlu1 %620 }
 0x266   : > { %1499 = vrsqrt.f32 %v648_v38  ;;  %v641_v1 = vmul.f32 0.03125, %v621_v2  ;;  %v624_v57 = vpop.xlane.xlu0 %623 }
 0x267   : > { %v642_v58 = vmul.f32 0.03125, %v624_v57 }
 0x268   : > { %v649_v59 = vadd.f32 1e-05, %v641_v1 }
 0x269   : > { %v650_v60 = vadd.f32 1e-05, %v642_v58  ;;  %v627_v61 = vpop.xlane.xlu1 %626  ;;  %v1475_v58 = vld [vmem:[%s2066_s7 + $0x38] sm:$0xff]  }
 0x26a   : > { %1501 = vrsqrt.f32 %v649_v59  ;;  %v643_v39 = vmul.f32 0.03125, %v627_v61  ;;  %v630_v62 = vpop.xlane.xlu0 %629  ;;  %1423 = vmatprep.subr.bf16.mxu1 %v1475_v58  ;;  %v1476_v59 = vld [vmem:[%s2066_s7 + $0x30] sm:$0xff]   ;;  %v1478_v61 = vld [vmem:[%s2066_s7 + $0x20] sm:$0xff]  }
 0x26b   : > { %1503 = vrsqrt.f32 %v650_v60  ;;  %v644_v63 = vmul.f32 0.03125, %v630_v62  ;;  %1424 = vmatpush3.bf16.msra.mxu1 %v1475_v58  ;;  %v1477_v60 = vld [vmem:[%s2066_s7 + $0x28] sm:$0xff]   ;;  %v1480_v62 = vld [vmem:[%s2066_s7 + $0x10] sm:$0xff]  }
 0x26c   : > { %v651_v48 = vadd.f32 1e-05, %v643_v39  ;;  %1425 = vmatprep.subr.bf16.mxu1 %v1476_v59  ;;  %v1479_v39 = vld [vmem:[%s2066_s7 + $0x18] sm:$0xff]  }
 0x26d   : > { %v652_v5 = vadd.f32 1e-05, %v644_v63  ;;  %v633_v3 = vpop.xlane.xlu1 %632  ;;  %v1481_v63 = vld [vmem:[%s2066_s7 + $0x8] sm:$0xff]  }
 0x26e   : > { %1505 = vrsqrt.f32 %v651_v48  ;;  %v645_v8 = vmul.f32 0.03125, %v633_v3  ;;  %v636_v4 = vpop.xlane.xlu0 %635  ;;  %v1482_v48 = vld [vmem:[%s2066_s7] sm:$0xff]  }
 0x26f   : > { %1507 = vrsqrt.f32 %v652_v5  ;;  %v646_v6 = vmul.f32 0.03125, %v636_v4  ;;  %1426 = vmatpush3.bf16.msra.mxu1 %v1476_v59  ;;  %v1571_v5 = vmov 0.0   ;;  %v1375_v3 = vld [vmem:[%s2065_s6] ss:$0 sm:$0xff] }
 0x270   : > { %v653_v49 = vadd.f32 1e-05, %v645_v8  ;;  %1427 = vmatprep.subr.bf16.mxu1 %v1477_v60  ;;  %710 = vst.msk [vmem:[#allocation4 + $0x10] sm:$0xff] %vm416_vm0, %v1571_v5  ;;  %708 = vst.msk [vmem:[#allocation4] sm:$0xff] %vm416_vm0, %v1571_v5 }
 0x271   : > { %v654_v7 = vadd.f32 1e-05, %v646_v6  ;;  %v639_v10 = vpop.xlane.xlu1 %638  ;;  %709 = vst.msk [vmem:[#allocation4 + $0x8] sm:$0xff] %vm416_vm0, %v1571_v5  ;;  %711 = vst.msk [vmem:[#allocation4 + $0x18] sm:$0xff] %vm416_vm0, %v1571_v5 }
 0x272   : > { %1509 = vrsqrt.f32 %v653_v49  ;;  %v647_v9 = vmul.f32 0.03125, %v639_v10  ;;  %712 = vst.msk [vmem:[#allocation4 + $0x20] sm:$0xff] %vm416_vm0, %v1571_v5  ;;  %713 = vst.msk [vmem:[#allocation4 + $0x28] sm:$0xff] %vm416_vm0, %v1571_v5 }
 0x273   : > { %v1500_v12 = vpop.eup %1499  ;;  %1511 = vrsqrt.f32 %v654_v7  ;;  %1428 = vmatpush3.bf16.msra.mxu1 %v1477_v60  ;;  %714 = vst.msk [vmem:[#allocation4 + $0x30] sm:$0xff] %vm416_vm0, %v1571_v5  ;;  %715 = vst.msk [vmem:[#allocation4 + $0x38] sm:$0xff] %vm416_vm0, %v1571_v5 }
 0x274   : > { %v664_v15 = vmul.f32 %v1500_v12, %v1767_v11  ;;  %v655_v16 = vadd.f32 1e-05, %v647_v9  ;;  %1429 = vmatprep.subr.bf16.mxu1 %v1478_v61 }
 0x276   : > { %v678_v18 = vmul.f32 %v1373_v14, %v664_v15  ;;  %1513 = vrsqrt.f32 %v655_v16 }
 0x277   : > { %v1502_v13 = vpop.eup %1501  ;;  %1430 = vmatpush3.bf16.msra.mxu1 %v1478_v61 }
 0x278   : > { %v1504_v23 = vpop.eup %1503  ;;  %v692_v24 = vadd.f32 %v1374_v17, %v678_v18  ;;  %v665_v25 = vmul.f32 %v1502_v13, %v1771_v19  ;;  %1431 = vmatprep.subr.bf16.mxu1 %v1479_v39 }
 0x279   : > { %v666_v26 = vmul.f32 %v1504_v23, %v1774_v22 }
 0x27a   : > { %700 = vst.msk [vmem:[#allocation3] sm:$0xff] %vm416_vm0, %v692_v24  ;;  %v679_v27 = vmul.f32 %v1373_v14, %v665_v25 }
 0x27b   : > { %v1506_v30 = vpop.eup %1505  ;;  %v680_v32 = vmul.f32 %v1373_v14, %v666_v26  ;;  %1432 = vmatpush3.bf16.msra.mxu1 %v1479_v39 }
 0x27c   : > { %v1508_v11 = vpop.eup %1507  ;;  %v693_v34 = vadd.f32 %v1374_v17, %v679_v27  ;;  %v667_v35 = vmul.f32 %v1506_v30, %v1780_v31  ;;  %1433 = vmatprep.subr.bf16.mxu1 %v1480_v62 }
 0x27d   : > { %v694_v36 = vadd.f32 %v1374_v17, %v680_v32  ;;  %v668_v37 = vmul.f32 %v1508_v11, %v1783_v33 }
 0x27e   : > { %701 = vst.msk [vmem:[#allocation3 + $0x8] sm:$0xff] %vm416_vm0, %v693_v34  ;;  %v681_v40 = vmul.f32 %v1373_v14, %v667_v35 }
 0x27f   : > { %v1510_v41 = vpop.eup %1509  ;;  %702 = vst.msk [vmem:[#allocation3 + $0x10] sm:$0xff] %vm416_vm0, %v694_v36  ;;  %v682_v19 = vmul.f32 %v1373_v14, %v668_v37  ;;  %1434 = vmatpush3.bf16.msra.mxu1 %v1480_v62 }
 0x280   : > { %v1512_v22 = vpop.eup %1511  ;;  %v695_v42 = vadd.f32 %v1374_v17, %v681_v40  ;;  %v669_v44 = vmul.f32 %v1510_v41, %v1790_v43  ;;  %1435 = vmatprep.subr.bf16.mxu1 %v1481_v63 }
 0x281   : > { %v696_v45 = vadd.f32 %v1374_v17, %v682_v19  ;;  %v670_v46 = vmul.f32 %v1512_v22, %v1793_v20  ;;  %v716_v0 = vld [vmem:[#allocation3] sm:$0xff] }
 0x282   : > { %703 = vst.msk [vmem:[#allocation3 + $0x18] sm:$0xff] %vm416_vm0, %v695_v42  ;;  %v683_v31 = vmul.f32 %v1373_v14, %v669_v44 }
 0x283   : > { %v1514_v47 = vpop.eup %1513  ;;  %704 = vst.msk [vmem:[#allocation3 + $0x20] sm:$0xff] %vm416_vm0, %v696_v45  ;;  %v684_v33 = vmul.f32 %v1373_v14, %v670_v46  ;;  %1436 = vmatpush3.bf16.msra.mxu1 %v1481_v63 }
 0x284   : > { %v697_v50 = vadd.f32 %v1374_v17, %v683_v31  ;;  %v671_v28 = vmul.f32 %v1514_v47, %v1800_v21  ;;  %1437 = vmatprep.subr.bf16.mxu1 %v1482_v48 }
 0x285   : > { %v698_v51 = vadd.f32 %v1374_v17, %v684_v33  ;;  %v717_v52 = vld [vmem:[#allocation3 + $0x8] sm:$0xff] }
 0x286   : > { %705 = vst.msk [vmem:[#allocation3 + $0x28] sm:$0xff] %vm416_vm0, %v697_v50  ;;  %v685_v53 = vmul.f32 %v1373_v14, %v671_v28  ;;  %v724_v43 = vpack.c.bf16 %v717_v52, %v716_v0  ;;  %v718_v54 = vld [vmem:[#allocation3 + $0x10] sm:$0xff] }
 0x287   : > { %706 = vst.msk [vmem:[#allocation3 + $0x30] sm:$0xff] %vm416_vm0, %v698_v51  ;;  %1438 = vmatpush3.bf16.msra.mxu1 %v1482_v48 }
 0x288   : > { %v699_v20 = vadd.f32 %v1374_v17, %v685_v53  ;;  %1415 = vmatprep.mubr.msk.bf16.mxu0 %vm416_vm0, %v724_v43 }
 0x289   : > { %v719_v55 = vld [vmem:[#allocation3 + $0x18] sm:$0xff] }
 0x28a   : > { %707 = vst.msk [vmem:[#allocation3 + $0x38] sm:$0xff] %vm416_vm0, %v699_v20  ;;  %v725_v56 = vpack.c.bf16 %v719_v55, %v718_v54  ;;  %v720_v21 = vld [vmem:[#allocation3 + $0x20] sm:$0xff] }
 0x28c   : > { %1416 = vmatmul.mubr.msk.bf16.vlgmr.msra.gmra.mxu0 %vm416_vm0, %v725_v56 }
 0x28d   : > { %v721_v29 = vld [vmem:[#allocation3 + $0x28] sm:$0xff] }
 0x28e   : > { %v726_v38 = vpack.c.bf16 %v721_v29, %v720_v21  ;;  %v722_v2 = vld [vmem:[#allocation3 + $0x30] sm:$0xff] }
 0x290   : > { %1419 = vmatprep.mubr.msk.bf16.mxu0 %vm416_vm0, %v726_v38 }
 0x291   : > { %v723_v1 = vld [vmem:[#allocation3 + $0x38] sm:$0xff] }
 0x292   : > { %v727_v57 = vpack.c.bf16 %v723_v1, %v722_v2 }
 0x294   : > { %1420 = vmatmul.mubr.msk.bf16.gmra.mxu0 %vm416_vm0, %v727_v57 }
 0x34c   : > { %v1417_v8 = vpop.f32.mrf.mxu0 }
 0x34d   : > { %v1874_v4 = vadd.f32 %v1417_v8, %v1375_v3 }
 0x34e   : > { %v798_v6 = vpop.f32.mrf.mxu0 }
 0x34f   : > { %v1877_v49 = vmul.f32 0.70710677, %v1874_v4  ;;  %v1879_v7 = vadd.f32 %v1375_v3, %v798_v6 }
 0x350   : > { %v1418_v10 = vpop.f32.mrf.mxu0 }
 0x351   : > { %v863_v9 = vand.u32 2147483647, %v1877_v49  ;;  %v1883_v12 = vmul.f32 0.70710677, %v1879_v7  ;;  %v1885_v14 = vadd.f32 %v1418_v10, %v1375_v3  ;;  %vm847_vm1 = vcmp.ge.f32.partialorder %v1877_v49, 0.0 }
 0x352   : > { %v801_v15 = vpop.f32.mrf.mxu0 }
 0x353   : > { %v871_v16 = vmul.f32 0.3275911, %v863_v9  ;;  %v861_v17 = vand.u32 2147483647, %v1883_v12  ;;  %v1889_v18 = vmul.f32 0.70710677, %v1885_v14  ;;  %v1891_v13 = vadd.f32 %v1375_v3, %v801_v15 }
 0x354   : > { %v1421_v23 = vpop.f32.mrf.mxu0  ;;  %v975_v19 = vsub.f32 0.0, %v863_v9  ;;  %vm845_vm2 = vcmp.ge.f32.partialorder %v1883_v12, 0.0 }
 0x355   : > { %v879_v24 = vadd.f32 1.0, %v871_v16  ;;  %v869_v25 = vmul.f32 0.3275911, %v861_v17  ;;  %v864_v26 = vand.u32 2147483647, %v1889_v18  ;;  %v1898_v36 = vadd.f32 %v1421_v23, %v1375_v3 }
 0x356   : > { %v1895_v27 = vmul.f32 0.70710677, %v1891_v13  ;;  %v814_v30 = vpop.f32.mrf.mxu0  ;;  %v973_v47 = vsub.f32 0.0, %v861_v17  ;;  %v983_v50 = vmul.f32 %v975_v19, %v863_v9  ;;  %vm848_vm3 = vcmp.ge.f32.partialorder %v1889_v18, 0.0 }
 0x357   : > { %1515 = vrcp.f32 %v879_v24  ;;  %v877_v32 = vadd.f32 1.0, %v869_v25  ;;  %v872_v11 = vmul.f32 0.3275911, %v864_v26  ;;  %v1900_v40 = vadd.f32 %v1375_v3, %v814_v30 }
 0x358   : > { %v1422_v34 = vpop.f32.mrf.mxu0  ;;  %v862_v35 = vand.u32 2147483647, %v1895_v27  ;;  %v1903_v22 = vmul.f32 0.70710677, %v1898_v36  ;;  %v976_v28 = vsub.f32 0.0, %v864_v26  ;;  %v981_v20 = vmul.f32 %v973_v47, %v861_v17 }
 0x359   : > { %1517 = vrcp.f32 %v877_v32  ;;  %v880_v37 = vadd.f32 1.0, %v872_v11  ;;  %v1906_v45 = vmul.f32 0.70710677, %v1900_v40  ;;  %v1908_v46 = vadd.f32 %v1422_v34, %v1375_v3 }
 0x35a   : > { %v870_v41 = vmul.f32 0.3275911, %v862_v35  ;;  %v817_v42 = vpop.f32.mrf.mxu0  ;;  %v867_v31 = vand.u32 2147483647, %v1903_v22  ;;  %v993_v21 = vmul.f32 1.442695, %v983_v50  ;;  %v984_v29 = vmul.f32 %v976_v28, %v864_v26 }
 0x35b   : > { %1519 = vrcp.f32 %v880_v37  ;;  %v1911_v33 = vadd.f32 %v1375_v3, %v817_v42  ;;  %v865_v0 = vand.u32 2147483647, %v1906_v45  ;;  %v1915_v52 = vmul.f32 0.70710677, %v1908_v46 }
 0x35c   : > { %v878_v44 = vadd.f32 1.0, %v870_v41  ;;  %v875_v51 = vmul.f32 0.3275911, %v867_v31  ;;  %v974_v1 = vsub.f32 0.0, %v862_v35  ;;  %v979_v58 = vsub.f32 0.0, %v867_v31 }
 0x35d   : > { %v873_v43 = vmul.f32 0.3275911, %v865_v0  ;;  %v868_v54 = vand.u32 2147483647, %v1915_v52  ;;  %v1919_v55 = vmul.f32 0.70710677, %v1911_v33 }
 0x35e   : > { %1521 = vrcp.f32 %v878_v44  ;;  %v883_v53 = vadd.f32 1.0, %v875_v51  ;;  %v989_v39 = vmul.f32 1.442695, %v981_v20  ;;  %v995_v63 = vmul.f32 1.442695, %v984_v29 }
 0x35f   : > { %v881_v38 = vadd.f32 1.0, %v873_v43  ;;  %v876_v57 = vmul.f32 0.3275911, %v868_v54  ;;  %v866_v59 = vand.u32 2147483647, %v1919_v55  ;;  %v982_v8 = vmul.f32 %v974_v1, %v862_v35 }
 0x360   : > { %1523 = vrcp.f32 %v883_v53  ;;  %v987_v9 = vmul.f32 %v979_v58, %v867_v31  ;;  %v977_v15 = vsub.f32 0.0, %v865_v0  ;;  %v1572_v17 = vmov -1.0  }
 0x361   : > { %1525 = vrcp.f32 %v881_v38  ;;  %v884_v62 = vadd.f32 1.0, %v876_v57  ;;  %v874_v48 = vmul.f32 0.3275911, %v866_v59  ;;  %v1934_v23 = vsel %vm847_vm1, 1.0, %v1572_v17 }
 0x362   : > { %1527 = vpow2.f32 %v993_v21  ;;  %v980_v30 = vsub.f32 0.0, %v868_v54  ;;  %v991_v11 = vmul.f32 1.442695, %v982_v8  ;;  %v1001_v41 = vmul.f32 1.442695, %v987_v9 }
 0x363   : > { %1529 = vrcp.f32 %v884_v62  ;;  %v882_v16 = vadd.f32 1.0, %v874_v48  ;;  %v985_v19 = vmul.f32 %v977_v15, %v865_v0  ;;  %v978_v28 = vsub.f32 0.0, %v866_v59 }
 0x364   : > { %v1921_v56 = vpop.eup %1515  ;;  %1531 = vpow2.f32 %v989_v39  ;;  %v988_v50 = vmul.f32 %v980_v30, %v868_v54  ;;  %v1946_v51 = vsel %vm845_vm2, 1.0, %v1572_v17  ;;  %vm846_vm4 = vcmp.ge.f32.partialorder %v1895_v27, 0.0 }
 0x365   : > { %v903_v2 = vmul.f32 1.0614054, %v1921_v56  ;;  %1533 = vrcp.f32 %v882_v16  ;;  %v997_v29 = vmul.f32 1.442695, %v985_v19  ;;  %v986_v39 = vmul.f32 %v978_v28, %v866_v59 }
 0x366   : > { %v1925_v60 = vpop.eup %1517  ;;  %1535 = vpow2.f32 %v995_v63  ;;  %v831_v27 = vmul.f32 0.5, %v1874_v4  ;;  %vm851_vm5 = vcmp.ge.f32.partialorder %v1903_v22, 0.0  ;;  %vm849_vm6 = vcmp.ge.f32.partialorder %v1906_v45, 0.0 }
 0x367   : > { %v911_v61 = vadd.f32 -1.4531521, %v903_v2  ;;  %v901_v6 = vmul.f32 1.0614054, %v1925_v60  ;;  %1537 = vpow2.f32 %v991_v11  ;;  %vm852_vm7 = vcmp.ge.f32.partialorder %v1915_v52, 0.0 }
 0x368   : > { %v1928_v5 = vpop.eup %1519  ;;  %1539 = vpow2.f32 %v1001_v41  ;;  %v860_v52 = vsel %vm852_vm7, 1.0, %v1572_v17  ;;  %vm850_vm8 = vcmp.ge.f32.partialorder %v1919_v55, 0.0  ;;  %v835_v55 = vmul.f32 0.5, %v1898_v36  ;;  %v1046_v36 = vld [vmem:[#allocation4 + $0x8] sm:$0xff] }
 0x369   : > { %v919_v3 = vmul.f32 %v1921_v56, %v911_v61  ;;  %v904_v10 = vmul.f32 1.0614054, %v1928_v5  ;;  %v909_v24 = vadd.f32 -1.4531521, %v901_v6  ;;  %v1003_v61 = vmul.f32 1.442695, %v988_v50 }
 0x36a   : > { %1541 = vpow2.f32 %v997_v29 }
 0x36b   : > { %v927_v49 = vadd.f32 1.4214138, %v919_v3  ;;  %v1936_v25 = vpop.eup %1521  ;;  %v912_v26 = vadd.f32 -1.4531521, %v904_v10  ;;  %v917_v35 = vmul.f32 %v1925_v60, %v909_v24  ;;  %v856_v10 = vsel %vm848_vm3, 1.0, %v1572_v17 }
 0x36c   : > { %v902_v34 = vmul.f32 1.0614054, %v1936_v25  ;;  %1543 = vpow2.f32 %v1003_v61 }
 0x36d   : > { %v935_v32 = vmul.f32 %v1921_v56, %v927_v49  ;;  %v920_v37 = vmul.f32 %v1928_v5, %v912_v26  ;;  %v925_v31 = vadd.f32 1.4214138, %v917_v35  ;;  %v1948_v53 = vpop.eup %1523  ;;  %v999_v35 = vmul.f32 1.442695, %v986_v39 }
 0x36e   : > { %v910_v44 = vadd.f32 -1.4531521, %v902_v34  ;;  %v907_v54 = vmul.f32 1.0614054, %v1948_v53  ;;  %v1956_v1 = vpop.eup %1525 }
 0x36f   : > { %v943_v42 = vadd.f32 -0.28449672, %v935_v32  ;;  %v928_v47 = vadd.f32 1.4214138, %v920_v37  ;;  %v933_v0 = vmul.f32 %v1925_v60, %v925_v31  ;;  %v1528_v62 = vpop.eup %1527  ;;  %v905_v48 = vmul.f32 1.0614054, %v1956_v1 }
 0x370   : > { %v918_v20 = vmul.f32 %v1936_v25, %v910_v44  ;;  %v915_v58 = vadd.f32 -1.4531521, %v907_v54  ;;  %v1962_v6 = vpop.eup %1529  ;;  %1545 = vpow2.f32 %v999_v35  ;;  %v830_v35 = vmul.f32 0.5, %v1891_v13 }
 0x371   : > { %v951_v43 = vmul.f32 %v1921_v56, %v943_v42  ;;  %v936_v21 = vmul.f32 %v1928_v5, %v928_v47  ;;  %v941_v2 = vadd.f32 -0.28449672, %v933_v0  ;;  %v908_v16 = vmul.f32 1.0614054, %v1962_v6  ;;  %v1532_v24 = vpop.eup %1531 }
 0x372   : > { %v926_v12 = vadd.f32 1.4214138, %v918_v20  ;;  %v923_v15 = vmul.f32 %v1948_v53, %v915_v58  ;;  %v1971_v11 = vpop.eup %1533 }
 0x373   : > { %v959_v38 = vadd.f32 0.2548296, %v951_v43  ;;  %v944_v57 = vadd.f32 -0.28449672, %v936_v21  ;;  %v949_v8 = vmul.f32 %v1925_v60, %v941_v2  ;;  %v916_v34 = vadd.f32 -1.4531521, %v908_v16  ;;  %v1536_v31 = vpop.eup %1535 }
 0x374   : > { %v934_v3 = vmul.f32 %v1936_v25, %v926_v12  ;;  %v931_v30 = vadd.f32 1.4214138, %v923_v15  ;;  %v906_v42 = vmul.f32 1.0614054, %v1971_v11  ;;  %v1538_v12 = vpop.eup %1537 }
 0x375   : > { %v967_v63 = vmul.f32 %v1921_v56, %v959_v38  ;;  %v952_v9 = vmul.f32 %v1928_v5, %v944_v57  ;;  %v913_v56 = vadd.f32 -1.4531521, %v905_v48  ;;  %v957_v32 = vadd.f32 0.2548296, %v949_v8  ;;  %v1540_v48 = vpop.eup %1539 }
 0x376   : > { %v942_v49 = vadd.f32 -0.28449672, %v934_v3  ;;  %v939_v19 = vmul.f32 %v1948_v53, %v931_v30  ;;  %v924_v28 = vmul.f32 %v1962_v6, %v916_v34  ;;  %v914_v21 = vadd.f32 -1.4531521, %v906_v42 }
 0x377   : > { %v1007_v59 = vmul.f32 %v1528_v62, %v967_v63  ;;  %v960_v26 = vadd.f32 0.2548296, %v952_v9  ;;  %v921_v18 = vmul.f32 %v1956_v1, %v913_v56  ;;  %v965_v44 = vmul.f32 %v1925_v60, %v957_v32 }
 0x378   : > { %v950_v37 = vmul.f32 %v1936_v25, %v942_v49  ;;  %v947_v0 = vadd.f32 -0.28449672, %v939_v19  ;;  %v932_v38 = vadd.f32 1.4214138, %v924_v28  ;;  %v922_v57 = vmul.f32 %v1971_v11, %v914_v21 }
 0x379   : > { %v968_v41 = vmul.f32 %v1928_v5, %v960_v26  ;;  %v1015_v47 = vsub.f32 1.0, %v1007_v59  ;;  %v929_v50 = vadd.f32 1.4214138, %v921_v18  ;;  %v1005_v54 = vmul.f32 %v1532_v24, %v965_v44 }
 0x37a   : > { %v958_v43 = vadd.f32 0.2548296, %v950_v37  ;;  %v955_v60 = vmul.f32 %v1948_v53, %v947_v0  ;;  %v940_v62 = vmul.f32 %v1962_v6, %v932_v38  ;;  %v930_v9 = vadd.f32 1.4214138, %v922_v57 }
 0x37b   : > { %v1008_v20 = vmul.f32 %v1536_v31, %v968_v41  ;;  %v937_v29 = vmul.f32 %v1956_v1, %v929_v50  ;;  %v1013_v58 = vsub.f32 1.0, %v1005_v54  ;;  %v1023_v61 = vmul.f32 %v1015_v47, %v1934_v23 }
 0x37c   : > { %v966_v5 = vmul.f32 %v1936_v25, %v958_v43  ;;  %v963_v8 = vadd.f32 0.2548296, %v955_v60  ;;  %v829_v25 = vmul.f32 0.5, %v1879_v7  ;;  %v948_v56 = vadd.f32 -0.28449672, %v940_v62 }
 0x37d   : > { %v1016_v2 = vsub.f32 1.0, %v1008_v20  ;;  %v945_v39 = vadd.f32 -0.28449672, %v937_v29  ;;  %v1021_v15 = vmul.f32 %v1013_v58, %v1946_v51  ;;  %v938_v23 = vmul.f32 %v1971_v11, %v930_v9 }
 0x37e   : > { %v1006_v63 = vmul.f32 %v1538_v12, %v966_v5  ;;  %v971_v24 = vmul.f32 %v1948_v53, %v963_v8  ;;  %v854_v26 = vsel %vm846_vm4, 1.0, %v1572_v17  ;;  %v956_v32 = vmul.f32 %v1962_v6, %v948_v56 }
 0x37f   : > { %v1024_v3 = vmul.f32 %v1016_v2, %v856_v10  ;;  %v953_v59 = vmul.f32 %v1956_v1, %v945_v39  ;;  %v1542_v10 = vpop.eup %1541  ;;  %v1029_v18 = vadd.f32 1.0, %v1021_v15  ;;  %v1031_v7 = vadd.f32 1.0, %v1023_v61 }
 0x380   : > { %v1014_v16 = vsub.f32 1.0, %v1006_v63  ;;  %v832_v34 = vmul.f32 0.5, %v1885_v14  ;;  %v946_v37 = vadd.f32 -0.28449672, %v938_v23  ;;  %v1544_v41 = vpop.eup %1543  ;;  %v1011_v53 = vmul.f32 %v1540_v48, %v971_v24  ;;  %v1045_v24 = vld [vmem:[#allocation4] sm:$0xff] }
 0x381   : > { %v1032_v49 = vadd.f32 1.0, %v1024_v3  ;;  %v961_v30 = vadd.f32 0.2548296, %v953_v59  ;;  %v964_v42 = vadd.f32 0.2548296, %v956_v32  ;;  %v1037_v14 = vmul.f32 %v1029_v18, %v829_v25  ;;  %v1546_v54 = vpop.eup %1545 }
 0x382   : > { %v1022_v51 = vmul.f32 %v1014_v16, %v854_v26  ;;  %v954_v47 = vmul.f32 %v1971_v11, %v946_v37  ;;  %v1039_v13 = vmul.f32 %v1031_v7, %v831_v27  ;;  %v1019_v20 = vsub.f32 1.0, %v1011_v53  ;;  %v1048_v26 = vld [vmem:[#allocation4 + $0x18] sm:$0xff]  ;;  %v1390_v7 = vld [vmem:[%s2067_s8] ss:$0 sm:$0xff] }
 0x383   : > { %v969_v19 = vmul.f32 %v1956_v1, %v961_v30  ;;  %v1040_v31 = vmul.f32 %v1032_v49, %v832_v34  ;;  %v972_v28 = vmul.f32 %v1962_v6, %v964_v42  ;;  %v859_v6 = vsel %vm851_vm5, 1.0, %v1572_v17  ;;  %v1205_v37 = vld [vmem:[#allocation2] sm:$0xff]  ;;  %v1208_v27 = vld [vmem:[#allocation2 + $0x18] sm:$0xff] }
 0x384   : > { %v1030_v44 = vadd.f32 1.0, %v1022_v51  ;;  %v962_v1 = vadd.f32 0.2548296, %v954_v47  ;;  %v857_v5 = vsel %vm849_vm6, 1.0, %v1572_v17  ;;  %v1027_v60 = vmul.f32 %v1019_v20, %v859_v6  ;;  %v1207_v51 = vld [vmem:[#allocation2 + $0x10] sm:$0xff] }
 0x385   : > { %v1009_v50 = vmul.f32 %v1542_v10, %v969_v19  ;;  %v1012_v21 = vmul.f32 %v1544_v41, %v972_v28  ;;  %v1054_v38 = vpack.c.bf16 %v1040_v31, %v1039_v13  ;;  %v858_v61 = vsel %vm850_vm8, 1.0, %v1572_v17  ;;  %v1047_v17 = vld [vmem:[#allocation4 + $0x10] sm:$0xff]  ;;  %v1206_v13 = vld [vmem:[#allocation2 + $0x8] sm:$0xff] }
 0x386   : > { %v1038_v43 = vmul.f32 %v1030_v44, %v830_v35  ;;  %v970_v29 = vmul.f32 %v1971_v11, %v962_v1  ;;  %v1035_v62 = vadd.f32 1.0, %v1027_v60  ;;  %v836_v63 = vmul.f32 0.5, %v1908_v46  ;;  %v1051_v35 = vld [vmem:[#allocation4 + $0x30] sm:$0xff]  ;;  %v1049_v44 = vld [vmem:[#allocation4 + $0x20] sm:$0xff] }
 0x387   : > { %v1017_v0 = vsub.f32 1.0, %v1009_v50  ;;  %v1020_v12 = vsub.f32 1.0, %v1012_v21  ;;  %v833_v48 = vmul.f32 0.5, %v1900_v40  ;;  %v834_v3 = vmul.f32 0.5, %v1911_v33 }
 0x388   : > { %v1053_v4 = vpack.c.bf16 %v1038_v43, %v1037_v14  ;;  %v1010_v2 = vmul.f32 %v1546_v54, %v970_v29  ;;  %v1043_v59 = vmul.f32 %v1035_v62, %v835_v55  ;;  %v1052_v43 = vld [vmem:[#allocation4 + $0x38] sm:$0xff]  ;;  %v1050_v54 = vld [vmem:[#allocation4 + $0x28] sm:$0xff] }
 0x389   : > { %v1025_v45 = vmul.f32 %v1017_v0, %v857_v5  ;;  %v1028_v57 = vmul.f32 %v1020_v12, %v860_v52  ;;  %v1211_v12 = vld [vmem:[#allocation2 + $0x30] sm:$0xff]  ;;  %v1210_v62 = vld [vmem:[#allocation2 + $0x28] sm:$0xff] }
 0x38a   : > { %1439 = vmatprep.mubr.bf16.mxu1 %v1053_v4  ;;  %v1018_v58 = vsub.f32 1.0, %v1010_v2  ;;  %v1209_v2 = vld [vmem:[#allocation2 + $0x20] sm:$0xff] }
 0x38b   : > { %1440 = vmatmul.mubr.bf16.vlgmr.msra.gmra.mxu1 %v1054_v38  ;;  %v1036_v11 = vadd.f32 1.0, %v1028_v57  ;;  %v1033_v39 = vadd.f32 1.0, %v1025_v45 }
 0x38c   : > { %v1026_v22 = vmul.f32 %v1018_v58, %v858_v61 }
 0x38d   : > { %v1044_v9 = vmul.f32 %v1036_v11, %v836_v63  ;;  %v1041_v15 = vmul.f32 %v1033_v39, %v833_v48  ;;  %v1212_v11 = vld [vmem:[#allocation2 + $0x38] sm:$0xff] }
 0x38e   : > { %v1034_v8 = vadd.f32 1.0, %v1026_v22 }
 0x38f   : > { %v1056_v16 = vpack.c.bf16 %v1044_v9, %v1043_v59 }
 0x390   : > { %v1042_v25 = vmul.f32 %v1034_v8, %v834_v3 }
 0x392   : > { %v1055_v56 = vpack.c.bf16 %v1042_v25, %v1041_v15 }
 0x394   : > { %1443 = vmatprep.mubr.bf16.mxu1 %v1055_v56 }
 0x395   : > { %1444 = vmatmul.mubr.bf16.gmra.mxu1 %v1056_v16 }
 0x44b   : > { %v1441_v49 = vpop.f32.mrf.mxu1 }
 0x44c   : > { %v1188_v23 = vadd.f32 %v1441_v49, %v1047_v17 }
 0x44d   : > { %v1155_v46 = vpop.f32.mrf.mxu1 }
 0x44e   : > { %1196 = vst.msk [vmem:[#allocation4 + $0x10] sm:$0xff] %vm416_vm0, %v1188_v23  ;;  %v1186_v40 = vadd.f32 %v1155_v46, %v1045_v24 }
 0x44f   : > { %v1442_v33 = vpop.f32.mrf.mxu1 }
 0x450   : > { %1194 = vst.msk [vmem:[#allocation4] sm:$0xff] %vm416_vm0, %v1186_v40  ;;  %v1189_v10 = vadd.f32 %v1442_v33, %v1048_v26 }
 0x451   : > { %v1158_v30 = vpop.f32.mrf.mxu1 }
 0x452   : > { %1197 = vst.msk [vmem:[#allocation4 + $0x18] sm:$0xff] %vm416_vm0, %v1189_v10  ;;  %v1187_v32 = vadd.f32 %v1158_v30, %v1046_v36 }
 0x454   : > { %1195 = vst.msk [vmem:[#allocation4 + $0x8] sm:$0xff] %vm416_vm0, %v1187_v32 }
 0x455   : > { %v1215_v18 = vld [vmem:[#allocation4 + $0x10] sm:$0xff]  ;;  %v1445_v42 = vpop.f32.mrf.mxu1 }
 0x456   : > { %v1223_v34 = vadd.f32 %v1215_v18, %v1207_v51  ;;  %v1192_v47 = vadd.f32 %v1445_v42, %v1051_v35 }
 0x457   : > { %v1213_v41 = vld [vmem:[#allocation4] sm:$0xff]  ;;  %v1171_v14 = vpop.f32.mrf.mxu1 }
 0x458   : > { %v1238_v53 = vadd.f32 %v1390_v7, %v1223_v34  ;;  %v1221_v19 = vadd.f32 %v1213_v41, %v1205_v37  ;;  %1200 = vst.msk [vmem:[#allocation4 + $0x30] sm:$0xff] %vm416_vm0, %v1192_v47  ;;  %v1190_v20 = vadd.f32 %v1171_v14, %v1049_v44 }
 0x459   : > { %v1216_v31 = vld [vmem:[#allocation4 + $0x18] sm:$0xff]  ;;  %v1446_v4 = vpop.f32.mrf.mxu1 }
 0x45a   : > { %1246 = vst.msk [vmem:[%s2028_s20 + $0x10] sm:$0xff] %vm416_vm0, %v1238_v53  ;;  %v1236_v50 = vadd.f32 %v1390_v7, %v1221_v19  ;;  %v1224_v28 = vadd.f32 %v1216_v31, %v1208_v27  ;;  %1198 = vst.msk [vmem:[#allocation4 + $0x20] sm:$0xff] %vm416_vm0, %v1190_v20  ;;  %v1193_v29 = vadd.f32 %v1446_v4, %v1052_v43 }
 0x45b   : > { %v1214_v1 = vld [vmem:[#allocation4 + $0x8] sm:$0xff]  ;;  %v1174_v6 = vpop.f32.mrf.mxu1 }
 0x45c   : > { %1244 = vst.msk [vmem:[%s2028_s20] sm:$0xff] %vm416_vm0, %v1236_v50  ;;  %v1239_v0 = vadd.f32 %v1390_v7, %v1224_v28  ;;  %v1222_v21 = vadd.f32 %v1214_v1, %v1206_v13  ;;  %1201 = vst.msk [vmem:[#allocation4 + $0x38] sm:$0xff] %vm416_vm0, %v1193_v29  ;;  %v1191_v5 = vadd.f32 %v1174_v6, %v1050_v54 }
 0x45e   : > { %1247 = vst.msk [vmem:[%s2028_s20 + $0x18] sm:$0xff] %vm416_vm0, %v1239_v0  ;;  %v1237_v38 = vadd.f32 %v1390_v7, %v1222_v21  ;;  %1199 = vst.msk [vmem:[#allocation4 + $0x28] sm:$0xff] %vm416_vm0, %v1191_v5 }
 0x45f   : > { %v1219_v45 = vld [vmem:[#allocation4 + $0x30] sm:$0xff] }
 0x460   : > { %1245 = vst.msk [vmem:[%s2028_s20 + $0x8] sm:$0xff] %vm416_vm0, %v1237_v38  ;;  %v1227_v52 = vadd.f32 %v1219_v45, %v1211_v12 }
 0x461   : > { %v1217_v60 = vld [vmem:[#allocation4 + $0x20] sm:$0xff] }
 0x462   : > { %v1242_v57 = vadd.f32 %v1390_v7, %v1227_v52  ;;  %v1225_v58 = vadd.f32 %v1217_v60, %v1209_v2 }
 0x463   : > { %v1220_v61 = vld [vmem:[#allocation4 + $0x38] sm:$0xff] }
 0x464   : > { %1250 = vst.msk [vmem:[%s2028_s20 + $0x30] sm:$0xff] %vm416_vm0, %v1242_v57  ;;  %v1240_v39 = vadd.f32 %v1390_v7, %v1225_v58  ;;  %v1228_v22 = vadd.f32 %v1220_v61, %v1212_v11 }
 0x465   : > { %v1218_v63 = vld [vmem:[#allocation4 + $0x28] sm:$0xff] }
 0x466   : > { %1248 = vst.msk [vmem:[%s2028_s20 + $0x20] sm:$0xff] %vm416_vm0, %v1240_v39  ;;  %v1243_v48 = vadd.f32 %v1390_v7, %v1228_v22  ;;  %v1226_v3 = vadd.f32 %v1218_v63, %v1210_v62 }
 0x468   : > { %1251 = vst.msk [vmem:[%s2028_s20 + $0x38] sm:$0xff] %vm416_vm0, %v1243_v48  ;;  %v1241_v8 = vadd.f32 %v1390_v7, %v1226_v3 }
 0x46a   : > { %1249 = vst.msk [vmem:[%s2028_s20 + $0x28] sm:$0xff] %vm416_vm0, %v1241_v8 }
 0x46b PF: > { %s19_s11 = sadd.s32 1, %s1569_s11   ;;  %s2069_s30 = smov %s1565_s10 }
 0x46c   : > { %p16_p5 = scmp.ge.s32.totalorder %s19_s11, 4   ;;  %s2070_s10 = smov %s2072_s12 }
 0x46e   :  { %18 = sbr.rel (!%p16_p5) target bundleno = 2 (0x2), region = 103 }

// kernel: swin_block_forward.2
= control target key start
LH: loop header
LB: loop body
LE: loop exit
PB: predicated region body
PF: predicated region fallthrough
CT: control target
= control target key end

     0   :  { %s3226_s21 = smov 0   ;;  %s3748_s0 = inlined_call_operand.vmem [shape: f32[8,16,32], index: 0, kind: input, shape index: {}]   ;;  %s3749_s1 = inlined_call_operand.vmem [shape: bf16[32,96], index: 1, kind: input, shape index: {}]   ;;  %s3750_s2 = inlined_call_operand.vmem [shape: f32[1,96], index: 2, kind: input, shape index: {}]   ;;  %s3751_s3 = inlined_call_operand.vmem [shape: f32[4,16,16], index: 3, kind: input, shape index: {}]   ;;  %s3752_s4 = inlined_call_operand.vmem [shape: bf16[32,32], index: 4, kind: input, shape index: {}]   ;;  %s3753_s5 = inlined_call_operand.vmem [shape: f32[1,32], index: 5, kind: input, shape index: {}]   ;;  %s3754_s6 = inlined_call_operand.vmem [shape: f32[8,16,32], index: 6, kind: output, shape index: {}]  }
   0x1 LB: > { %s2648_s22 = sadd.s32 4294967295, %s3173_s21   ;;  %p2652_p0 = scmp.ge.s32.totalorder %s3173_s21, 1  ;;  %s3173_s21 = sphi %s3226_s21, %s16_s21  }
   0x2   : > { %p214_p1 = scmp.lt.s32.totalorder %s3173_s21, 3 }
   0x4   : > { %p215_p2 = pnand %p2652_p0, %p214_p1 }
   0x5   : > { %s2653_s25 = sshll.u32 (!%p215_p2), %s2648_s22, 2  ;;  %s3177_s10 = smov (!%p215_p2), 96  }
   0x6   : > { %218 = sbr.rel (%p215_p2) target bundleno = 3042 (0xbe2), region = 44  ;;  %p247_p3 = scmp.lt.s32.totalorder (!%p215_p2), %s2653_s25, 7 }
   0x7   : > { %s3178_s15 = smov (!%p215_p2), 64   ;;  %s3179_s16 = smov (!%p215_p2), 88  }
   0x8   : > { %s3180_s17 = smov (!%p215_p2), 120   ;;  %s3181_s23 = smov (!%p215_p2), 56  }
   0x9   : > { %s3182_s24 = smov (!%p215_p2), 80   ;;  %s3183_s26 = smov (!%p215_p2), 112  }
   0xa   : > { %s3184_s8 = smov (!%p215_p2), 48   ;;  %s3185_s9 = smov (!%p215_p2), 72  }
   0xb   : > { %v3035_v0 = vld [vmem:[%s3749_s1 + $0x8] sm:$0xff]   ;;  %v3036_v1 = vld [vmem:[%s3749_s1] sm:$0xff]   ;;  %s3756_s25 = smov (!%p247_p3, %s2653_s25), 7  ;;  %vm296_vm0 = vcmask 261120   ;;  %v3175_v14 = vmov 0.0   ;;  %vm3176_vm1 = vmmov 0  }
   0xc   : > { %2791 = vmatprep.subr.bf16.mxu0 %v3035_v0  ;;  %3007 = vmatprep.subr.bf16.mxu1 %v3035_v0  ;;  %s2713_s28 = sshll.u32 %s3756_s25, 4  ;;  %v2659_v16 = vld [vmem:[%s3750_s2] ss:$0 sm:$0xff]  ;;  %vm395_vm2 = vcmask 64512   ;;  %vm593_vm3 = vcmask 130048   ;;  %v391_v62 = vld [vmem:[%s3751_s3 + $0x8] sm:$0xff] }
   0xd   : > { %2792 = vmatpush3.bf16.msra.mxu0 %v3035_v0  ;;  %3009 = vmatpush3.bf16.msra.mxu1 %v3035_v0  ;;  %s251_s7 = scalar_lea.vmem %s3748_s0, %s2713_s28  ;;  %v390_v56 = vld [vmem:[%s3751_s3] sm:$0xff]  ;;  %vm1405_vm4 = vcmask 130112   ;;  %vm1933_vm5 = vcmask 195712   ;;  %s3190_s20 = smov 24   ;;  %vm2461_vm6 = vcmask 261312  }
   0xe   : > { %2793 = vmatprep.subr.bf16.mxu0 %v3036_v1  ;;  %3008 = vmatprep.subr.bf16.mxu1 %v3036_v1  ;;  %v261_v2 = vld [vmem:[%s251_s7] sm:$0xff]  ;;  %v262_v3 = vld [vmem:[%s251_s7 + $0x8] sm:$0xff]  ;;  %v263_v7 = vld [vmem:[%s251_s7 + $0x10] sm:$0xff]  ;;  %s258_s30 = scalar_lea.vmem %s3754_s6, %s2713_s28 }
   0xf   : > { %v265_v4 = vld [vmem:[%s251_s7 + $0x20] sm:$0xff]  ;;  %v269_v5 = vpack.c.bf16 %v262_v3, %v261_v2  ;;  %v266_v6 = vld [vmem:[%s251_s7 + $0x28] sm:$0xff]  ;;  %v264_v8 = vld [vmem:[%s251_s7 + $0x18] sm:$0xff] }
  0x10   : > { %v271_v9 = vpack.c.bf16 %v266_v6, %v265_v4  ;;  %v270_v10 = vpack.c.bf16 %v264_v8, %v263_v7  ;;  %v267_v11 = vld [vmem:[%s251_s7 + $0x30] sm:$0xff]  ;;  %v268_v12 = vld [vmem:[%s251_s7 + $0x38] sm:$0xff] }
  0x11   : > { %2794 = vmatpush3.bf16.msra.mxu0 %v3036_v1  ;;  %3010 = vmatpush3.bf16.msra.mxu1 %v3036_v1  ;;  %v272_v13 = vpack.c.bf16 %v268_v12, %v267_v11 }
  0x12   : > { %2795 = vmatprep.mubr.msk.bf16.mxu0 %vm296_vm0, %v269_v5  ;;  %2799 = vmatprep.mubr.msk.bf16.mxu1 %vm296_vm0, %v271_v9 }
  0x13   : > { %2803 = vmatprep.subr.bf16.mxu1 %v3175_v14  ;;  %2815 = vmatprep.subr.bf16.mxu0 %v3175_v14 }
  0x14   : > { %2796 = vmatmul.mubr.msk.bf16.vlgmr.msra.gmra.mxu0 %vm296_vm0, %v270_v10  ;;  %2800 = vmatmul.mubr.msk.bf16.vlgmr.msra.gmra.mxu1 %vm296_vm0, %v272_v13 }
  0x15   : > { %2805 = vmatprep.mubr.msk.bf16.mxu1 %vm3176_vm1, %v3175_v14  ;;  %2817 = vmatprep.mubr.msk.bf16.mxu0 %vm3176_vm1, %v3175_v14 }
  0xd4   : > { %v2797_v15 = vpop.f32.mrf.mxu0  ;;  %v2801_v17 = vpop.f32.mrf.mxu1 }
  0xd5   : > { %v368_v18 = vadd.f32 %v2801_v17, %v2659_v16  ;;  %v352_v20 = vadd.f32 %v2797_v15, %v2659_v16 }
  0xd6   : > { %v343_v19 = vpop.f32.mrf.mxu0  ;;  %v359_v21 = vpop.f32.mrf.mxu1 }
  0xd7   : > { %v344_v23 = vadd.f32 %v2659_v16, %v343_v19  ;;  %v380_v26 = vmul.f32 0.35355338, %v368_v18  ;;  %v360_v27 = vadd.f32 %v2659_v16, %v359_v21  ;;  %v376_v30 = vmul.f32 0.35355338, %v352_v20 }
  0xd8   : > { %v2798_v22 = vpop.f32.mrf.mxu0  ;;  %v2802_v25 = vpop.f32.mrf.mxu1 }
  0xd9   : > { %v355_v24 = vadd.f32 %v2798_v22, %v2659_v16  ;;  %v371_v28 = vadd.f32 %v2802_v25, %v2659_v16  ;;  %v378_v34 = vmul.f32 0.35355338, %v360_v27  ;;  %v374_v37 = vmul.f32 0.35355338, %v344_v23 }
  0xda   : > { %v346_v29 = vpop.f32.mrf.mxu0  ;;  %v362_v33 = vpop.f32.mrf.mxu1 }
  0xdb   : > { %v377_v31 = vmul.f32 0.35355338, %v355_v24  ;;  %v347_v32 = vadd.f32 %v2659_v16, %v346_v29  ;;  %v381_v35 = vmul.f32 0.35355338, %v371_v28  ;;  %v363_v36 = vadd.f32 %v2659_v16, %v362_v33 }
  0xdc   : > { %v3275_v46 = vpack.c.bf16 %v355_v24, %v352_v20  ;;  %v3277_v47 = vpack.c.bf16 %v371_v28, %v368_v18 }
  0xdd   : > { %v3261_v38 = vpack.c.bf16 %v377_v31, %v376_v30  ;;  %v375_v39 = vmul.f32 0.35355338, %v347_v32  ;;  %v3263_v40 = vpack.c.bf16 %v347_v32, %v344_v23  ;;  %v3265_v41 = vpack.c.bf16 %v381_v35, %v380_v26 }
  0xde   : > { %v379_v42 = vmul.f32 0.35355338, %v363_v36  ;;  %v3267_v43 = vpack.c.bf16 %v363_v36, %v360_v27 }
  0xdf   : > { %v3269_v44 = vpack.c.bf16 %v375_v39, %v374_v37  ;;  %393 = vrot.lane.b32.xlu0 %v3263_v40, %s3177_s10 }
  0xe0   : > { %v3272_v45 = vpack.c.bf16 %v379_v42, %v378_v34  ;;  %494 = vrot.lane.b32.xlu1 %v3267_v43, %s3177_s10 }
  0xe3   : > { %444 = vrot.lane.b32.xlu0 %v3275_v46, %s3177_s10 }
  0xe4   : > { %544 = vrot.lane.b32.xlu1 %v3277_v47, %s3177_s10  ;;  %s3186_s10 = smov 104  }
 0x151   : > { %v394_v48 = vpop.permute.xlu0 %393 }
 0x152   : > { %v495_v49 = vpop.permute.xlu1 %494  ;;  %v400_v50 = vsel %vm395_vm2, %v394_v48, 0 }
 0x153   : > { %v500_v51 = vsel %vm395_vm2, %v495_v49, 0  ;;  %2804 = vmatpush3.bf16.xpose.msra.mxu1 %v400_v50 }
 0x154   : > { %2816 = vmatpush3.bf16.xpose.msra.mxu0 %v500_v51  ;;  %2809 = vmatprep.subr.bf16.mxu1 %v3175_v14 }
 0x155   : > { %2827 = vmatprep.subr.bf16.mxu0 %v3175_v14  ;;  %v445_v52 = vpop.permute.xlu0 %444 }
 0x156   : > { %v450_v53 = vsel %vm395_vm2, %v445_v52, 0  ;;  %v545_v54 = vpop.permute.xlu1 %544 }
 0x157   : > { %v550_v55 = vsel %vm395_vm2, %v545_v54, 0 }
 0x15a   : > { %2806 = vmatmul.mubr.msk.bf16.vlgmr.msra.gmra.mxu1 %vm395_vm2, %v3269_v44 }
 0x15b   : > { %2818 = vmatmul.mubr.msk.bf16.vlgmr.msra.gmra.mxu0 %vm395_vm2, %v3272_v45  ;;  %2810 = vmatpush3.bf16.xpose.msra.mxu1 %v450_v53 }
 0x15c   : > { %2811 = vmatprep.mubr.msk.bf16.mxu1 %vm3176_vm1, %v3175_v14  ;;  %2821 = vmatprep.subr.bf16.mxu1 %v3175_v14 }
 0x15d   : > { %2829 = vmatprep.mubr.msk.bf16.mxu0 %vm3176_vm1, %v3175_v14 }
 0x162   : > { %2812 = vmatmul.mubr.msk.bf16.vlgmr.msra.gmra.mxu1 %vm395_vm2, %v3261_v38 }
 0x163   : > { %2822 = vmatpush3.bf16.xpose.msra.mxu1 %v550_v55  ;;  %2823 = vmatprep.mubr.msk.bf16.mxu1 %vm3176_vm1, %v3175_v14 }
 0x164   : > { %2833 = vmatprep.subr.bf16.mxu1 %v3175_v14 }
 0x16a   : > { %2824 = vmatmul.mubr.msk.bf16.vlgmr.msra.gmra.mxu1 %vm395_vm2, %v3265_v41 }
 0x16b   : > { %2835 = vmatprep.mubr.msk.bf16.mxu1 %vm3176_vm1, %v3175_v14 }
 0x21a   : > { %v436_v57 = vpop.f32.mrf.mxu1 }
 0x21b   : > { %v437_v58 = vadd.f32 %v436_v57, %v390_v56  ;;  %v536_v59 = vpop.f32.mrf.mxu0 }
 0x21c   : > { %v537_v60 = vadd.f32 %v536_v59, %v390_v56  ;;  %v2807_v61 = vpop.f32.mrf.mxu1 }
 0x21d   : > { %v2819_v63 = vpop.f32.mrf.mxu0  ;;  %v594_v0 = vsel %vm593_vm3, %v437_v58, -inf }
 0x21e   : > { %v606_v1 = vsel %vm593_vm3, %v537_v60, -inf  ;;  %595 = vmax.xlane.f32.xlu0 %v594_v0  ;;  %v439_v2 = vpop.f32.mrf.mxu1 }
 0x21f   : > { %607 = vmax.xlane.f32.xlu1 %v606_v1  ;;  %v539_v3 = vpop.f32.mrf.mxu0  ;;  %v440_v4 = vadd.f32 %v439_v2, %v391_v62 }
 0x220   : > { %v2808_v5 = vpop.f32.mrf.mxu1  ;;  %v540_v16 = vadd.f32 %v539_v3, %v391_v62 }
 0x221   : > { %v2820_v6 = vpop.f32.mrf.mxu0  ;;  %v597_v7 = vsel %vm593_vm3, %v440_v4, -inf }
 0x222   : > { %v486_v8 = vpop.f32.mrf.mxu1  ;;  %v609_v21 = vsel %vm593_vm3, %v540_v16, -inf }
 0x223   : > { %598 = vmax.xlane.f32.xlu1 %v597_v7  ;;  %v487_v9 = vadd.f32 %v486_v8, %v390_v56 }
 0x224   : > { %v2813_v10 = vpop.f32.mrf.mxu1 }
 0x225   : > { %v600_v11 = vsel %vm593_vm3, %v487_v9, -inf }
 0x226   : > { %601 = vmax.xlane.f32.xlu0 %v600_v11  ;;  %v489_v12 = vpop.f32.mrf.mxu1 }
 0x227   : > { %v490_v13 = vadd.f32 %v489_v12, %v391_v62 }
 0x228   : > { %v2814_v15 = vpop.f32.mrf.mxu1 }
 0x229   : > { %v603_v17 = vsel %vm593_vm3, %v490_v13, -inf }
 0x22a   : > { %604 = vmax.xlane.f32.xlu0 %v603_v17  ;;  %v586_v18 = vpop.f32.mrf.mxu1 }
 0x22b   : > { %v3316_v19 = vadd.f32 %v586_v18, %v390_v56 }
 0x22c   : > { %v2825_v20 = vpop.f32.mrf.mxu1 }
 0x22d   : > { %v612_v22 = vsel %vm593_vm3, %v3316_v19, -inf }
 0x22e   : > { %610 = vmax.xlane.f32.xlu0 %v609_v21  ;;  %613 = vmax.xlane.f32.xlu1 %v612_v22  ;;  %v589_v23 = vpop.f32.mrf.mxu1 }
 0x22f   : > { %v590_v24 = vadd.f32 %v589_v23, %v391_v62 }
 0x230   : > { %v2826_v25 = vpop.f32.mrf.mxu1 }
 0x231   : > { %v615_v26 = vsel %vm593_vm3, %v590_v24, -inf }
 0x232   : > { %616 = vmax.xlane.f32.xlu0 %v615_v26 }
 0x23f   : > { %686 = vrot.lane.b32.xlu1 %v3263_v40, %s3178_s15 }
 0x2a7   : > { %v596_v27 = vpop.xlane.xlu0 %595 }
 0x2a8   : > { %v608_v28 = vpop.xlane.xlu1 %607  ;;  %v618_v29 = vsub.f32 %v437_v58, %v596_v27 }
 0x2a9   : > { %v622_v30 = vsub.f32 %v537_v60, %v608_v28 }
 0x2aa   : > { %v626_v31 = vmul.f32 1.442695, %v618_v29 }
 0x2ab   : > { %v634_v32 = vmul.f32 1.442695, %v622_v30 }
 0x2ac   : > { %3039 = vpow2.f32 %v626_v31  ;;  %v599_v33 = vpop.xlane.xlu1 %598 }
 0x2ad   : > { %v619_v34 = vsub.f32 %v440_v4, %v599_v33  ;;  %3041 = vpow2.f32 %v634_v32 }
 0x2af   : > { %v628_v35 = vmul.f32 1.442695, %v619_v34  ;;  %v602_v36 = vpop.xlane.xlu0 %601 }
 0x2b0   : > { %v620_v37 = vsub.f32 %v487_v9, %v602_v36 }
 0x2b1   : > { %3043 = vpow2.f32 %v628_v35 }
 0x2b2   : > { %v630_v39 = vmul.f32 1.442695, %v620_v37 }
 0x2b3   : > { %v605_v42 = vpop.xlane.xlu0 %604 }
 0x2b4   : > { %3045 = vpow2.f32 %v630_v39  ;;  %v621_v48 = vsub.f32 %v490_v13, %v605_v42 }
 0x2b6   : > { %v632_v53 = vmul.f32 1.442695, %v621_v48 }
 0x2b7   : > { %v611_v49 = vpop.xlane.xlu0 %610  ;;  %v614_v50 = vpop.xlane.xlu1 %613 }
 0x2b8   : > { %v623_v51 = vsub.f32 %v540_v16, %v611_v49  ;;  %v624_v3 = vsub.f32 %v3316_v19, %v614_v50 }
 0x2b9   : > { %v3324_v52 = vpop.eup %3039 }
 0x2ba   : > { %v636_v54 = vmul.f32 1.442695, %v623_v51  ;;  %v642_v55 = vsel %vm593_vm3, %v3324_v52, 0.0  ;;  %v3328_v56 = vpop.eup %3041  ;;  %v638_v4 = vmul.f32 1.442695, %v624_v3 }
 0x2bb   : > { %643 = vadd.xlane.f32.xlu1 %v642_v55  ;;  %v687_v57 = vpop.permute.xlu1 %686  ;;  %v654_v59 = vsel %vm593_vm3, %v3328_v56, 0.0  ;;  %v617_v5 = vpop.xlane.xlu0 %616 }
 0x2bc   : > { %3047 = vpow2.f32 %v636_v54  ;;  %2828 = vmatpush3.bf16.msra.mxu0 %v687_v57  ;;  %v625_v6 = vsub.f32 %v590_v24, %v617_v5 }
 0x2bd   : > { %2839 = vmatprep.subr.bf16.mxu0 %v3175_v14  ;;  %3049 = vpow2.f32 %v632_v53 }
 0x2be   : > { %v3044_v58 = vpop.eup %3043  ;;  %3051 = vpow2.f32 %v638_v4  ;;  %v640_v7 = vmul.f32 1.442695, %v625_v6 }
 0x2bf   : > { %655 = vadd.xlane.f32.xlu1 %v654_v59  ;;  %v645_v60 = vsel %vm593_vm3, %v3044_v58, 0.0 }
 0x2c0   : > { %646 = vadd.xlane.f32.xlu0 %v645_v60  ;;  %3053 = vpow2.f32 %v640_v7 }
 0x2c1   : > { %v3334_v61 = vpop.eup %3045 }
 0x2c2   : > { %v648_v62 = vsel %vm593_vm3, %v3334_v61, 0.0 }
 0x2c3   : > { %649 = vadd.xlane.f32.xlu1 %v648_v62 }
 0x2c9   : > { %v3048_v63 = vpop.eup %3047 }
 0x2ca   : > { %v657_v0 = vsel %vm593_vm3, %v3048_v63, 0.0  ;;  %v3339_v1 = vpop.eup %3049 }
 0x2cb   : > { %658 = vadd.xlane.f32.xlu0 %v657_v0  ;;  %v651_v2 = vsel %vm593_vm3, %v3339_v1, 0.0  ;;  %v3350_v8 = vpop.eup %3051 }
 0x2cc   : > { %v660_v9 = vsel %vm593_vm3, %v3350_v8, 0.0 }
 0x2cd   : > { %v3354_v10 = vpop.eup %3053 }
 0x2ce   : > { %v663_v11 = vsel %vm593_vm3, %v3354_v10, 0.0 }
 0x2cf   : > { %652 = vadd.xlane.f32.xlu0 %v651_v2 }
 0x2d4   : > { %780 = vrot.lane.b32.xlu1 %v3267_v43, %s3178_s15 }
 0x2d8   : > { %827 = vrot.lane.b32.xlu1 %v3277_v47, %s3178_s15 }
 0x2e5   : > { %733 = vrot.lane.b32.xlu0 %v3275_v46, %s3178_s15  ;;  %s3187_s15 = smov 40  }
 0x2fc   : > { %661 = vadd.xlane.f32.xlu1 %v660_v9 }
 0x304   : > { %664 = vadd.xlane.f32.xlu0 %v663_v11 }
 0x30d   : > { %940 = vrot.lane.b32.xlu1 %v3275_v46, %s3179_s16 }
 0x311   : > { %992 = vrot.lane.b32.xlu1 %v3267_v43, %s3179_s16 }
 0x315   : > { %1044 = vrot.lane.b32.xlu1 %v3277_v47, %s3179_s16 }
 0x319   : > { %1042 = vrot.lane.b32.xlu1 %v3265_v41, %s3180_s17 }
 0x31a   : > { %888 = vrot.lane.b32.xlu0 %v3263_v40, %s3179_s16  ;;  %s3188_s16 = smov 8  }
 0x31e   : > { %886 = vrot.lane.b32.xlu0 %v3269_v44, %s3180_s17 }
 0x322   : > { %938 = vrot.lane.b32.xlu0 %v3261_v38, %s3180_s17 }
 0x326   : > { %990 = vrot.lane.b32.xlu0 %v3272_v45, %s3180_s17  ;;  %s3189_s17 = smov 16  }
 0x344   : > { %v644_v12 = vpop.xlane.xlu1 %643 }
 0x345   : > { %3055 = vrcp.f32 %v644_v12  ;;  %v2674_v12 = vld [vmem:[%s3751_s3 + $0x10] sm:$0xff] }
 0x348   : > { %v656_v15 = vpop.xlane.xlu1 %655 }
 0x349   : > { %v647_v13 = vpop.xlane.xlu0 %646 }
 0x34a   : > { %3057 = vrcp.f32 %v647_v13 }
 0x34b   : > { %3059 = vrcp.f32 %v656_v15 }
 0x34c   : > { %v650_v16 = vpop.xlane.xlu1 %649 }
 0x350   : > { %v781_v24 = vpop.permute.xlu1 %780 }
 0x352   : > { %v3056_v18 = vpop.eup %3055 }
 0x353   : > { %v674_v21 = vmul.f32 %v3056_v18, %v3324_v52 }
 0x354   : > { %v659_v17 = vpop.xlane.xlu0 %658  ;;  %v828_v36 = vpop.permute.xlu1 %827 }
 0x355   : > { %3061 = vrcp.f32 %v659_v17  ;;  %v2675_v17 = vld [vmem:[%s3751_s3 + $0x18] sm:$0xff] }
 0x356   : > { %3063 = vrcp.f32 %v650_v16 }
 0x357   : > { %v3058_v19 = vpop.eup %3057 }
 0x358   : > { %v653_v20 = vpop.xlane.xlu0 %652  ;;  %v675_v22 = vmul.f32 %v3058_v19, %v3044_v58  ;;  %v3060_v26 = vpop.eup %3059 }
 0x359   : > { %3065 = vrcp.f32 %v653_v20  ;;  %v678_v28 = vmul.f32 %v3060_v26, %v3328_v56 }
 0x35a   : > { %v682_v23 = vpack.c.bf16 %v675_v22, %v674_v21 }
 0x35c   : > { %2830 = vmatmul.mubr.msk.bf16.vlgmr.msra.gmra.mxu0 %vm593_vm3, %v682_v23  ;;  %v734_v25 = vpop.permute.xlu0 %733 }
 0x35d   : > { %2840 = vmatpush3.bf16.msra.mxu0 %v781_v24  ;;  %2834 = vmatpush3.bf16.msra.mxu1 %v734_v25 }
 0x35e   : > { %2841 = vmatprep.mubr.msk.bf16.mxu0 %vm3176_vm1, %v3175_v14  ;;  %2845 = vmatprep.subr.bf16.mxu1 %v3175_v14 }
 0x35f   : > { %2851 = vmatprep.subr.bf16.mxu0 %v3175_v14 }
 0x362   : > { %v3062_v27 = vpop.eup %3061 }
 0x363   : > { %v679_v29 = vmul.f32 %v3062_v27, %v3048_v63  ;;  %v3064_v30 = vpop.eup %3063 }
 0x364   : > { %v676_v33 = vmul.f32 %v3064_v30, %v3334_v61 }
 0x365   : > { %v684_v31 = vpack.c.bf16 %v679_v29, %v678_v28 }
 0x366   : > { %v3066_v32 = vpop.eup %3065 }
 0x367   : > { %2842 = vmatmul.mubr.msk.bf16.vlgmr.msra.gmra.mxu0 %vm593_vm3, %v684_v31  ;;  %v677_v34 = vmul.f32 %v3066_v32, %v3339_v1 }
 0x368   : > { %2853 = vmatprep.mubr.msk.bf16.mxu0 %vm3176_vm1, %v3175_v14 }
 0x369   : > { %v683_v35 = vpack.c.bf16 %v677_v34, %v676_v33 }
 0x36b   : > { %2836 = vmatmul.mubr.msk.bf16.vlgmr.msra.gmra.mxu1 %vm593_vm3, %v683_v35 }
 0x36c   : > { %2846 = vmatpush3.bf16.msra.mxu1 %v828_v36  ;;  %2847 = vmatprep.mubr.msk.bf16.mxu1 %vm3176_vm1, %v3175_v14 }
 0x36d   : > { %2857 = vmatprep.subr.bf16.mxu1 %v3175_v14 }
 0x385   : > { %v662_v37 = vpop.xlane.xlu1 %661 }
 0x386   : > { %3067 = vrcp.f32 %v662_v37 }
 0x389   : > { %v941_v42 = vpop.permute.xlu1 %940 }
 0x38a   : > { %v946_v59 = vsel %vm395_vm2, %v941_v42, 0 }
 0x38d   : > { %v665_v39 = vpop.xlane.xlu0 %664  ;;  %v993_v51 = vpop.permute.xlu1 %992 }
 0x38e   : > { %3069 = vrcp.f32 %v665_v39  ;;  %v998_v53 = vsel %vm395_vm2, %v993_v51, 0 }
 0x391   : > { %v889_v48 = vpop.permute.xlu0 %888  ;;  %v1045_v61 = vpop.permute.xlu1 %1044 }
 0x392   : > { %v894_v49 = vsel %vm395_vm2, %v889_v48, 0  ;;  %v1050_v62 = vsel %vm395_vm2, %v1045_v61, 0 }
 0x393   : > { %2852 = vmatpush3.bf16.xpose.msra.mxu0 %v894_v49  ;;  %v3068_v52 = vpop.eup %3067 }
 0x394   : > { %2863 = vmatprep.subr.bf16.mxu0 %v3175_v14  ;;  %v680_v56 = vmul.f32 %v3068_v52, %v3350_v8 }
 0x395   : > { %v887_v50 = vpop.permute.xlu0 %886  ;;  %v1043_v63 = vpop.permute.xlu1 %1042 }
 0x399   : > { %v939_v55 = vpop.permute.xlu0 %938 }
 0x39a   : > { %2854 = vmatmul.mubr.msk.bf16.vlgmr.msra.gmra.mxu0 %vm395_vm2, %v887_v50 }
 0x39b   : > { %v3070_v54 = vpop.eup %3069  ;;  %2864 = vmatpush3.bf16.xpose.msra.mxu0 %v998_v53  ;;  %2865 = vmatprep.mubr.msk.bf16.mxu0 %vm3176_vm1, %v3175_v14 }
 0x39c   : > { %v681_v57 = vmul.f32 %v3070_v54, %v3354_v10  ;;  %2875 = vmatprep.subr.bf16.mxu0 %v3175_v14 }
 0x39d   : > { %v991_v60 = vpop.permute.xlu0 %990 }
 0x39e   : > { %v685_v58 = vpack.c.bf16 %v681_v57, %v680_v56 }
 0x3a0   : > { %2848 = vmatmul.mubr.msk.bf16.vlgmr.msra.gmra.mxu1 %vm593_vm3, %v685_v58 }
 0x3a1   : > { %2858 = vmatpush3.bf16.xpose.msra.mxu1 %v946_v59  ;;  %2859 = vmatprep.mubr.msk.bf16.mxu1 %vm3176_vm1, %v3175_v14 }
 0x3a2   : > { %2866 = vmatmul.mubr.msk.bf16.vlgmr.msra.gmra.mxu0 %vm395_vm2, %v991_v60  ;;  %2869 = vmatprep.subr.bf16.mxu1 %v3175_v14 }
 0x3a3   : > { %2877 = vmatprep.mubr.msk.bf16.mxu0 %vm3176_vm1, %v3175_v14 }
 0x3a8   : > { %2860 = vmatmul.mubr.msk.bf16.vlgmr.msra.gmra.mxu1 %vm395_vm2, %v939_v55 }
 0x3a9   : > { %2870 = vmatpush3.bf16.xpose.msra.mxu1 %v1050_v62  ;;  %2871 = vmatprep.mubr.msk.bf16.mxu1 %vm3176_vm1, %v3175_v14 }
 0x3aa   : > { %2881 = vmatprep.subr.bf16.mxu1 %v3175_v14 }
 0x3b0   : > { %2872 = vmatmul.mubr.msk.bf16.vlgmr.msra.gmra.mxu1 %vm395_vm2, %v1043_v63 }
 0x3b1   : > { %2883 = vmatprep.mubr.msk.bf16.mxu1 %vm3176_vm1, %v3175_v14 }
 0x41c   : > { %v726_v0 = vpop.f32.mrf.mxu0 }
 0x41d   : > { %874 = vst.msk [vmem:[#allocation2] sm:$0xff] %vm395_vm2, %v726_v0 }
 0x41e   : > { %v2831_v1 = vpop.f32.mrf.mxu0 }
 0x420   : > { %v729_v2 = vpop.f32.mrf.mxu0 }
 0x421   : > { %875 = vst.msk [vmem:[#allocation2 + $0x8] sm:$0xff] %vm395_vm2, %v729_v2 }
 0x422   : > { %v2832_v3 = vpop.f32.mrf.mxu0 }
 0x427   : > { %v820_v4 = vpop.f32.mrf.mxu0 }
 0x428   : > { %878 = vst.msk [vmem:[#allocation2 + $0x20] sm:$0xff] %vm395_vm2, %v820_v4 }
 0x429   : > { %v2843_v5 = vpop.f32.mrf.mxu0 }
 0x42b   : > { %v773_v6 = vpop.f32.mrf.mxu1  ;;  %v823_v7 = vpop.f32.mrf.mxu0 }
 0x42c   : > { %876 = vst.msk [vmem:[#allocation2 + $0x10] sm:$0xff] %vm395_vm2, %v773_v6  ;;  %879 = vst.msk [vmem:[#allocation2 + $0x28] sm:$0xff] %vm395_vm2, %v823_v7 }
 0x42d   : > { %v2837_v8 = vpop.f32.mrf.mxu1  ;;  %v2844_v9 = vpop.f32.mrf.mxu0 }
 0x42f   : > { %v776_v10 = vpop.f32.mrf.mxu1 }
 0x430   : > { %877 = vst.msk [vmem:[#allocation2 + $0x18] sm:$0xff] %vm395_vm2, %v776_v10 }
 0x431   : > { %v2838_v11 = vpop.f32.mrf.mxu1 }
 0x45a   : > { %v930_v13 = vpop.f32.mrf.mxu0 }
 0x45b   : > { %v931_v15 = vadd.f32 %v2674_v12, %v930_v13 }
 0x45c   : > { %v2855_v16 = vpop.f32.mrf.mxu0 }
 0x45d   : > { %v1093_v18 = vsel %vm593_vm3, %v931_v15, -inf }
 0x45e   : > { %1094 = vmax.xlane.f32.xlu0 %v1093_v18  ;;  %v933_v19 = vpop.f32.mrf.mxu0 }
 0x45f   : > { %v934_v20 = vadd.f32 %v2675_v17, %v933_v19 }
 0x460   : > { %v867_v21 = vpop.f32.mrf.mxu1  ;;  %v2856_v22 = vpop.f32.mrf.mxu0 }
 0x461   : > { %880 = vst.msk [vmem:[#allocation2 + $0x30] sm:$0xff] %vm395_vm2, %v867_v21  ;;  %v1096_v23 = vsel %vm593_vm3, %v934_v20, -inf }
 0x462   : > { %1097 = vmax.xlane.f32.xlu1 %v1096_v23  ;;  %v2849_v24 = vpop.f32.mrf.mxu1  ;;  %v1034_v25 = vpop.f32.mrf.mxu0 }
 0x463   : > { %v1035_v26 = vadd.f32 %v2674_v12, %v1034_v25 }
 0x464   : > { %v870_v27 = vpop.f32.mrf.mxu1  ;;  %v2867_v28 = vpop.f32.mrf.mxu0 }
 0x465   : > { %881 = vst.msk [vmem:[#allocation2 + $0x38] sm:$0xff] %vm395_vm2, %v870_v27  ;;  %v1105_v29 = vsel %vm593_vm3, %v1035_v26, -inf }
 0x466   : > { %1106 = vmax.xlane.f32.xlu1 %v1105_v29  ;;  %v2850_v30 = vpop.f32.mrf.mxu1  ;;  %v1037_v31 = vpop.f32.mrf.mxu0 }
 0x467   : > { %v1038_v48 = vadd.f32 %v2675_v17, %v1037_v31 }
 0x468   : > { %v982_v32 = vpop.f32.mrf.mxu1  ;;  %v2868_v33 = vpop.f32.mrf.mxu0 }
 0x469   : > { %v983_v34 = vadd.f32 %v2674_v12, %v982_v32  ;;  %v1108_v53 = vsel %vm593_vm3, %v1038_v48, -inf }
 0x46a   : > { %v2861_v35 = vpop.f32.mrf.mxu1 }
 0x46b   : > { %v1099_v36 = vsel %vm593_vm3, %v983_v34, -inf }
 0x46c   : > { %1100 = vmax.xlane.f32.xlu0 %v1099_v36  ;;  %v985_v37 = vpop.f32.mrf.mxu1 }
 0x46d   : > { %v986_v39 = vadd.f32 %v2675_v17, %v985_v37 }
 0x46e   : > { %v2862_v42 = vpop.f32.mrf.mxu1 }
 0x46f   : > { %v1102_v49 = vsel %vm593_vm3, %v986_v39, -inf }
 0x470   : > { %1103 = vmax.xlane.f32.xlu0 %v1102_v49  ;;  %v1086_v50 = vpop.f32.mrf.mxu1 }
 0x471   : > { %v1087_v51 = vadd.f32 %v2674_v12, %v1086_v50 }
 0x472   : > { %v2873_v52 = vpop.f32.mrf.mxu1 }
 0x473   : > { %v1111_v54 = vsel %vm593_vm3, %v1087_v51, -inf }
 0x474   : > { %1109 = vmax.xlane.f32.xlu0 %v1108_v53  ;;  %1112 = vmax.xlane.f32.xlu1 %v1111_v54  ;;  %v1089_v55 = vpop.f32.mrf.mxu1 }
 0x475   : > { %v1090_v56 = vadd.f32 %v2675_v17, %v1089_v55 }
 0x476   : > { %v2874_v57 = vpop.f32.mrf.mxu1 }
 0x477   : > { %v1114_v58 = vsel %vm593_vm3, %v1090_v56, -inf }
 0x478   : > { %1115 = vmax.xlane.f32.xlu0 %v1114_v58 }
 0x485   : > { %1185 = vrot.lane.b32.xlu1 %v3263_v40, %s3181_s23 }
 0x489   : > { %1279 = vrot.lane.b32.xlu1 %v3267_v43, %s3181_s23 }
 0x48d   : > { %1326 = vrot.lane.b32.xlu1 %v3277_v47, %s3181_s23 }
 0x48e   : > { %1232 = vrot.lane.b32.xlu0 %v3275_v46, %s3181_s23 }
 0x4e7   : > { %v1095_v59 = vpop.xlane.xlu0 %1094 }
 0x4e8   : > { %v1117_v60 = vsub.f32 %v931_v15, %v1095_v59 }
 0x4ea   : > { %v1125_v61 = vmul.f32 1.442695, %v1117_v60 }
 0x4eb   : > { %v1098_v62 = vpop.xlane.xlu1 %1097 }
 0x4ec   : > { %3071 = vpow2.f32 %v1125_v61  ;;  %v1118_v63 = vsub.f32 %v934_v20, %v1098_v62 }
 0x4ee   : > { %v1127_v0 = vmul.f32 1.442695, %v1118_v63 }
 0x4ef   : > { %v1107_v1 = vpop.xlane.xlu1 %1106 }
 0x4f0   : > { %3073 = vpow2.f32 %v1127_v0  ;;  %v1121_v2 = vsub.f32 %v1035_v26, %v1107_v1 }
 0x4f2   : > { %v1133_v5 = vmul.f32 1.442695, %v1121_v2 }
 0x4f5   : > { %v1101_v3 = vpop.xlane.xlu0 %1100 }
 0x4f6   : > { %v1119_v4 = vsub.f32 %v983_v34, %v1101_v3 }
 0x4f8   : > { %v1129_v6 = vmul.f32 1.442695, %v1119_v4 }
 0x4f9   : > { %v3433_v7 = vpop.eup %3071  ;;  %v1104_v8 = vpop.xlane.xlu0 %1103 }
 0x4fa   : > { %3075 = vpow2.f32 %v1129_v6  ;;  %v1120_v9 = vsub.f32 %v986_v39, %v1104_v8  ;;  %v1141_v10 = vsel %vm593_vm3, %v3433_v7, 0.0 }
 0x4fb   : > { %1142 = vadd.xlane.f32.xlu1 %v1141_v10  ;;  %3077 = vpow2.f32 %v1133_v5 }
 0x4fc   : > { %v1131_v11 = vmul.f32 1.442695, %v1120_v9 }
 0x4fd   : > { %v3437_v12 = vpop.eup %3073  ;;  %v1110_v13 = vpop.xlane.xlu0 %1109 }
 0x4fe   : > { %v1113_v15 = vpop.xlane.xlu1 %1112  ;;  %3079 = vpow2.f32 %v1131_v11  ;;  %v1122_v16 = vsub.f32 %v1038_v48, %v1110_v13  ;;  %v1144_v18 = vsel %vm593_vm3, %v3437_v12, 0.0 }
 0x4ff   : > { %v1123_v17 = vsub.f32 %v1087_v51, %v1113_v15  ;;  %1145 = vadd.xlane.f32.xlu0 %v1144_v18 }
 0x500   : > { %v1135_v19 = vmul.f32 1.442695, %v1122_v16 }
 0x501   : > { %v1137_v20 = vmul.f32 1.442695, %v1123_v17  ;;  %v1116_v22 = vpop.xlane.xlu0 %1115 }
 0x502   : > { %v1186_v21 = vpop.permute.xlu1 %1185  ;;  %3081 = vpow2.f32 %v1135_v19  ;;  %v1124_v23 = vsub.f32 %v1090_v56, %v1116_v22 }
 0x503   : > { %2876 = vmatpush3.bf16.msra.mxu0 %v1186_v21  ;;  %3083 = vpow2.f32 %v1137_v20 }
 0x504   : > { %2887 = vmatprep.subr.bf16.mxu0 %v3175_v14  ;;  %v1139_v24 = vmul.f32 1.442695, %v1124_v23 }
 0x505   : > { %v1233_v25 = vpop.permute.xlu0 %1232 }
 0x506   : > { %3085 = vpow2.f32 %v1139_v24  ;;  %2882 = vmatpush3.bf16.msra.mxu1 %v1233_v25  ;;  %v1280_v39 = vpop.permute.xlu1 %1279 }
 0x507   : > { %v3076_v26 = vpop.eup %3075  ;;  %2893 = vmatprep.subr.bf16.mxu1 %v3175_v14 }
 0x508   : > { %v1147_v27 = vsel %vm593_vm3, %v3076_v26, 0.0  ;;  %v3078_v28 = vpop.eup %3077 }
 0x509   : > { %1148 = vadd.xlane.f32.xlu1 %v1147_v27  ;;  %v1153_v30 = vsel %vm593_vm3, %v3078_v28, 0.0 }
 0x50a   : > { %v1327_v42 = vpop.permute.xlu1 %1326 }
 0x50b   : > { %v3080_v29 = vpop.eup %3079 }
 0x50c   : > { %v1150_v31 = vsel %vm593_vm3, %v3080_v29, 0.0 }
 0x50d   : > { %1154 = vadd.xlane.f32.xlu1 %v1153_v30  ;;  %1151 = vadd.xlane.f32.xlu0 %v1150_v31 }
 0x50f   : > { %v3082_v32 = vpop.eup %3081 }
 0x510   : > { %v3446_v33 = vpop.eup %3083  ;;  %v1156_v34 = vsel %vm593_vm3, %v3082_v32, 0.0 }
 0x511   : > { %v1159_v35 = vsel %vm593_vm3, %v3446_v33, 0.0  ;;  %1157 = vadd.xlane.f32.xlu0 %v1156_v34 }
 0x512   : > { %1160 = vadd.xlane.f32.xlu1 %v1159_v35 }
 0x513   : > { %v3086_v36 = vpop.eup %3085 }
 0x514   : > { %v1162_v37 = vsel %vm593_vm3, %v3086_v36, 0.0 }
 0x515   : > { %1163 = vadd.xlane.f32.xlu0 %v1162_v37 }
 0x523   : > { %1470 = vrot.lane.b32.xlu1 %v3275_v46, %s3182_s24 }
 0x527   : > { %1521 = vrot.lane.b32.xlu1 %v3267_v43, %s3182_s24 }
 0x52b   : > { %1572 = vrot.lane.b32.xlu1 %v3277_v47, %s3182_s24  ;;  %1419 = vrot.lane.b32.xlu0 %v3263_v40, %s3182_s24 }
 0x52f   : > { %1570 = vrot.lane.b32.xlu1 %v3265_v41, %s3183_s26  ;;  %1417 = vrot.lane.b32.xlu0 %v3269_v44, %s3183_s26 }
 0x533   : > { %1468 = vrot.lane.b32.xlu0 %v3261_v38, %s3183_s26 }
 0x537   : > { %1519 = vrot.lane.b32.xlu0 %v3272_v45, %s3183_s26 }
 0x584   : > { %v1143_v48 = vpop.xlane.xlu1 %1142 }
 0x585   : > { %3087 = vrcp.f32 %v1143_v48 }
 0x588   : > { %v1146_v49 = vpop.xlane.xlu0 %1145 }
 0x589   : > { %3089 = vrcp.f32 %v1146_v49 }
 0x592   : > { %v1149_v50 = vpop.xlane.xlu1 %1148  ;;  %v3088_v51 = vpop.eup %3087 }
 0x593   : > { %3091 = vrcp.f32 %v1149_v50  ;;  %v1173_v55 = vmul.f32 %v3088_v51, %v3433_v7 }
 0x596   : > { %v3090_v52 = vpop.eup %3089  ;;  %v1155_v53 = vpop.xlane.xlu1 %1154 }
 0x597   : > { %v1152_v54 = vpop.xlane.xlu0 %1151  ;;  %v1174_v56 = vmul.f32 %v3090_v52, %v3437_v12  ;;  %v2685_v52 = vld [vmem:[%s3751_s3 + $0x28] sm:$0xff] }
 0x598   : > { %3093 = vrcp.f32 %v1152_v54 }
 0x599   : > { %3095 = vrcp.f32 %v1155_v53  ;;  %v1181_v57 = vpack.c.bf16 %v1174_v56, %v1173_v55 }
 0x59b   : > { %v1158_v58 = vpop.xlane.xlu0 %1157  ;;  %v1161_v59 = vpop.xlane.xlu1 %1160  ;;  %2878 = vmatmul.mubr.msk.bf16.vlgmr.msra.gmra.mxu0 %vm593_vm3, %v1181_v57 }
 0x59c   : > { %3097 = vrcp.f32 %v1158_v58  ;;  %2888 = vmatpush3.bf16.msra.mxu0 %v1280_v39  ;;  %2889 = vmatprep.mubr.msk.bf16.mxu0 %vm3176_vm1, %v3175_v14  ;;  %v2684_v39 = vld [vmem:[%s3751_s3 + $0x20] sm:$0xff] }
 0x59d   : > { %3099 = vrcp.f32 %v1161_v59  ;;  %2899 = vmatprep.subr.bf16.mxu0 %v3175_v14 }
 0x59f   : > { %v1164_v60 = vpop.xlane.xlu0 %1163  ;;  %v1471_v8 = vpop.permute.xlu1 %1470 }
 0x5a0   : > { %3101 = vrcp.f32 %v1164_v60  ;;  %v3092_v61 = vpop.eup %3091  ;;  %v1476_v18 = vsel %vm395_vm2, %v1471_v8, 0 }
 0x5a1   : > { %v1175_v0 = vmul.f32 %v3092_v61, %v3076_v26 }
 0x5a3   : > { %v1420_v7 = vpop.permute.xlu0 %1419  ;;  %v1522_v17 = vpop.permute.xlu1 %1521 }
 0x5a4   : > { %v1425_v11 = vsel %vm395_vm2, %v1420_v7, 0  ;;  %v1527_v19 = vsel %vm395_vm2, %v1522_v17, 0 }
 0x5a5   : > { %v3094_v62 = vpop.eup %3093 }
 0x5a6   : > { %v3096_v63 = vpop.eup %3095  ;;  %v1176_v1 = vmul.f32 %v3094_v62, %v3080_v29 }
 0x5a7   : > { %v1177_v4 = vmul.f32 %v3096_v63, %v3078_v28  ;;  %v1418_v16 = vpop.permute.xlu0 %1417  ;;  %v1573_v21 = vpop.permute.xlu1 %1572 }
 0x5a8   : > { %v1182_v3 = vpack.c.bf16 %v1176_v1, %v1175_v0  ;;  %v1578_v22 = vsel %vm395_vm2, %v1573_v21, 0 }
 0x5a9   : > { %v3098_v2 = vpop.eup %3097 }
 0x5aa   : > { %v1178_v5 = vmul.f32 %v3098_v2, %v3082_v32  ;;  %v3100_v6 = vpop.eup %3099  ;;  %2884 = vmatmul.mubr.msk.bf16.vlgmr.msra.gmra.mxu1 %vm593_vm3, %v1182_v3 }
 0x5ab   : > { %2894 = vmatpush3.bf16.msra.mxu1 %v1327_v42  ;;  %2895 = vmatprep.mubr.msk.bf16.mxu1 %vm3176_vm1, %v3175_v14  ;;  %v1179_v12 = vmul.f32 %v3100_v6, %v3446_v33  ;;  %v1469_v20 = vpop.permute.xlu0 %1468  ;;  %v1571_v24 = vpop.permute.xlu1 %1570 }
 0x5ac   : > { %v1183_v9 = vpack.c.bf16 %v1178_v5, %v1177_v4  ;;  %2905 = vmatprep.subr.bf16.mxu1 %v3175_v14 }
 0x5ad   : > { %v3102_v10 = vpop.eup %3101 }
 0x5ae   : > { %2890 = vmatmul.mubr.msk.bf16.vlgmr.msra.gmra.mxu0 %vm593_vm3, %v1183_v9  ;;  %v1180_v13 = vmul.f32 %v3102_v10, %v3086_v36 }
 0x5af   : > { %2900 = vmatpush3.bf16.xpose.msra.mxu0 %v1425_v11  ;;  %2901 = vmatprep.mubr.msk.bf16.mxu0 %vm3176_vm1, %v3175_v14  ;;  %v1520_v23 = vpop.permute.xlu0 %1519 }
 0x5b0   : > { %v1184_v15 = vpack.c.bf16 %v1180_v13, %v1179_v12  ;;  %2911 = vmatprep.subr.bf16.mxu0 %v3175_v14 }
 0x5b2   : > { %2896 = vmatmul.mubr.msk.bf16.vlgmr.msra.gmra.mxu1 %vm593_vm3, %v1184_v15 }
 0x5b3   : > { %2906 = vmatpush3.bf16.xpose.msra.mxu1 %v1476_v18  ;;  %2907 = vmatprep.mubr.msk.bf16.mxu1 %vm3176_vm1, %v3175_v14 }
 0x5b4   : > { %2917 = vmatprep.subr.bf16.mxu1 %v3175_v14 }
 0x5b6   : > { %2902 = vmatmul.mubr.msk.bf16.vlgmr.msra.gmra.mxu0 %vm395_vm2, %v1418_v16 }
 0x5b7   : > { %2912 = vmatpush3.bf16.xpose.msra.mxu0 %v1527_v19  ;;  %2913 = vmatprep.mubr.msk.bf16.mxu0 %vm3176_vm1, %v3175_v14 }
 0x5b8   : > { %2923 = vmatprep.subr.bf16.mxu0 %v3175_v14 }
 0x5ba   : > { %2908 = vmatmul.mubr.msk.bf16.vlgmr.msra.gmra.mxu1 %vm395_vm2, %v1469_v20 }
 0x5bb   : > { %2918 = vmatpush3.bf16.xpose.msra.mxu1 %v1578_v22  ;;  %2919 = vmatprep.mubr.msk.bf16.mxu1 %vm3176_vm1, %v3175_v14 }
 0x5bc   : > { %2929 = vmatprep.subr.bf16.mxu1 %v3175_v14 }
 0x5be   : > { %2914 = vmatmul.mubr.msk.bf16.vlgmr.msra.gmra.mxu0 %vm395_vm2, %v1520_v23 }
 0x5bf   : > { %2925 = vmatprep.mubr.msk.bf16.mxu0 %vm3176_vm1, %v3175_v14 }
 0x5c2   : > { %2920 = vmatmul.mubr.msk.bf16.vlgmr.msra.gmra.mxu1 %vm395_vm2, %v1571_v24 }
 0x5c3   : > { %2931 = vmatprep.mubr.msk.bf16.mxu1 %vm3176_vm1, %v3175_v14 }
 0x65b   : > { %v3497_v25 = vpop.f32.mrf.mxu0 }
 0x65d   : > { %v2879_v26 = vpop.f32.mrf.mxu0 }
 0x65f   : > { %v3499_v27 = vpop.f32.mrf.mxu0 }
 0x661   : > { %v2880_v28 = vpop.f32.mrf.mxu0 }
 0x66a   : > { %v3501_v29 = vpop.f32.mrf.mxu1 }
 0x66c   : > { %v2885_v30 = vpop.f32.mrf.mxu1 }
 0x66e   : > { %v3503_v31 = vpop.f32.mrf.mxu0  ;;  %v3505_v32 = vpop.f32.mrf.mxu1 }
 0x670   : > { %v2891_v33 = vpop.f32.mrf.mxu0  ;;  %v2886_v34 = vpop.f32.mrf.mxu1 }
 0x672   : > { %v3507_v35 = vpop.f32.mrf.mxu0  ;;  %v3509_v36 = vpop.f32.mrf.mxu1 }
 0x674   : > { %v2892_v37 = vpop.f32.mrf.mxu0  ;;  %v2897_v42 = vpop.f32.mrf.mxu1 }
 0x676   : > { %v1461_v48 = vpop.f32.mrf.mxu0  ;;  %v3514_v49 = vpop.f32.mrf.mxu1 }
 0x677   : > { %v1462_v50 = vadd.f32 %v2684_v39, %v1461_v48 }
 0x678   : > { %v2903_v51 = vpop.f32.mrf.mxu0  ;;  %v2898_v53 = vpop.f32.mrf.mxu1 }
 0x679   : > { %v1621_v54 = vsel %vm593_vm3, %v1462_v50, -inf }
 0x67a   : > { %1622 = vmax.xlane.f32.xlu0 %v1621_v54  ;;  %v1464_v55 = vpop.f32.mrf.mxu0  ;;  %v1512_v57 = vpop.f32.mrf.mxu1 }
 0x67b   : > { %v1465_v56 = vadd.f32 %v2685_v52, %v1464_v55  ;;  %v1513_v58 = vadd.f32 %v2684_v39, %v1512_v57 }
 0x67c   : > { %v2904_v59 = vpop.f32.mrf.mxu0  ;;  %v2909_v60 = vpop.f32.mrf.mxu1 }
 0x67d   : > { %v1624_v61 = vsel %vm593_vm3, %v1465_v56, -inf  ;;  %v1627_v63 = vsel %vm593_vm3, %v1513_v58, -inf }
 0x67e   : > { %1625 = vmax.xlane.f32.xlu1 %v1624_v61  ;;  %v1563_v62 = vpop.f32.mrf.mxu0  ;;  %1628 = vmax.xlane.f32.xlu0 %v1627_v63  ;;  %v1515_v1 = vpop.f32.mrf.mxu1 }
 0x67f   : > { %v1564_v0 = vadd.f32 %v2684_v39, %v1563_v62  ;;  %v1516_v2 = vadd.f32 %v2685_v52, %v1515_v1 }
 0x680   : > { %v2915_v3 = vpop.f32.mrf.mxu0  ;;  %v2910_v4 = vpop.f32.mrf.mxu1 }
 0x681   : > { %v1633_v5 = vsel %vm593_vm3, %v1564_v0, -inf  ;;  %v1630_v7 = vsel %vm593_vm3, %v1516_v2, -inf }
 0x682   : > { %1634 = vmax.xlane.f32.xlu1 %v1633_v5  ;;  %v1566_v6 = vpop.f32.mrf.mxu0  ;;  %1631 = vmax.xlane.f32.xlu0 %v1630_v7  ;;  %v1614_v9 = vpop.f32.mrf.mxu1 }
 0x683   : > { %v1567_v8 = vadd.f32 %v2685_v52, %v1566_v6  ;;  %v1615_v10 = vadd.f32 %v2684_v39, %v1614_v9 }
 0x684   : > { %v2916_v11 = vpop.f32.mrf.mxu0  ;;  %v2921_v12 = vpop.f32.mrf.mxu1 }
 0x685   : > { %v1636_v13 = vsel %vm593_vm3, %v1567_v8, -inf  ;;  %v1639_v15 = vsel %vm593_vm3, %v1615_v10, -inf }
 0x686   : > { %1637 = vmax.xlane.f32.xlu0 %v1636_v13  ;;  %1640 = vmax.xlane.f32.xlu1 %v1639_v15  ;;  %v1617_v16 = vpop.f32.mrf.mxu1 }
 0x687   : > { %v1618_v17 = vadd.f32 %v2685_v52, %v1617_v16 }
 0x688   : > { %v2922_v18 = vpop.f32.mrf.mxu1 }
 0x689   : > { %v1642_v19 = vsel %vm593_vm3, %v1618_v17, -inf }
 0x68a   : > { %1643 = vmax.xlane.f32.xlu0 %v1642_v19 }
 0x697   : > { %1713 = vrot.lane.b32.xlu1 %v3263_v40, %s3184_s8 }
 0x69b   : > { %1807 = vrot.lane.b32.xlu1 %v3267_v43, %s3184_s8 }
 0x69f   : > { %1854 = vrot.lane.b32.xlu1 %v3277_v47, %s3184_s8 }
 0x6a0   : > { %1760 = vrot.lane.b32.xlu0 %v3275_v46, %s3184_s8 }
 0x703   : > { %v1623_v20 = vpop.xlane.xlu0 %1622 }
 0x704   : > { %v1645_v21 = vsub.f32 %v1462_v50, %v1623_v20 }
 0x706   : > { %v1653_v22 = vmul.f32 1.442695, %v1645_v21 }
 0x707   : > { %v1626_v23 = vpop.xlane.xlu1 %1625  ;;  %v1629_v26 = vpop.xlane.xlu0 %1628 }
 0x708   : > { %3103 = vpow2.f32 %v1653_v22  ;;  %v1646_v24 = vsub.f32 %v1465_v56, %v1626_v23  ;;  %v1647_v28 = vsub.f32 %v1513_v58, %v1629_v26 }
 0x70a   : > { %v1655_v30 = vmul.f32 1.442695, %v1646_v24  ;;  %v1657_v33 = vmul.f32 1.442695, %v1647_v28 }
 0x70b   : > { %v1635_v34 = vpop.xlane.xlu1 %1634  ;;  %v1632_v39 = vpop.xlane.xlu0 %1631 }
 0x70c   : > { %3105 = vpow2.f32 %v1655_v30  ;;  %v1649_v37 = vsub.f32 %v1564_v0, %v1635_v34  ;;  %v1648_v42 = vsub.f32 %v1516_v2, %v1632_v39 }
 0x70d   : > { %3107 = vpow2.f32 %v1657_v33 }
 0x70e   : > { %v1661_v48 = vmul.f32 1.442695, %v1649_v37  ;;  %v1659_v51 = vmul.f32 1.442695, %v1648_v42 }
 0x70f   : > { %v1638_v52 = vpop.xlane.xlu0 %1637  ;;  %v1641_v53 = vpop.xlane.xlu1 %1640 }
 0x710   : > { %3109 = vpow2.f32 %v1661_v48  ;;  %v1650_v50 = vsub.f32 %v1567_v8, %v1638_v52  ;;  %v1651_v54 = vsub.f32 %v1615_v10, %v1641_v53 }
 0x711   : > { %3111 = vpow2.f32 %v1659_v51 }
 0x712   : > { %v1663_v55 = vmul.f32 1.442695, %v1650_v50  ;;  %v1665_v56 = vmul.f32 1.442695, %v1651_v54 }
 0x713   : > { %v1714_v57 = vpop.permute.xlu1 %1713  ;;  %v1644_v58 = vpop.xlane.xlu0 %1643 }
 0x714   : > { %3113 = vpow2.f32 %v1663_v55  ;;  %v1652_v60 = vsub.f32 %v1618_v17, %v1644_v58  ;;  %2924 = vmatpush3.bf16.msra.mxu0 %v1714_v57 }
 0x715   : > { %v3531_v59 = vpop.eup %3103  ;;  %3115 = vpow2.f32 %v1665_v56  ;;  %2935 = vmatprep.subr.bf16.mxu0 %v3175_v14 }
 0x716   : > { %v1669_v61 = vsel %vm593_vm3, %v3531_v59, 0.0  ;;  %v1667_v62 = vmul.f32 1.442695, %v1652_v60 }
 0x717   : > { %1670 = vadd.xlane.f32.xlu1 %v1669_v61  ;;  %v1761_v63 = vpop.permute.xlu0 %1760  ;;  %v1808_v15 = vpop.permute.xlu1 %1807 }
 0x718   : > { %3117 = vpow2.f32 %v1667_v62  ;;  %2930 = vmatpush3.bf16.msra.mxu1 %v1761_v63 }
 0x719   : > { %v3106_v0 = vpop.eup %3105  ;;  %2941 = vmatprep.subr.bf16.mxu1 %v3175_v14 }
 0x71a   : > { %v3108_v1 = vpop.eup %3107  ;;  %v1672_v2 = vsel %vm593_vm3, %v3106_v0, 0.0 }
 0x71b   : > { %v1675_v3 = vsel %vm593_vm3, %v3108_v1, 0.0  ;;  %1673 = vadd.xlane.f32.xlu0 %v1672_v2  ;;  %v1855_v16 = vpop.permute.xlu1 %1854 }
 0x71c   : > { %1676 = vadd.xlane.f32.xlu1 %v1675_v3 }
 0x71d   : > { %v3110_v4 = vpop.eup %3109 }
 0x71e   : > { %v3112_v5 = vpop.eup %3111  ;;  %v1681_v6 = vsel %vm593_vm3, %v3110_v4, 0.0 }
 0x71f   : > { %v1678_v7 = vsel %vm593_vm3, %v3112_v5, 0.0 }
 0x720   : > { %1682 = vadd.xlane.f32.xlu1 %v1681_v6  ;;  %1679 = vadd.xlane.f32.xlu0 %v1678_v7 }
 0x721   : > { %v3114_v8 = vpop.eup %3113 }
 0x722   : > { %v3541_v9 = vpop.eup %3115  ;;  %v1684_v10 = vsel %vm593_vm3, %v3114_v8, 0.0 }
 0x723   : > { %v1687_v11 = vsel %vm593_vm3, %v3541_v9, 0.0 }
 0x724   : > { %1685 = vadd.xlane.f32.xlu0 %v1684_v10  ;;  %1688 = vadd.xlane.f32.xlu1 %v1687_v11 }
 0x725   : > { %v3118_v12 = vpop.eup %3117 }
 0x726   : > { %v1690_v13 = vsel %vm593_vm3, %v3118_v12, 0.0 }
 0x728   : > { %1691 = vadd.xlane.f32.xlu0 %v1690_v13 }
 0x735   : > { %1998 = vrot.lane.b32.xlu1 %v3275_v46, %s3185_s9 }
 0x739   : > { %2049 = vrot.lane.b32.xlu1 %v3267_v43, %s3185_s9 }
 0x73d   : > { %2100 = vrot.lane.b32.xlu1 %v3277_v47, %s3185_s9 }
 0x73e   : > { %1947 = vrot.lane.b32.xlu0 %v3263_v40, %s3185_s9 }
 0x741   : > { %2098 = vrot.lane.b32.xlu1 %v3265_v41, %s3186_s10 }
 0x742   : > { %1945 = vrot.lane.b32.xlu0 %v3269_v44, %s3186_s10 }
 0x746   : > { %1996 = vrot.lane.b32.xlu0 %v3261_v38, %s3186_s10 }
 0x74a   : > { %2047 = vrot.lane.b32.xlu0 %v3272_v45, %s3186_s10 }
 0x7a0   : > { %v1671_v17 = vpop.xlane.xlu1 %1670 }
 0x7a1   : > { %3119 = vrcp.f32 %v1671_v17 }
 0x7a4   : > { %v1674_v18 = vpop.xlane.xlu0 %1673 }
 0x7a5   : > { %v1677_v19 = vpop.xlane.xlu1 %1676  ;;  %3121 = vrcp.f32 %v1674_v18 }
 0x7a6   : > { %3123 = vrcp.f32 %v1677_v19  ;;  %v2694_v19 = vld [vmem:[%s3751_s3 + $0x30] sm:$0xff] }
 0x7a9   : > { %v1683_v20 = vpop.xlane.xlu1 %1682  ;;  %v1680_v21 = vpop.xlane.xlu0 %1679 }
 0x7aa   : > { %3125 = vrcp.f32 %v1680_v21 }
 0x7ab   : > { %3127 = vrcp.f32 %v1683_v20 }
 0x7ad   : > { %v1686_v22 = vpop.xlane.xlu0 %1685  ;;  %v1689_v41 = vpop.xlane.xlu1 %1688 }
 0x7ae   : > { %3129 = vrcp.f32 %v1686_v22  ;;  %v3120_v44 = vpop.eup %3119 }
 0x7af   : > { %3131 = vrcp.f32 %v1689_v41  ;;  %v1701_v45 = vmul.f32 %v3120_v44, %v3531_v59 }
 0x7b1   : > { %v1692_v38 = vpop.xlane.xlu0 %1691  ;;  %v1999_v50 = vpop.permute.xlu1 %1998 }
 0x7b2   : > { %v3122_v23 = vpop.eup %3121  ;;  %3133 = vrcp.f32 %v1692_v38  ;;  %v2004_v62 = vsel %vm395_vm2, %v1999_v50, 0  ;;  %v2695_v38 = vld [vmem:[%s3751_s3 + $0x38] sm:$0xff] }
 0x7b3   : > { %v1702_v24 = vmul.f32 %v3122_v23, %v3106_v0  ;;  %v3124_v28 = vpop.eup %3123 }
 0x7b4   : > { %v1703_v34 = vmul.f32 %v3124_v28, %v3108_v1 }
 0x7b5   : > { %v1709_v26 = vpack.c.bf16 %v1702_v24, %v1701_v45  ;;  %v1948_v53 = vpop.permute.xlu0 %1947  ;;  %v2050_v61 = vpop.permute.xlu1 %2049 }
 0x7b6   : > { %v1953_v56 = vsel %vm395_vm2, %v1948_v53, 0  ;;  %v2055_v63 = vsel %vm395_vm2, %v2050_v61, 0 }
 0x7b7   : > { %2926 = vmatmul.mubr.msk.bf16.vlgmr.msra.gmra.mxu0 %vm593_vm3, %v1709_v26  ;;  %v3126_v30 = vpop.eup %3125 }
 0x7b8   : > { %2936 = vmatpush3.bf16.msra.mxu0 %v1808_v15  ;;  %2937 = vmatprep.mubr.msk.bf16.mxu0 %vm3176_vm1, %v3175_v14  ;;  %v3128_v33 = vpop.eup %3127  ;;  %v1704_v37 = vmul.f32 %v3126_v30, %v3112_v5 }
 0x7b9   : > { %2947 = vmatprep.subr.bf16.mxu0 %v3175_v14  ;;  %v1705_v48 = vmul.f32 %v3128_v33, %v3110_v4  ;;  %v1946_v60 = vpop.permute.xlu0 %1945  ;;  %v2101_v1 = vpop.permute.xlu1 %2100 }
 0x7ba   : > { %v1710_v42 = vpack.c.bf16 %v1704_v37, %v1703_v34  ;;  %v2106_v2 = vsel %vm395_vm2, %v2101_v1, 0 }
 0x7bb   : > { %v3130_v39 = vpop.eup %3129 }
 0x7bc   : > { %v1706_v51 = vmul.f32 %v3130_v39, %v3114_v8  ;;  %v3132_v52 = vpop.eup %3131  ;;  %2932 = vmatmul.mubr.msk.bf16.vlgmr.msra.gmra.mxu1 %vm593_vm3, %v1710_v42 }
 0x7bd   : > { %2942 = vmatpush3.bf16.msra.mxu1 %v1855_v16  ;;  %2943 = vmatprep.mubr.msk.bf16.mxu1 %vm3176_vm1, %v3175_v14  ;;  %v1707_v57 = vmul.f32 %v3132_v52, %v3541_v9  ;;  %v1997_v0 = vpop.permute.xlu0 %1996  ;;  %v2099_v4 = vpop.permute.xlu1 %2098 }
 0x7be   : > { %v1711_v54 = vpack.c.bf16 %v1706_v51, %v1705_v48  ;;  %2953 = vmatprep.subr.bf16.mxu1 %v3175_v14 }
 0x7bf   : > { %v3134_v55 = vpop.eup %3133 }
 0x7c0   : > { %2938 = vmatmul.mubr.msk.bf16.vlgmr.msra.gmra.mxu0 %vm593_vm3, %v1711_v54  ;;  %v1708_v58 = vmul.f32 %v3134_v55, %v3118_v12 }
 0x7c1   : > { %2948 = vmatpush3.bf16.xpose.msra.mxu0 %v1953_v56  ;;  %2949 = vmatprep.mubr.msk.bf16.mxu0 %vm3176_vm1, %v3175_v14  ;;  %v2048_v3 = vpop.permute.xlu0 %2047 }
 0x7c2   : > { %v1712_v59 = vpack.c.bf16 %v1708_v58, %v1707_v57  ;;  %2959 = vmatprep.subr.bf16.mxu0 %v3175_v14 }
 0x7c4   : > { %2944 = vmatmul.mubr.msk.bf16.vlgmr.msra.gmra.mxu1 %vm593_vm3, %v1712_v59 }
 0x7c5   : > { %2954 = vmatpush3.bf16.xpose.msra.mxu1 %v2004_v62  ;;  %2955 = vmatprep.mubr.msk.bf16.mxu1 %vm3176_vm1, %v3175_v14 }
 0x7c6   : > { %2965 = vmatprep.subr.bf16.mxu1 %v3175_v14 }
 0x7c8   : > { %2950 = vmatmul.mubr.msk.bf16.vlgmr.msra.gmra.mxu0 %vm395_vm2, %v1946_v60 }
 0x7c9   : > { %2960 = vmatpush3.bf16.xpose.msra.mxu0 %v2055_v63  ;;  %2961 = vmatprep.mubr.msk.bf16.mxu0 %vm3176_vm1, %v3175_v14 }
 0x7ca   : > { %2971 = vmatprep.subr.bf16.mxu0 %v3175_v14 }
 0x7cc   : > { %2956 = vmatmul.mubr.msk.bf16.vlgmr.msra.gmra.mxu1 %vm395_vm2, %v1997_v0 }
 0x7cd   : > { %2966 = vmatpush3.bf16.xpose.msra.mxu1 %v2106_v2  ;;  %2967 = vmatprep.mubr.msk.bf16.mxu1 %vm3176_vm1, %v3175_v14 }
 0x7ce   : > { %2977 = vmatprep.subr.bf16.mxu1 %v3175_v14 }
 0x7d0   : > { %2962 = vmatmul.mubr.msk.bf16.vlgmr.msra.gmra.mxu0 %vm395_vm2, %v2048_v3 }
 0x7d1   : > { %2973 = vmatprep.mubr.msk.bf16.mxu0 %vm3176_vm1, %v3175_v14 }
 0x7d4   : > { %2968 = vmatmul.mubr.msk.bf16.vlgmr.msra.gmra.mxu1 %vm395_vm2, %v2099_v4 }
 0x7d5   : > { %2979 = vmatprep.mubr.msk.bf16.mxu1 %vm3176_vm1, %v3175_v14 }
 0x877   : > { %v3591_v5 = vpop.f32.mrf.mxu0 }
 0x879   : > { %v2927_v6 = vpop.f32.mrf.mxu0 }
 0x87b   : > { %v3593_v7 = vpop.f32.mrf.mxu0 }
 0x87c   : > { %v3595_v8 = vpop.f32.mrf.mxu1 }
 0x87d   : > { %v2928_v9 = vpop.f32.mrf.mxu0 }
 0x87e   : > { %v2933_v10 = vpop.f32.mrf.mxu1 }
 0x880   : > { %v3597_v11 = vpop.f32.mrf.mxu0  ;;  %v3599_v12 = vpop.f32.mrf.mxu1 }
 0x882   : > { %v2939_v13 = vpop.f32.mrf.mxu0  ;;  %v2934_v15 = vpop.f32.mrf.mxu1 }
 0x884   : > { %v3601_v16 = vpop.f32.mrf.mxu0  ;;  %v3603_v17 = vpop.f32.mrf.mxu1 }
 0x886   : > { %v2940_v18 = vpop.f32.mrf.mxu0  ;;  %v2945_v20 = vpop.f32.mrf.mxu1 }
 0x888   : > { %v1989_v21 = vpop.f32.mrf.mxu0  ;;  %v3608_v22 = vpop.f32.mrf.mxu1 }
 0x889   : > { %v1990_v41 = vadd.f32 %v2694_v19, %v1989_v21 }
 0x88a   : > { %v2951_v44 = vpop.f32.mrf.mxu0  ;;  %v2946_v23 = vpop.f32.mrf.mxu1 }
 0x88b   : > { %v2149_v45 = vsel %vm593_vm3, %v1990_v41, -inf }
 0x88c   : > { %2150 = vmax.xlane.f32.xlu0 %v2149_v45  ;;  %v1992_v24 = vpop.f32.mrf.mxu0  ;;  %v2040_v28 = vpop.f32.mrf.mxu1 }
 0x88d   : > { %v1993_v26 = vadd.f32 %v2695_v38, %v1992_v24  ;;  %v2041_v30 = vadd.f32 %v2694_v19, %v2040_v28 }
 0x88e   : > { %v2952_v33 = vpop.f32.mrf.mxu0  ;;  %v2957_v34 = vpop.f32.mrf.mxu1 }
 0x88f   : > { %v2152_v37 = vsel %vm593_vm3, %v1993_v26, -inf  ;;  %v2155_v42 = vsel %vm593_vm3, %v2041_v30, -inf }
 0x890   : > { %2153 = vmax.xlane.f32.xlu1 %v2152_v37  ;;  %v2091_v39 = vpop.f32.mrf.mxu0  ;;  %2156 = vmax.xlane.f32.xlu0 %v2155_v42  ;;  %v2043_v51 = vpop.f32.mrf.mxu1 }
 0x891   : > { %v2092_v48 = vadd.f32 %v2694_v19, %v2091_v39  ;;  %v2044_v52 = vadd.f32 %v2695_v38, %v2043_v51 }
 0x892   : > { %v2963_v53 = vpop.f32.mrf.mxu0  ;;  %v2958_v50 = vpop.f32.mrf.mxu1 }
 0x893   : > { %v2161_v54 = vsel %vm593_vm3, %v2092_v48, -inf  ;;  %v2158_v56 = vsel %vm593_vm3, %v2044_v52, -inf }
 0x894   : > { %2162 = vmax.xlane.f32.xlu1 %v2161_v54  ;;  %v2094_v55 = vpop.f32.mrf.mxu0  ;;  %2159 = vmax.xlane.f32.xlu0 %v2158_v56  ;;  %v2142_v58 = vpop.f32.mrf.mxu1 }
 0x895   : > { %v2095_v57 = vadd.f32 %v2695_v38, %v2094_v55  ;;  %v2143_v59 = vadd.f32 %v2694_v19, %v2142_v58 }
 0x896   : > { %v2964_v60 = vpop.f32.mrf.mxu0  ;;  %v2969_v61 = vpop.f32.mrf.mxu1 }
 0x897   : > { %v2164_v62 = vsel %vm593_vm3, %v2095_v57, -inf  ;;  %v2167_v63 = vsel %vm593_vm3, %v2143_v59, -inf }
 0x898   : > { %2165 = vmax.xlane.f32.xlu0 %v2164_v62  ;;  %2168 = vmax.xlane.f32.xlu1 %v2167_v63  ;;  %v2145_v0 = vpop.f32.mrf.mxu1 }
 0x899   : > { %v2146_v1 = vadd.f32 %v2695_v38, %v2145_v0 }
 0x89a   : > { %v2970_v2 = vpop.f32.mrf.mxu1 }
 0x89b   : > { %v2170_v3 = vsel %vm593_vm3, %v2146_v1, -inf }
 0x89c   : > { %2171 = vmax.xlane.f32.xlu0 %v2170_v3 }
 0x8a9   : > { %2241 = vrot.lane.b32.xlu1 %v3263_v40, %s3187_s15 }
 0x915   : > { %v2151_v4 = vpop.xlane.xlu0 %2150 }
 0x916   : > { %v2173_v6 = vsub.f32 %v1990_v41, %v2151_v4 }
 0x918   : > { %v2181_v9 = vmul.f32 1.442695, %v2173_v6 }
 0x919   : > { %v2154_v10 = vpop.xlane.xlu1 %2153  ;;  %v2157_v15 = vpop.xlane.xlu0 %2156 }
 0x91a   : > { %3135 = vpow2.f32 %v2181_v9  ;;  %v2174_v13 = vsub.f32 %v1993_v26, %v2154_v10  ;;  %v2175_v18 = vsub.f32 %v2041_v30, %v2157_v15 }
 0x91c   : > { %v2183_v19 = vmul.f32 1.442695, %v2174_v13  ;;  %v2185_v20 = vmul.f32 1.442695, %v2175_v18 }
 0x91d   : > { %v2163_v21 = vpop.xlane.xlu1 %2162  ;;  %v2160_v38 = vpop.xlane.xlu0 %2159 }
 0x91e   : > { %3137 = vpow2.f32 %v2183_v19  ;;  %v2177_v44 = vsub.f32 %v2092_v48, %v2163_v21  ;;  %v2176_v23 = vsub.f32 %v2044_v52, %v2160_v38 }
 0x91f   : > { %3139 = vpow2.f32 %v2185_v20 }
 0x920   : > { %v2189_v45 = vmul.f32 1.442695, %v2177_v44  ;;  %v2187_v24 = vmul.f32 1.442695, %v2176_v23 }
 0x921   : > { %v2166_v40 = vpop.xlane.xlu0 %2165  ;;  %v2169_v28 = vpop.xlane.xlu1 %2168 }
 0x922   : > { %3141 = vpow2.f32 %v2189_v45  ;;  %v2178_v41 = vsub.f32 %v2095_v57, %v2166_v40  ;;  %v2179_v33 = vsub.f32 %v2143_v59, %v2169_v28 }
 0x923   : > { %3143 = vpow2.f32 %v2187_v24 }
 0x924   : > { %v2191_v34 = vmul.f32 1.442695, %v2178_v41  ;;  %v2193_v26 = vmul.f32 1.442695, %v2179_v33 }
 0x925   : > { %v2242_v37 = vpop.permute.xlu1 %2241  ;;  %v2172_v30 = vpop.xlane.xlu0 %2171 }
 0x926   : > { %3145 = vpow2.f32 %v2191_v34  ;;  %v2180_v42 = vsub.f32 %v2146_v1, %v2172_v30  ;;  %2972 = vmatpush3.bf16.msra.mxu0 %v2242_v37 }
 0x927   : > { %v3623_v39 = vpop.eup %3135  ;;  %3147 = vpow2.f32 %v2193_v26  ;;  %2983 = vmatprep.subr.bf16.mxu0 %v3175_v14 }
 0x928   : > { %v2197_v48 = vsel %vm593_vm3, %v3623_v39, 0.0  ;;  %v2195_v51 = vmul.f32 1.442695, %v2180_v42  ;;  %v3037_v42 = vld [vmem:[%s3752_s4 + $0x8] sm:$0xff]  }
 0x929   : > { %2198 = vadd.xlane.f32.xlu1 %v2197_v48 }
 0x92a   : > { %3149 = vpow2.f32 %v2195_v51 }
 0x92b   : > { %v3628_v52 = vpop.eup %3137 }
 0x92c   : > { %v3630_v53 = vpop.eup %3139  ;;  %v2200_v50 = vsel %vm593_vm3, %v3628_v52, 0.0 }
 0x92d   : > { %v2203_v54 = vsel %vm593_vm3, %v3630_v53, 0.0  ;;  %2201 = vadd.xlane.f32.xlu0 %v2200_v50 }
 0x92e   : > { %2204 = vadd.xlane.f32.xlu1 %v2203_v54 }
 0x92f   : > { %v3636_v55 = vpop.eup %3141 }
 0x930   : > { %v3638_v56 = vpop.eup %3143  ;;  %v2209_v57 = vsel %vm593_vm3, %v3636_v55, 0.0 }
 0x931   : > { %v2206_v58 = vsel %vm593_vm3, %v3638_v56, 0.0 }
 0x932   : > { %2210 = vadd.xlane.f32.xlu1 %v2209_v57  ;;  %2207 = vadd.xlane.f32.xlu0 %v2206_v58 }
 0x933   : > { %v3644_v59 = vpop.eup %3145 }
 0x934   : > { %v3646_v60 = vpop.eup %3147  ;;  %v2212_v61 = vsel %vm593_vm3, %v3644_v59, 0.0 }
 0x935   : > { %v2215_v62 = vsel %vm593_vm3, %v3646_v60, 0.0 }
 0x936   : > { %2213 = vadd.xlane.f32.xlu0 %v2212_v61  ;;  %2216 = vadd.xlane.f32.xlu1 %v2215_v62 }
 0x937   : > { %v3652_v63 = vpop.eup %3149 }
 0x938   : > { %v2218_v0 = vsel %vm593_vm3, %v3652_v63, 0.0 }
 0x93a   : > { %2219 = vadd.xlane.f32.xlu0 %v2218_v0 }
 0x947   : > { %2335 = vrot.lane.b32.xlu1 %v3267_v43, %s3187_s15 }
 0x94b   : > { %2382 = vrot.lane.b32.xlu1 %v3277_v47, %s3187_s15 }
 0x94f   : > { %1383 = vrot.lane.b32.xlu1 %v3499_v27, %s3188_s16 }
 0x950   : > { %2288 = vrot.lane.b32.xlu0 %v3275_v46, %s3187_s15 }
 0x953   : > { %1387 = vrot.lane.b32.xlu1 %v3505_v32, %s3188_s16 }
 0x954   : > { %1381 = vrot.lane.b32.xlu0 %v3497_v25, %s3188_s16 }
 0x957   : > { %1911 = vrot.lane.b32.xlu1 %v3593_v7, %s3189_s17 }
 0x958   : > { %1385 = vrot.lane.b32.xlu0 %v3501_v29, %s3188_s16 }
 0x95b   : > { %1915 = vrot.lane.b32.xlu1 %v3599_v12, %s3189_s17 }
 0x95c   : > { %1909 = vrot.lane.b32.xlu0 %v3591_v5, %s3189_s17 }
 0x95f   : > { %1391 = vrot.lane.b32.xlu1 %v3507_v35, %s3188_s16 }
 0x960   : > { %1913 = vrot.lane.b32.xlu0 %v3595_v8, %s3189_s17 }
 0x963   : > { %1395 = vrot.lane.b32.xlu1 %v3514_v49, %s3188_s16 }
 0x964   : > { %1389 = vrot.lane.b32.xlu0 %v3503_v31, %s3188_s16 }
 0x967   : > { %1919 = vrot.lane.b32.xlu1 %v3601_v16, %s3189_s17 }
 0x968   : > { %1393 = vrot.lane.b32.xlu0 %v3509_v36, %s3188_s16 }
 0x96b   : > { %1923 = vrot.lane.b32.xlu1 %v3608_v22, %s3189_s17 }
 0x96c   : > { %1917 = vrot.lane.b32.xlu0 %v3597_v11, %s3189_s17 }
 0x970   : > { %1921 = vrot.lane.b32.xlu0 %v3603_v17, %s3189_s17 }
 0x9b2   : > { %v2199_v43 = vpop.xlane.xlu1 %2198 }
 0x9b3   : > { %3151 = vrcp.f32 %v2199_v43 }
 0x9b6   : > { %v2202_v46 = vpop.xlane.xlu0 %2201 }
 0x9b7   : > { %v2205_v47 = vpop.xlane.xlu1 %2204  ;;  %3153 = vrcp.f32 %v2202_v46 }
 0x9b8   : > { %3155 = vrcp.f32 %v2205_v47 }
 0x9bb   : > { %v2211_v25 = vpop.xlane.xlu1 %2210  ;;  %v2208_v27 = vpop.xlane.xlu0 %2207 }
 0x9bc   : > { %3157 = vrcp.f32 %v2208_v27 }
 0x9bd   : > { %3159 = vrcp.f32 %v2211_v25 }
 0x9bf   : > { %v2214_v29 = vpop.xlane.xlu0 %2213  ;;  %v2217_v31 = vpop.xlane.xlu1 %2216 }
 0x9c0   : > { %3161 = vrcp.f32 %v2214_v29  ;;  %v3152_v32 = vpop.eup %3151 }
 0x9c1   : > { %3163 = vrcp.f32 %v2217_v31  ;;  %v2229_v5 = vmul.f32 %v3152_v32, %v3623_v39 }
 0x9c3   : > { %v2220_v35 = vpop.xlane.xlu0 %2219  ;;  %v2336_v49 = vpop.permute.xlu1 %2335 }
 0x9c4   : > { %v3154_v36 = vpop.eup %3153  ;;  %3165 = vrcp.f32 %v2220_v35 }
 0x9c5   : > { %v2230_v7 = vmul.f32 %v3154_v36, %v3628_v52  ;;  %v3156_v12 = vpop.eup %3155  ;;  %v3038_v52 = vld [vmem:[%s3752_s4] sm:$0xff]  }
 0x9c6   : > { %v2231_v2 = vmul.f32 %v3156_v12, %v3630_v53 }
 0x9c7   : > { %v2289_v8 = vpop.permute.xlu0 %2288  ;;  %v2237_v11 = vpack.c.bf16 %v2230_v7, %v2229_v5  ;;  %v2383_v16 = vpop.permute.xlu1 %2382 }
 0x9c8   : > { %2978 = vmatpush3.bf16.msra.mxu1 %v2289_v8 }
 0x9c9   : > { %2974 = vmatmul.mubr.msk.bf16.vlgmr.msra.gmra.mxu0 %vm593_vm3, %v2237_v11  ;;  %2989 = vmatprep.subr.bf16.mxu1 %v3175_v14  ;;  %v3158_v17 = vpop.eup %3157 }
 0x9ca   : > { %2984 = vmatpush3.bf16.msra.mxu0 %v2336_v49  ;;  %2985 = vmatprep.mubr.msk.bf16.mxu0 %vm3176_vm1, %v3175_v14  ;;  %v3160_v22 = vpop.eup %3159  ;;  %v2232_v3 = vmul.f32 %v3158_v17, %v3638_v56 }
 0x9cb   : > { %v1382_v1 = vpop.permute.xlu0 %1381  ;;  %v1384_v4 = vpop.permute.xlu1 %1383  ;;  %v2233_v10 = vmul.f32 %v3160_v22, %v3636_v55  ;;  %2995 = vmatprep.subr.bf16.mxu0 %v3037_v42 }
 0x9cc   : > { %1406 = vst.msk [vmem:[#allocation2] sm:$0xff] %vm1405_vm4, %v1382_v1  ;;  %1407 = vst.msk [vmem:[#allocation2 + $0x8] sm:$0xff] %vm1405_vm4, %v1384_v4  ;;  %v2238_v9 = vpack.c.bf16 %v2232_v3, %v2231_v2  ;;  %v2704_v4 = vld [vmem:[%s3753_s5] ss:$0 sm:$0xff] }
 0x9cd   : > { %v3162_v6 = vpop.eup %3161 }
 0x9ce   : > { %v2234_v13 = vmul.f32 %v3162_v6, %v3644_v59  ;;  %v3164_v15 = vpop.eup %3163  ;;  %2980 = vmatmul.mubr.msk.bf16.vlgmr.msra.gmra.mxu1 %vm593_vm3, %v2238_v9 }
 0x9cf   : > { %v1386_v18 = vpop.permute.xlu0 %1385  ;;  %2990 = vmatpush3.bf16.msra.mxu1 %v2383_v16  ;;  %v1388_v19 = vpop.permute.xlu1 %1387  ;;  %2991 = vmatprep.mubr.msk.bf16.mxu1 %vm3176_vm1, %v3175_v14  ;;  %v2235_v44 = vmul.f32 %v3164_v15, %v3646_v60 }
 0x9d0   : > { %1408 = vst.msk [vmem:[#allocation2 + $0x10] sm:$0xff] %vm1405_vm4, %v1386_v18  ;;  %v2239_v20 = vpack.c.bf16 %v2234_v13, %v2233_v10  ;;  %1409 = vst.msk [vmem:[#allocation2 + $0x18] sm:$0xff] %vm1405_vm4, %v1388_v19 }
 0x9d1   : > { %v3166_v21 = vpop.eup %3165 }
 0x9d2   : > { %2986 = vmatmul.mubr.msk.bf16.vlgmr.msra.gmra.mxu0 %vm593_vm3, %v2239_v20  ;;  %v2236_v38 = vmul.f32 %v3166_v21, %v3652_v63 }
 0x9d3   : > { %v1910_v23 = vpop.permute.xlu0 %1909  ;;  %v1912_v45 = vpop.permute.xlu1 %1911  ;;  %2996 = vmatpush3.bf16.msra.mxu0 %v3037_v42 }
 0x9d4   : > { %1934 = vst.msk [vmem:[#allocation2] sm:$0xff] %vm1933_vm5, %v1910_v23  ;;  %v2240_v24 = vpack.c.bf16 %v2236_v38, %v2235_v44  ;;  %1935 = vst.msk [vmem:[#allocation2 + $0x8] sm:$0xff] %vm1933_vm5, %v1912_v45  ;;  %2997 = vmatprep.subr.bf16.mxu0 %v3038_v52 }
 0x9d6   : > { %2992 = vmatmul.mubr.msk.bf16.vlgmr.msra.gmra.mxu1 %vm593_vm3, %v2240_v24 }
 0x9d7   : > { %v1914_v14 = vpop.permute.xlu0 %1913  ;;  %v1916_v40 = vpop.permute.xlu1 %1915  ;;  %2998 = vmatpush3.bf16.msra.mxu0 %v3038_v52 }
 0x9d8   : > { %1936 = vst.msk [vmem:[#allocation2 + $0x10] sm:$0xff] %vm1933_vm5, %v1914_v14  ;;  %1937 = vst.msk [vmem:[#allocation2 + $0x18] sm:$0xff] %vm1933_vm5, %v1916_v40 }
 0x9db   : > { %v1390_v28 = vpop.permute.xlu0 %1389  ;;  %v1392_v41 = vpop.permute.xlu1 %1391 }
 0x9dc   : > { %1410 = vst.msk [vmem:[#allocation2 + $0x20] sm:$0xff] %vm1405_vm4, %v1390_v28  ;;  %1411 = vst.msk [vmem:[#allocation2 + $0x28] sm:$0xff] %vm1405_vm4, %v1392_v41 }
 0x9df   : > { %v1394_v33 = vpop.permute.xlu0 %1393  ;;  %v1396_v34 = vpop.permute.xlu1 %1395 }
 0x9e0   : > { %1412 = vst.msk [vmem:[#allocation2 + $0x30] sm:$0xff] %vm1405_vm4, %v1394_v33  ;;  %1413 = vst.msk [vmem:[#allocation2 + $0x38] sm:$0xff] %vm1405_vm4, %v1396_v34 }
 0x9e3   : > { %v1918_v26 = vpop.permute.xlu0 %1917  ;;  %v1920_v37 = vpop.permute.xlu1 %1919 }
 0x9e4   : > { %1938 = vst.msk [vmem:[#allocation2 + $0x20] sm:$0xff] %vm1933_vm5, %v1918_v26  ;;  %1939 = vst.msk [vmem:[#allocation2 + $0x28] sm:$0xff] %vm1933_vm5, %v1920_v37 }
 0x9e7   : > { %v1922_v30 = vpop.permute.xlu0 %1921  ;;  %v1924_v39 = vpop.permute.xlu1 %1923 }
 0x9e8   : > { %1940 = vst.msk [vmem:[#allocation2 + $0x30] sm:$0xff] %vm1933_vm5, %v1922_v30  ;;  %1941 = vst.msk [vmem:[#allocation2 + $0x38] sm:$0xff] %vm1933_vm5, %v1924_v39 }
 0xa89   : > { %v2281_v48 = vpop.f32.mrf.mxu0 }
 0xa8a   : > { %2437 = vrot.lane.b32.xlu0 %v2281_v48, %s3190_s20 }
 0xa8b   : > { %v2975_v51 = vpop.f32.mrf.mxu0 }
 0xa8d   : > { %v2284_v53 = vpop.f32.mrf.mxu0 }
 0xa8e   : > { %2439 = vrot.lane.b32.xlu1 %v2284_v53, %s3190_s20  ;;  %v2328_v50 = vpop.f32.mrf.mxu1 }
 0xa8f   : > { %v2976_v54 = vpop.f32.mrf.mxu0  ;;  %2441 = vrot.lane.b32.xlu0 %v2328_v50, %s3190_s20 }
 0xa90   : > { %v2981_v55 = vpop.f32.mrf.mxu1 }
 0xa92   : > { %v2375_v56 = vpop.f32.mrf.mxu0  ;;  %v2331_v57 = vpop.f32.mrf.mxu1 }
 0xa93   : > { %2445 = vrot.lane.b32.xlu0 %v2375_v56, %s3190_s20  ;;  %2443 = vrot.lane.b32.xlu1 %v2331_v57, %s3190_s20 }
 0xa94   : > { %v2987_v58 = vpop.f32.mrf.mxu0  ;;  %v2982_v59 = vpop.f32.mrf.mxu1 }
 0xa96   : > { %v2378_v60 = vpop.f32.mrf.mxu0  ;;  %v2422_v61 = vpop.f32.mrf.mxu1 }
 0xa97   : > { %2447 = vrot.lane.b32.xlu1 %v2378_v60, %s3190_s20  ;;  %2449 = vrot.lane.b32.xlu0 %v2422_v61, %s3190_s20 }
 0xa98   : > { %v2988_v62 = vpop.f32.mrf.mxu0  ;;  %v2993_v63 = vpop.f32.mrf.mxu1 }
 0xa9a   : > { %v2425_v0 = vpop.f32.mrf.mxu1 }
 0xa9b   : > { %2451 = vrot.lane.b32.xlu1 %v2425_v0, %s3190_s20 }
 0xa9c   : > { %v2994_v43 = vpop.f32.mrf.mxu1 }
 0xafc   : > { %v2438_v46 = vpop.permute.xlu0 %2437 }
 0xafd   : > { %2462 = vst.msk [vmem:[#allocation2] sm:$0xff] %vm2461_vm6, %v2438_v46 }
 0xb00   : > { %v2440_v47 = vpop.permute.xlu1 %2439 }
 0xb01   : > { %2463 = vst.msk [vmem:[#allocation2 + $0x8] sm:$0xff] %vm2461_vm6, %v2440_v47  ;;  %v2442_v25 = vpop.permute.xlu0 %2441 }
 0xb02   : > { %2464 = vst.msk [vmem:[#allocation2 + $0x10] sm:$0xff] %vm2461_vm6, %v2442_v25 }
 0xb04   : > { %v2470_v31 = vld [vmem:[#allocation2] sm:$0xff] }
 0xb05   : > { %v2446_v27 = vpop.permute.xlu0 %2445  ;;  %v2444_v29 = vpop.permute.xlu1 %2443 }
 0xb06   : > { %2466 = vst.msk [vmem:[#allocation2 + $0x20] sm:$0xff] %vm2461_vm6, %v2446_v27  ;;  %2465 = vst.msk [vmem:[#allocation2 + $0x18] sm:$0xff] %vm2461_vm6, %v2444_v29 }
 0xb08   : > { %v2471_v32 = vld [vmem:[#allocation2 + $0x8] sm:$0xff] }
 0xb09   : > { %v2478_v35 = vpack.c.bf16 %v2471_v32, %v2470_v31  ;;  %v2448_v36 = vpop.permute.xlu1 %2447  ;;  %v2450_v49 = vpop.permute.xlu0 %2449  ;;  %v2472_v7 = vld [vmem:[#allocation2 + $0x10] sm:$0xff] }
 0xb0a   : > { %2467 = vst.msk [vmem:[#allocation2 + $0x28] sm:$0xff] %vm2461_vm6, %v2448_v36  ;;  %2468 = vst.msk [vmem:[#allocation2 + $0x30] sm:$0xff] %vm2461_vm6, %v2450_v49 }
 0xb0b   : > { %2999 = vmatprep.mubr.msk.bf16.mxu0 %vm296_vm0, %v2478_v35 }
 0xb0d   : > { %v2452_v5 = vpop.permute.xlu1 %2451  ;;  %v2473_v8 = vld [vmem:[#allocation2 + $0x18] sm:$0xff]  ;;  %v2474_v12 = vld [vmem:[#allocation2 + $0x20] sm:$0xff] }
 0xb0e   : > { %2469 = vst.msk [vmem:[#allocation2 + $0x38] sm:$0xff] %vm2461_vm6, %v2452_v5  ;;  %v2479_v11 = vpack.c.bf16 %v2473_v8, %v2472_v7 }
 0xb10   : > { %3000 = vmatmul.mubr.msk.bf16.vlgmr.msra.gmra.mxu0 %vm296_vm0, %v2479_v11 }
 0xb11   : > { %v2475_v16 = vld [vmem:[#allocation2 + $0x28] sm:$0xff]  ;;  %v2476_v22 = vld [vmem:[#allocation2 + $0x30] sm:$0xff] }
 0xb12   : > { %v2480_v17 = vpack.c.bf16 %v2475_v16, %v2474_v12 }
 0xb14   : > { %3003 = vmatprep.mubr.msk.bf16.mxu0 %vm296_vm0, %v2480_v17 }
 0xb15   : > { %v2477_v1 = vld [vmem:[#allocation2 + $0x38] sm:$0xff] }
 0xb16   : > { %v2481_v2 = vpack.c.bf16 %v2477_v1, %v2476_v22 }
 0xb18   : > { %3004 = vmatmul.mubr.msk.bf16.gmra.mxu0 %vm296_vm0, %v2481_v2 }
 0xbd0   : > { %v3001_v3 = vpop.f32.mrf.mxu0 }
 0xbd1   : > { %v2560_v10 = vadd.f32 %v3001_v3, %v2704_v4 }
 0xbd2   : > { %v2551_v6 = vpop.f32.mrf.mxu0 }
 0xbd3   : > { %v2552_v9 = vadd.f32 %v2704_v4, %v2551_v6  ;;  %2584 = vst.msk [vmem:[%s258_s30 + $0x10] sm:$0xff] %vm296_vm0, %v2560_v10 }
 0xbd4   : > { %v3002_v13 = vpop.f32.mrf.mxu0 }
 0xbd5   : > { %2582 = vst.msk [vmem:[%s258_s30] sm:$0xff] %vm296_vm0, %v2552_v9  ;;  %v2563_v19 = vadd.f32 %v3002_v13, %v2704_v4 }
 0xbd6   : > { %v2554_v15 = vpop.f32.mrf.mxu0 }
 0xbd7   : > { %v2555_v18 = vadd.f32 %v2704_v4, %v2554_v15  ;;  %2585 = vst.msk [vmem:[%s258_s30 + $0x18] sm:$0xff] %vm296_vm0, %v2563_v19 }
 0xbd8   : > { %v3005_v20 = vpop.f32.mrf.mxu0 }
 0xbd9   : > { %2583 = vst.msk [vmem:[%s258_s30 + $0x8] sm:$0xff] %vm296_vm0, %v2555_v18  ;;  %v2576_v38 = vadd.f32 %v3005_v20, %v2704_v4 }
 0xbda   : > { %v2567_v21 = vpop.f32.mrf.mxu0 }
 0xbdb   : > { %v2568_v44 = vadd.f32 %v2704_v4, %v2567_v21  ;;  %2588 = vst.msk [vmem:[%s258_s30 + $0x30] sm:$0xff] %vm296_vm0, %v2576_v38 }
 0xbdc   : > { %v3006_v23 = vpop.f32.mrf.mxu0 }
 0xbdd   : > { %2586 = vst.msk [vmem:[%s258_s30 + $0x20] sm:$0xff] %vm296_vm0, %v2568_v44  ;;  %v2579_v14 = vadd.f32 %v3006_v23, %v2704_v4 }
 0xbde   : > { %v2570_v45 = vpop.f32.mrf.mxu0 }
 0xbdf   : > { %v2571_v24 = vadd.f32 %v2704_v4, %v2570_v45  ;;  %2589 = vst.msk [vmem:[%s258_s30 + $0x38] sm:$0xff] %vm296_vm0, %v2579_v14 }
 0xbe1   : > { %2587 = vst.msk [vmem:[%s258_s30 + $0x28] sm:$0xff] %vm296_vm0, %v2571_v24 }
 0xbe2 PF: > { %s16_s21 = sadd.s32 1, %s3173_s21  }
 0xbe3   : > { %p13_p4 = scmp.ge.s32.totalorder %s16_s21, 4  }
 0xbe5   :  { %15 = sbr.rel (!%p13_p4) target bundleno = 1 (0x1), region = 77 }

</bundles_post_ra>
